<compile_context>
chip_gen: v6e
topology: v6e:2x2x1
jax: 0.10.0
libtpu: 0.0.40
codegen_flags: <defaults>
</compile_context>

<pallas_src>
import functools
import math

import numpy as np
import jax
import jax.numpy as jnp
from jax.experimental import pallas as pl
from jax.experimental.pallas import tpu as pltpu


def _phase_taps(k, stride, padding):
    """Polyphase tap table.

    Output row oy = qy*stride + ph receives input row (qy - d) through kernel
    tap kt, where (kt - padding) = d*stride + ph.  Returns, for each phase ph,
    the list of (kt, d)."""
    taps = [[] for _ in range(stride)]
    for kt in range(k):
        ph = (kt - padding) % stride
        d = (kt - padding - ph) // stride
        taps[ph].append((kt, d))
    return taps


def _conv_transpose_polyphase_kernel(x_ref, *refs, tap_tbl, slab_idx,
                                     Hq, Wq, s, Cin, Cout):
    """One (zero-halo-padded, channels-last) sample per grid step.

    x_ref : (1, H_pad, W_pad, Cin)      bf16 (or f32) input
    refs  : n_slab weight slabs (T*Cin, Cout) bf16,
            bias (1, s*s*Cout) f32,
            output (1, Hq*Wq, s*s*Cout)
    """
    n_slab = sum(1 for i in slab_idx if i is not None)
    w_refs = refs[:n_slab]
    b_ref = refs[n_slab]
    o_ref = refs[n_slab + 1]

    phase_accs = []
    for py in range(s):
        for px in range(s):
            idx = slab_idx[py * s + px]
            if idx is None:                       # k < stride: bias-only phase
                phase_accs.append(jnp.zeros((Hq * Wq, Cout), jnp.float32))
                continue
            # Per-phase im2col: gather the T tap windows and fuse them into one
            # wide contraction (K = T*Cin) -> a single MXU dot per phase.
            pieces = [x_ref[0, ys:ys + Hq, xs:xs + Wq, :]
                      for _, ys in tap_tbl[py] for _, xs in tap_tbl[px]]
            patch = (pieces[0] if len(pieces) == 1
                     else jnp.concatenate(pieces, axis=-1))    # (Hq, Wq, T*Cin)
            patch = patch.reshape(Hq * Wq, len(pieces) * Cin)  # one reshape/phase
            phase_accs.append(jnp.dot(patch, w_refs[idx][...],
                                      preferred_element_type=jnp.float32))
    full = (phase_accs[0] if len(phase_accs) == 1
            else jnp.concatenate(phase_accs, axis=-1))    # (Hq*Wq, s*s*Cout)
    o_ref[0] = (full + b_ref[...]).astype(o_ref.dtype)    # one bias add, one store


def conv_transpose2d_nhwc(x, weight, bias, *, stride=1, padding=0,
                          compute_dtype=jnp.bfloat16):
    """PyTorch-semantics F.conv_transpose2d on a channels-last input.

    x: (N, H, W, Cin); weight: (Cin, Cout, k, k); bias: (Cout,) or None.
    Returns (N, H_out, W_out, Cout) in x.dtype, H_out = (H-1)*stride - 2*pad + k."""
    N, H, W, Cin = x.shape
    wCin, Cout, k, k2 = weight.shape
    assert wCin == Cin and k == k2
    s, p = int(stride), int(padding)
    assert s >= 1 and p >= 0, "negative padding not supported"
    H_out = (H - 1) * s - 2 * p + k
    W_out = (W - 1) * s - 2 * p + k
    assert H_out > 0 and W_out > 0
    out_dtype = x.dtype

    taps = _phase_taps(k, s, p)
    d_all = [d for ph in taps for _, d in ph]
    d_min, d_max = min(d_all), max(d_all)
    halo = max(d_max, 0)                          # low-side zero halo
    Hq = -(-H_out // s)                           # rows per phase (ceil)
    Wq = -(-W_out // s)
    pad_hi_h = max(Hq - d_min - H, 0)             # high-side zero halo
    pad_hi_w = max(Wq - d_min - W, 0)
    # Per-phase (tap index, static start offset in the padded input).
    tap_tbl = tuple(tuple((kt, halo - d) for kt, d in ph) for ph in taps)

    # Zero halo so every tap slice in the kernel is in-bounds and out-of-range
    # contributions are exactly zero; bf16 halves HBM/VMEM traffic.
    x_cl = jnp.pad(x, ((0, 0), (halo, pad_hi_h), (halo, pad_hi_w), (0, 0)))
    x_cl = x_cl.astype(compute_dtype)
    H_pad, W_pad = H + halo + pad_hi_h, W + halo + pad_hi_w

    # Pre-stacked per-phase weight slabs (T*Cin, Cout); the stacking order must
    # match the kernel's tap concatenation order.  Empty phases (k < stride)
    # are bias-only and get no slab.
    w_t = jnp.transpose(weight, (2, 3, 0, 1)).astype(compute_dtype)  # (k,k,Cin,Cout)
    w_slabs, slab_idx = [], []
    for py in range(s):
        for px in range(s):
            if not taps[py] or not taps[px]:
                slab_idx.append(None)
                continue
            slab = jnp.concatenate([w_t[ky, kx] for ky, _ in taps[py]
                                    for kx, _ in taps[px]], axis=0)
            slab_idx.append(len(w_slabs))
            w_slabs.append(slab)
    slab_idx = tuple(slab_idx)

    if bias is None:
        b2 = jnp.zeros((1, s * s * Cout), jnp.float32)
    else:
        b2 = jnp.tile(bias.reshape(1, Cout).astype(jnp.float32), (1, s * s))

    body = functools.partial(_conv_transpose_polyphase_kernel,
                             tap_tbl=tap_tbl, slab_idx=slab_idx,
                             Hq=Hq, Wq=Wq, s=s, Cin=Cin, Cout=Cout)

    cdt = np.dtype(compute_dtype).itemsize
    odt = np.dtype(out_dtype).itemsize
    in_blk = H_pad * W_pad * Cin * cdt
    out_blk = Hq * Wq * s * s * Cout * odt
    w_bytes = k * k * Cin * Cout * cdt + s * s * Cout * 4
    # Double-buffered in/out blocks + resident weights + working-set headroom.
    vmem_needed = 3 * in_blk + 4 * out_blk + 2 * w_bytes
    vmem_limit = int(min(100 * 2**20, max(vmem_needed, 32 * 2**20)))

    flops = 2 * N * Hq * Wq * k * k * Cin * Cout
    bytes_accessed = (N * H_pad * W_pad * Cin * cdt + k * k * Cin * Cout * cdt
                      + N * Hq * Wq * s * s * Cout * odt)

    out_ph = pl.pallas_call(
        body,
        out_shape=jax.ShapeDtypeStruct((N, Hq * Wq, s * s * Cout), out_dtype),
        grid=(N,),
        in_specs=([pl.BlockSpec((1, H_pad, W_pad, Cin), lambda n: (n, 0, 0, 0))]
                  + [pl.BlockSpec(slab.shape, lambda n: (0, 0))
                     for slab in w_slabs]
                  + [pl.BlockSpec((1, s * s * Cout), lambda n: (0, 0))]),
        out_specs=pl.BlockSpec((1, Hq * Wq, s * s * Cout), lambda n: (n, 0, 0)),
        compiler_params=pltpu.CompilerParams(
            dimension_semantics=("parallel",),
            vmem_limit_bytes=vmem_limit),
        cost_estimate=pl.CostEstimate(flops=flops, transcendentals=0,
                                      bytes_accessed=bytes_accessed),
    )(x_cl, *w_slabs, b2)
    # TODO(synk): for very large H*W (v7x 64 MiB VMEM, N=1) add a parallel
    # output-row-tile grid axis with haloed input windows (manual DMA from pl.ANY).

    # Interleave the s*s polyphase outputs and crop (layout-compatible reshapes
    # + one transpose, all channels-last).
    out = out_ph.reshape(N, Hq, Wq, s, s, Cout)
    out = jnp.transpose(out, (0, 1, 3, 2, 4, 5)).reshape(N, Hq * s, Wq * s, Cout)
    return out[:, :H_out, :W_out, :]


def conv_transpose2d_pallas(x, weight, bias, *, stride=1, padding=0,
                            compute_dtype=jnp.bfloat16):
    """NCHW wrapper matching F.conv_transpose2d(x, weight, bias, stride, padding)."""
    out = conv_transpose2d_nhwc(jnp.transpose(x, (0, 2, 3, 1)), weight, bias,
                                stride=stride, padding=padding,
                                compute_dtype=compute_dtype)
    return jnp.transpose(out, (0, 3, 1, 2))


class EqualConvTranspose2d:
    """JAX/Pallas port of the StyleGAN2 EqualConvTranspose2d module (forward only)."""

    def __init__(self, in_channel, out_channel, kernel_size, stride=1, padding=0,
                 bias=True, circular=False, circular2=False, manual_pad=3, *, key=None):
        if key is None:
            key = jax.random.PRNGKey(0)
        if circular:
            wshape = (out_channel, in_channel, kernel_size, kernel_size)
        else:
            wshape = (in_channel, out_channel, kernel_size, kernel_size)
        self.weight = jax.random.normal(key, wshape, dtype=jnp.float32)
        self.scale = 1.0 / math.sqrt(in_channel * kernel_size ** 2)
        self.circular = circular
        self.circular2 = circular2
        self.stride = stride
        self.padding = padding
        self.manual_pad = manual_pad
        self.bias = jnp.zeros((out_channel,), jnp.float32) if bias else None

    def __call__(self, x):
        if self.circular:
            # TODO(synk): circular=True branch (bilinear CircularUpsample + circular pad + conv2d) not ported to Pallas.
            raise NotImplementedError("circular=True path is not implemented")
        x = jnp.transpose(x, (0, 2, 3, 1))                # NCHW -> NHWC once
        if self.circular2:
            mp = self.manual_pad                          # PyTorch 'circular' == 'wrap'
            x = jnp.pad(x, ((0, 0), (mp, mp), (mp, mp), (0, 0)), mode="wrap")
        out = conv_transpose2d_nhwc(x, self.weight * self.scale, self.bias,
                                    stride=self.stride, padding=self.padding)
        return jnp.transpose(out, (0, 3, 1, 2))           # back to NCHW (PyTorch layout)


def _conv_transpose2d_ref(x, w, b, stride, padding):
    """Pure-JAX f32 reference: conv_transpose via lhs-dilated conv with flipped weights."""
    _, cout, k, _ = w.shape
    w_flip = jnp.flip(w, (2, 3))
    w_oihw = jnp.transpose(w_flip, (1, 0, 2, 3))          # (Cout, Cin, k, k)
    pad = k - 1 - padding
    out = jax.lax.conv_general_dilated(
        x, w_oihw, window_strides=(1, 1),
        padding=((pad, pad), (pad, pad)),
        lhs_dilation=(stride, stride), rhs_dilation=(1, 1),
        dimension_numbers=("NCHW", "OIHW", "NCHW"),
        precision=jax.lax.Precision.HIGHEST)
    if b is not None:
        out = out + b.reshape(1, cout, 1, 1)
    return out


if __name__ == "__main__":
    key = jax.random.PRNGKey(0)
    kx_key, kw_key, kb_key = jax.random.split(key, 3)
    N, Cin, Cout, H, W = 2, 4, 8, 16, 16
    x = jax.random.normal(kx_key, (N, Cin, H, W), dtype=jnp.float32)
    # bf16 MXU inputs vs f32 HIGHEST reference -> loose tolerance.
    RTOL, ATOL = 2e-2, 2e-2

    # 1) Plain transposed conv (StyleGAN2 2x upsampling conv): k=4, s=2, p=1.
    conv = EqualConvTranspose2d(Cin, Cout, 4, stride=2, padding=1, bias=True,
                                key=kw_key)
    conv.bias = 0.1 * jax.random.normal(kb_key, (Cout,), dtype=jnp.float32)
    out = jax.block_until_ready(conv(x))
    assert out.shape == (N, Cout, 32, 32), out.shape
    ref = _conv_transpose2d_ref(x, conv.weight * conv.scale, conv.bias, 2, 1)
    np.testing.assert_allclose(np.asarray(out), np.asarray(ref),
                               rtol=RTOL, atol=ATOL)

    # 2) circular2 path: circular ("wrap") pre-pad, then the same transposed conv.
    conv2 = EqualConvTranspose2d(Cin, Cout, 3, stride=1, padding=0, bias=True,
                                 circular2=True, manual_pad=3, key=kw_key)
    out2 = jax.block_until_ready(conv2(x))
    xp = jnp.pad(x, ((0, 0), (0, 0), (3, 3), (3, 3)), mode="wrap")
    ref2 = _conv_transpose2d_ref(xp, conv2.weight * conv2.scale, conv2.bias, 1, 0)
    assert out2.shape == ref2.shape, (out2.shape, ref2.shape)
    np.testing.assert_allclose(np.asarray(out2), np.asarray(ref2),
                               rtol=RTOL, atol=ATOL)

    # 3) k < stride (empty polyphase phases -> bias-only outputs): k=1, s=2, p=0.
    conv3 = EqualConvTranspose2d(Cin, Cout, 1, stride=2, padding=0, bias=True,
                                 key=kw_key)
    conv3.bias = 0.1 * jax.random.normal(kb_key, (Cout,), dtype=jnp.float32)
    out3 = jax.block_until_ready(conv3(x))
    ref3 = _conv_transpose2d_ref(x, conv3.weight * conv3.scale, conv3.bias, 2, 0)
    assert out3.shape == ref3.shape, (out3.shape, ref3.shape)
    np.testing.assert_allclose(np.asarray(out3), np.asarray(ref3),
                               rtol=RTOL, atol=ATOL)

    print("KERNEL_OK")
</pallas_src>

<mosaic_0001>
module attributes {stable_mosaic.version = 11 : i64} {
  func.func @_conv_transpose_polyphase_kernel(%arg0: i32, %arg1: memref<1x18x18x4xbf16, #tpu.memory_space<vmem>>, %arg2: memref<16x8xbf16, #tpu.memory_space<vmem>>, %arg3: memref<16x8xbf16, #tpu.memory_space<vmem>>, %arg4: memref<16x8xbf16, #tpu.memory_space<vmem>>, %arg5: memref<16x8xbf16, #tpu.memory_space<vmem>>, %arg6: memref<1x32xf32, #tpu.memory_space<vmem>>, %arg7: memref<1x256x32xf32, #tpu.memory_space<vmem>>) attributes {dimension_semantics = [#tpu.dimension_semantics<parallel>], iteration_bounds = array<i64: 2>, scalar_prefetch = 0 : i64, scratch_operands = 0 : i64, tpu.core_type = #tpu.core_type<tc>, window_params = [{transform_indices = @transform_0, window_bounds = array<i64: 1, 18, 18, 4>}, {pipeline_mode = #tpu.pipeline_mode<synchronous>, transform_indices = @transform_1, window_bounds = array<i64: 16, 8>}, {pipeline_mode = #tpu.pipeline_mode<synchronous>, transform_indices = @transform_2, window_bounds = array<i64: 16, 8>}, {pipeline_mode = #tpu.pipeline_mode<synchronous>, transform_indices = @transform_3, window_bounds = array<i64: 16, 8>}, {pipeline_mode = #tpu.pipeline_mode<synchronous>, transform_indices = @transform_4, window_bounds = array<i64: 16, 8>}, {pipeline_mode = #tpu.pipeline_mode<synchronous>, transform_indices = @transform_5, window_bounds = array<i64: 1, 32>}, {transform_indices = @transform_6, window_bounds = array<i64: 1, 256, 32>}]} {
    %c0 = arith.constant 0 : index
    %c1 = arith.constant 1 : index
    %c1_0 = arith.constant 1 : index
    %c0_1 = arith.constant 0 : index
    %0 = vector.load %arg1[%c0, %c1, %c1_0, %c0_1] : memref<1x18x18x4xbf16, #tpu.memory_space<vmem>>, vector<1x16x16x4xbf16>
    %1 = vector.shape_cast %0 : vector<1x16x16x4xbf16> to vector<16x16x4xbf16>
    %c0_2 = arith.constant 0 : index
    %c1_3 = arith.constant 1 : index
    %c0_4 = arith.constant 0 : index
    %c0_5 = arith.constant 0 : index
    %2 = vector.load %arg1[%c0_2, %c1_3, %c0_4, %c0_5] : memref<1x18x18x4xbf16, #tpu.memory_space<vmem>>, vector<1x16x16x4xbf16>
    %3 = vector.shape_cast %2 : vector<1x16x16x4xbf16> to vector<16x16x4xbf16>
    %c0_6 = arith.constant 0 : index
    %c0_7 = arith.constant 0 : index
    %c1_8 = arith.constant 1 : index
    %c0_9 = arith.constant 0 : index
    %4 = vector.load %arg1[%c0_6, %c0_7, %c1_8, %c0_9] : memref<1x18x18x4xbf16, #tpu.memory_space<vmem>>, vector<1x16x16x4xbf16>
    %5 = vector.shape_cast %4 : vector<1x16x16x4xbf16> to vector<16x16x4xbf16>
    %c0_10 = arith.constant 0 : index
    %c0_11 = arith.constant 0 : index
    %c0_12 = arith.constant 0 : index
    %c0_13 = arith.constant 0 : index
    %6 = vector.load %arg1[%c0_10, %c0_11, %c0_12, %c0_13] : memref<1x18x18x4xbf16, #tpu.memory_space<vmem>>, vector<1x16x16x4xbf16>
    %7 = vector.shape_cast %6 : vector<1x16x16x4xbf16> to vector<16x16x4xbf16>
    %8 = tpu.concatenate %1, %3, %5, %7 in 2 : vector<16x16x4xbf16>, vector<16x16x4xbf16>, vector<16x16x4xbf16>, vector<16x16x4xbf16> -> vector<16x16x16xbf16>
    %9 = vector.shape_cast %8 : vector<16x16x16xbf16> to vector<256x16xbf16>
    %c0_14 = arith.constant 0 : index
    %c0_15 = arith.constant 0 : index
    %10 = vector.load %arg2[%c0_14, %c0_15] : memref<16x8xbf16, #tpu.memory_space<vmem>>, vector<16x8xbf16>
    %cst = arith.constant dense<0.000000e+00> : vector<256x8xf32>
    %11 = tpu.matmul %9, %10, %cst {dimension_numbers = #tpu.dot_dimension_numbers<[1], [0], [0], [1], [0, 0, 1, 1], [], []>} : vector<256x16xbf16>, vector<16x8xbf16>, vector<256x8xf32> -> vector<256x8xf32>
    %c0_16 = arith.constant 0 : index
    %c1_17 = arith.constant 1 : index
    %c2 = arith.constant 2 : index
    %c0_18 = arith.constant 0 : index
    %12 = vector.load %arg1[%c0_16, %c1_17, %c2, %c0_18] : memref<1x18x18x4xbf16, #tpu.memory_space<vmem>>, vector<1x16x16x4xbf16>
    %13 = vector.shape_cast %12 : vector<1x16x16x4xbf16> to vector<16x16x4xbf16>
    %c0_19 = arith.constant 0 : index
    %c1_20 = arith.constant 1 : index
    %c1_21 = arith.constant 1 : index
    %c0_22 = arith.constant 0 : index
    %14 = vector.load %arg1[%c0_19, %c1_20, %c1_21, %c0_22] : memref<1x18x18x4xbf16, #tpu.memory_space<vmem>>, vector<1x16x16x4xbf16>
    %15 = vector.shape_cast %14 : vector<1x16x16x4xbf16> to vector<16x16x4xbf16>
    %c0_23 = arith.constant 0 : index
    %c0_24 = arith.constant 0 : index
    %c2_25 = arith.constant 2 : index
    %c0_26 = arith.constant 0 : index
    %16 = vector.load %arg1[%c0_23, %c0_24, %c2_25, %c0_26] : memref<1x18x18x4xbf16, #tpu.memory_space<vmem>>, vector<1x16x16x4xbf16>
    %17 = vector.shape_cast %16 : vector<1x16x16x4xbf16> to vector<16x16x4xbf16>
    %c0_27 = arith.constant 0 : index
    %c0_28 = arith.constant 0 : index
    %c1_29 = arith.constant 1 : index
    %c0_30 = arith.constant 0 : index
    %18 = vector.load %arg1[%c0_27, %c0_28, %c1_29, %c0_30] : memref<1x18x18x4xbf16, #tpu.memory_space<vmem>>, vector<1x16x16x4xbf16>
    %19 = vector.shape_cast %18 : vector<1x16x16x4xbf16> to vector<16x16x4xbf16>
    %20 = tpu.concatenate %13, %15, %17, %19 in 2 : vector<16x16x4xbf16>, vector<16x16x4xbf16>, vector<16x16x4xbf16>, vector<16x16x4xbf16> -> vector<16x16x16xbf16>
    %21 = vector.shape_cast %20 : vector<16x16x16xbf16> to vector<256x16xbf16>
    %c0_31 = arith.constant 0 : index
    %c0_32 = arith.constant 0 : index
    %22 = vector.load %arg3[%c0_31, %c0_32] : memref<16x8xbf16, #tpu.memory_space<vmem>>, vector<16x8xbf16>
    %cst_33 = arith.constant dense<0.000000e+00> : vector<256x8xf32>
    %23 = tpu.matmul %21, %22, %cst_33 {dimension_numbers = #tpu.dot_dimension_numbers<[1], [0], [0], [1], [0, 0, 1, 1], [], []>} : vector<256x16xbf16>, vector<16x8xbf16>, vector<256x8xf32> -> vector<256x8xf32>
    %c0_34 = arith.constant 0 : index
    %c2_35 = arith.constant 2 : index
    %c1_36 = arith.constant 1 : index
    %c0_37 = arith.constant 0 : index
    %24 = vector.load %arg1[%c0_34, %c2_35, %c1_36, %c0_37] : memref<1x18x18x4xbf16, #tpu.memory_space<vmem>>, vector<1x16x16x4xbf16>
    %25 = vector.shape_cast %24 : vector<1x16x16x4xbf16> to vector<16x16x4xbf16>
    %c0_38 = arith.constant 0 : index
    %c2_39 = arith.constant 2 : index
    %c0_40 = arith.constant 0 : index
    %c0_41 = arith.constant 0 : index
    %26 = vector.load %arg1[%c0_38, %c2_39, %c0_40, %c0_41] : memref<1x18x18x4xbf16, #tpu.memory_space<vmem>>, vector<1x16x16x4xbf16>
    %27 = vector.shape_cast %26 : vector<1x16x16x4xbf16> to vector<16x16x4xbf16>
    %c0_42 = arith.constant 0 : index
    %c1_43 = arith.constant 1 : index
    %c1_44 = arith.constant 1 : index
    %c0_45 = arith.constant 0 : index
    %28 = vector.load %arg1[%c0_42, %c1_43, %c1_44, %c0_45] : memref<1x18x18x4xbf16, #tpu.memory_space<vmem>>, vector<1x16x16x4xbf16>
    %29 = vector.shape_cast %28 : vector<1x16x16x4xbf16> to vector<16x16x4xbf16>
    %c0_46 = arith.constant 0 : index
    %c1_47 = arith.constant 1 : index
    %c0_48 = arith.constant 0 : index
    %c0_49 = arith.constant 0 : index
    %30 = vector.load %arg1[%c0_46, %c1_47, %c0_48, %c0_49] : memref<1x18x18x4xbf16, #tpu.memory_space<vmem>>, vector<1x16x16x4xbf16>
    %31 = vector.shape_cast %30 : vector<1x16x16x4xbf16> to vector<16x16x4xbf16>
    %32 = tpu.concatenate %25, %27, %29, %31 in 2 : vector<16x16x4xbf16>, vector<16x16x4xbf16>, vector<16x16x4xbf16>, vector<16x16x4xbf16> -> vector<16x16x16xbf16>
    %33 = vector.shape_cast %32 : vector<16x16x16xbf16> to vector<256x16xbf16>
    %c0_50 = arith.constant 0 : index
    %c0_51 = arith.constant 0 : index
    %34 = vector.load %arg4[%c0_50, %c0_51] : memref<16x8xbf16, #tpu.memory_space<vmem>>, vector<16x8xbf16>
    %cst_52 = arith.constant dense<0.000000e+00> : vector<256x8xf32>
    %35 = tpu.matmul %33, %34, %cst_52 {dimension_numbers = #tpu.dot_dimension_numbers<[1], [0], [0], [1], [0, 0, 1, 1], [], []>} : vector<256x16xbf16>, vector<16x8xbf16>, vector<256x8xf32> -> vector<256x8xf32>
    %c0_53 = arith.constant 0 : index
    %c2_54 = arith.constant 2 : index
    %c2_55 = arith.constant 2 : index
    %c0_56 = arith.constant 0 : index
    %36 = vector.load %arg1[%c0_53, %c2_54, %c2_55, %c0_56] : memref<1x18x18x4xbf16, #tpu.memory_space<vmem>>, vector<1x16x16x4xbf16>
    %37 = vector.shape_cast %36 : vector<1x16x16x4xbf16> to vector<16x16x4xbf16>
    %c0_57 = arith.constant 0 : index
    %c2_58 = arith.constant 2 : index
    %c1_59 = arith.constant 1 : index
    %c0_60 = arith.constant 0 : index
    %38 = vector.load %arg1[%c0_57, %c2_58, %c1_59, %c0_60] : memref<1x18x18x4xbf16, #tpu.memory_space<vmem>>, vector<1x16x16x4xbf16>
    %39 = vector.shape_cast %38 : vector<1x16x16x4xbf16> to vector<16x16x4xbf16>
    %c0_61 = arith.constant 0 : index
    %c1_62 = arith.constant 1 : index
    %c2_63 = arith.constant 2 : index
    %c0_64 = arith.constant 0 : index
    %40 = vector.load %arg1[%c0_61, %c1_62, %c2_63, %c0_64] : memref<1x18x18x4xbf16, #tpu.memory_space<vmem>>, vector<1x16x16x4xbf16>
    %41 = vector.shape_cast %40 : vector<1x16x16x4xbf16> to vector<16x16x4xbf16>
    %c0_65 = arith.constant 0 : index
    %c1_66 = arith.constant 1 : index
    %c1_67 = arith.constant 1 : index
    %c0_68 = arith.constant 0 : index
    %42 = vector.load %arg1[%c0_65, %c1_66, %c1_67, %c0_68] : memref<1x18x18x4xbf16, #tpu.memory_space<vmem>>, vector<1x16x16x4xbf16>
    %43 = vector.shape_cast %42 : vector<1x16x16x4xbf16> to vector<16x16x4xbf16>
    %44 = tpu.concatenate %37, %39, %41, %43 in 2 : vector<16x16x4xbf16>, vector<16x16x4xbf16>, vector<16x16x4xbf16>, vector<16x16x4xbf16> -> vector<16x16x16xbf16>
    %45 = vector.shape_cast %44 : vector<16x16x16xbf16> to vector<256x16xbf16>
    %c0_69 = arith.constant 0 : index
    %c0_70 = arith.constant 0 : index
    %46 = vector.load %arg5[%c0_69, %c0_70] : memref<16x8xbf16, #tpu.memory_space<vmem>>, vector<16x8xbf16>
    %cst_71 = arith.constant dense<0.000000e+00> : vector<256x8xf32>
    %47 = tpu.matmul %45, %46, %cst_71 {dimension_numbers = #tpu.dot_dimension_numbers<[1], [0], [0], [1], [0, 0, 1, 1], [], []>} : vector<256x16xbf16>, vector<16x8xbf16>, vector<256x8xf32> -> vector<256x8xf32>
    %48 = tpu.concatenate %11, %23, %35, %47 in 1 : vector<256x8xf32>, vector<256x8xf32>, vector<256x8xf32>, vector<256x8xf32> -> vector<256x32xf32>
    %c0_72 = arith.constant 0 : index
    %c0_73 = arith.constant 0 : index
    %49 = vector.load %arg6[%c0_72, %c0_73] : memref<1x32xf32, #tpu.memory_space<vmem>>, vector<1x32xf32>
    %50 = vector.broadcast %49 : vector<1x32xf32> to vector<256x32xf32>
    %51 = arith.addf %48, %50 : vector<256x32xf32>
    %c0_74 = arith.constant 0 : index
    %c0_75 = arith.constant 0 : index
    %c0_76 = arith.constant 0 : index
    %52 = vector.load %arg7[%c0_74, %c0_75, %c0_76] : memref<1x256x32xf32, #tpu.memory_space<vmem>>, vector<1x256x32xf32>
    %53 = vector.shape_cast %52 : vector<1x256x32xf32> to vector<256x32xf32>
    %54 = vector.shape_cast %51 : vector<256x32xf32> to vector<1x256x32xf32>
    tpu.vector_store %arg7[%c0_74, %c0_75, %c0_76], %54 {strides = array<i32>} : memref<1x256x32xf32, #tpu.memory_space<vmem>>, vector<1x256x32xf32>,
    return
  }
  func.func @transform_0(%arg0: i32) -> (i32, i32, i32, i32) {
    %c0_i32 = arith.constant 0 : i32
    %c0_i32_0 = arith.constant 0 : i32
    %c0_i32_1 = arith.constant 0 : i32
    %c0_i32_2 = arith.constant 0 : i32
    return %arg0, %c0_i32, %c0_i32_0, %c0_i32_1 : i32, i32, i32, i32
  }
  func.func @transform_1(%arg0: i32) -> (i32, i32) {
    %c0_i32 = arith.constant 0 : i32
    %c0_i32_0 = arith.constant 0 : i32
    %c0_i32_1 = arith.constant 0 : i32
    return %c0_i32, %c0_i32_0 : i32, i32
  }
  func.func @transform_2(%arg0: i32) -> (i32, i32) {
    %c0_i32 = arith.constant 0 : i32
    %c0_i32_0 = arith.constant 0 : i32
    %c0_i32_1 = arith.constant 0 : i32
    return %c0_i32, %c0_i32_0 : i32, i32
  }
  func.func @transform_3(%arg0: i32) -> (i32, i32) {
    %c0_i32 = arith.constant 0 : i32
    %c0_i32_0 = arith.constant 0 : i32
    %c0_i32_1 = arith.constant 0 : i32
    return %c0_i32, %c0_i32_0 : i32, i32
  }
  func.func @transform_4(%arg0: i32) -> (i32, i32) {
    %c0_i32 = arith.constant 0 : i32
    %c0_i32_0 = arith.constant 0 : i32
    %c0_i32_1 = arith.constant 0 : i32
    return %c0_i32, %c0_i32_0 : i32, i32
  }
  func.func @transform_5(%arg0: i32) -> (i32, i32) {
    %c0_i32 = arith.constant 0 : i32
    %c0_i32_0 = arith.constant 0 : i32
    %c0_i32_1 = arith.constant 0 : i32
    return %c0_i32, %c0_i32_0 : i32, i32
  }
  func.func @transform_6(%arg0: i32) -> (i32, i32, i32) {
    %c0_i32 = arith.constant 0 : i32
    %c0_i32_0 = arith.constant 0 : i32
    %c0_i32_1 = arith.constant 0 : i32
    return %arg0, %c0_i32, %c0_i32_0 : i32, i32, i32
  }
}

</mosaic_0001>

<bundles_post_ra>
// kernel: tpu_custom_call.1
= control target key start
LH: loop header
LB: loop body
LE: loop exit
PB: predicated region body
PF: predicated region fallthrough
CT: control target
= control target key end

     0   :  { %s5560_s21 = smov 0   ;;  %s8998_s0 = inlined_call_operand.vmem [shape: bf16[2,18,18,4], index: 0, kind: input, shape index: {}]   ;;  %s8999_s1 = inlined_call_operand.vmem [shape: bf16[16,8], index: 1, kind: input, shape index: {}]   ;;  %s9000_s2 = inlined_call_operand.vmem [shape: bf16[16,8], index: 2, kind: input, shape index: {}]   ;;  %s9001_s3 = inlined_call_operand.vmem [shape: bf16[16,8], index: 3, kind: input, shape index: {}]   ;;  %s9002_s4 = inlined_call_operand.vmem [shape: bf16[16,8], index: 4, kind: input, shape index: {}]   ;;  %s9003_s5 = inlined_call_operand.vmem [shape: f32[1,32], index: 5, kind: input, shape index: {}]   ;;  %s9004_s6 = inlined_call_operand.vmem [shape: f32[2,256,32], index: 6, kind: output, shape index: {}]  }
   0x1 LB: > { %s4746_s22 = sadd.s32 4294967295, %s5518_s21   ;;  %p4750_p0 = scmp.ge.s32.totalorder %s5518_s21, 1  ;;  %s5518_s21 = sphi %s5560_s21, %s16_s21  }
   0x2   : > { %p212_p1 = scmp.lt.s32.totalorder %s5518_s21, 3 }
   0x4   : > { %p213_p2 = pnand %p4750_p0, %p212_p1 }
   0x6   : > { %216 = sbr.rel (%p213_p2) target bundleno = 1096 (0x448), region = 44 }
   0xb   : > { %p242_p3 = scmp.lt.s32.totalorder %s4746_s22, 1  ;;  %s5520_s27 = smov 4   ;;  %vm1692_vm0 = vsmask.f32 256  ;;  %vm1022_vm1 = vcmask 31744   ;;  %vm1103_vm2 = vcmask 64512  }
   0xc   : > { %s5521_s28 = smov 8   ;;  %s5522_s7 = smov 12   ;;  %vm1168_vm3 = vcmask 97280   ;;  %vm1233_vm4 = vsmask.f32 7424  ;;  %vm1402_vm5 = vcmask 130048  }
   0xd   : > { %s9766_s22 = smov (!%p242_p3, %s4746_s22), 1  ;;  %vm2141_vm6 = vcmask 1046528   ;;  %s5523_s14 = smov 16   ;;  %vm4586_vm7 = vcmask 195584   ;;  %vm4658_vm8 = vcmask 261120  }
   0xe   : > { %s5302_s23 = smul.u32 216, %s9766_s22  ;;  %s5524_s15 = smov 24  }
   0xf   : > { %s5097_s16 = sshll.u32 %s9766_s22, 8 }
  0x10   : > { %s5574_s26 = scalar_lea.vmem %s8998_s0, %s5302_s23  ;;  %s8713_s23 = scalar_lea.vmem %s9004_s6, %s5097_s16 }
  0x11   : > { %v4757_v0 = vld [vmem:[%s5574_s26 + $0x18] sm:$0xf]  ;;  %v4758_v1 = vld [vmem:[%s5574_s26 + $0x1c] sm:$0xf]  ;;  %v4754_v2 = vld [vmem:[%s5574_s26 + $0xc] sm:$0xf] }
  0x12   : > { %v5579_v3 = vcombine.low %v4757_v0, %v4758_v1  ;;  %v4755_v4 = vld [vmem:[%s5574_s26 + $0x10] sm:$0xf]  ;;  %v4760_v5 = vld [vmem:[%s5574_s26 + $0x24] sm:$0xf]  ;;  %v4761_v6 = vld [vmem:[%s5574_s26 + $0x28] sm:$0xf] }
  0x13   : > { %v5584_v7 = vcombine.low %v4754_v2, %v4755_v4  ;;  %v5586_v8 = vcombine.low %v4760_v5, %v4761_v6  ;;  %v4763_v9 = vld [vmem:[%s5574_s26 + $0x30] sm:$0xf]  ;;  %v4764_v10 = vld [vmem:[%s5574_s26 + $0x34] sm:$0xf]  ;;  %v4766_v13 = vld [vmem:[%s5574_s26 + $0x3c] sm:$0xf] }
  0x14   : > { %9205 = vst [vmem:[#allocation2_spill] sm:$0xff] %v5579_v3  ;;  %v486_v11 = vshrl.u32 %v5579_v3, 16  ;;  %v5591_v12 = vcombine.low %v4763_v9, %v4764_v10  ;;  %v4767_v17 = vld [vmem:[%s5574_s26 + $0x40] sm:$0xf]  ;;  %v4769_v25 = vld [vmem:[%s5574_s26 + $0x48] sm:$0xf] }
  0x15   : > { %9206 = vst [vmem:[#allocation3_spill] sm:$0xff] %v5584_v7  ;;  %9207 = vst [vmem:[#allocation4_spill] sm:$0xff] %v5586_v8  ;;  %v479_v14 = vshrl.u32 %v5584_v7, 16  ;;  %v493_v15 = vshrl.u32 %v5586_v8, 16  ;;  %v482_v16 = vshll.u32 %v5584_v7, 16  ;;  %v5607_v22 = vcombine.low %v4766_v13, %v4767_v17 }
  0x16   : > { %9208 = vst [vmem:[#allocation5_spill] sm:$0xff] %v5591_v12  ;;  %v5598_v18 = vrot.slane %v486_v11, 7  ;;  %v500_v21 = vshrl.u32 %v5591_v12, 16  ;;  %v496_v24 = vshll.u32 %v5586_v8, 16  ;;  %v4770_v26 = vld [vmem:[%s5574_s26 + $0x4c] sm:$0xf] }
  0x17   : > { %v5600_v19 = vrot.slane %v479_v14, 7  ;;  %v5604_v20 = vrot.slane %v493_v15, 7  ;;  %9212 = vst [vmem:[#allocation9_spill] sm:$0xff] %v5607_v22  ;;  %v507_v28 = vshrl.u32 %v5607_v22, 16  ;;  %v503_v30 = vshll.u32 %v5591_v12, 16 }
  0x18   : > { %9209 = vst [vmem:[#allocation6_spill] sm:$0xff] %v5598_v18  ;;  %596 = vrot.lane.b32.xlu1 %v5598_v18, %s5520_s27  ;;  %v5619_v27 = vrot.slane %v500_v21, 7  ;;  %v5628_v31 = vcombine.low %v4769_v25, %v4770_v26  ;;  %v4772_v32 = vld [vmem:[%s5574_s26 + $0x54] sm:$0xf]  ;;  %v4773_v33 = vld [vmem:[%s5574_s26 + $0x58] sm:$0xf] }
  0x19   : > { %9210 = vst [vmem:[#allocation7_spill] sm:$0xff] %v5600_v19  ;;  %9211 = vst [vmem:[#allocation8_spill] sm:$0xff] %v5604_v20  ;;  %592 = vrot.lane.b32.xlu0 %v5600_v19, %s5520_s27  ;;  %v5612_v23 = vor.u32 %v482_v16, %v5600_v19  ;;  %v5625_v29 = vor.u32 %v496_v24, %v5604_v20  ;;  %v5634_v34 = vrot.slane %v507_v28, 7  ;;  %v489_v35 = vshll.u32 %v5579_v3, 16  ;;  %v4775_v40 = vld [vmem:[%s5574_s26 + $0x60] sm:$0xf] }
  0x1a   : > { %9214 = vst [vmem:[#allocation11_spill] sm:$0xff] %v5619_v27  ;;  %9216 = vst [vmem:[#allocation13_spill] sm:$0xff] %v5628_v31  ;;  %v5640_v36 = vor.u32 %v503_v30, %v5619_v27  ;;  %v510_v37 = vshll.u32 %v5607_v22, 16  ;;  %v514_v38 = vshrl.u32 %v5628_v31, 16  ;;  %v5644_v39 = vcombine.low %v4772_v32, %v4773_v33  ;;  %v4776_v41 = vld [vmem:[%s5574_s26 + $0x64] sm:$0xf] }
  0x1b   : > { %9213 = vst [vmem:[#allocation10_spill] sm:$0xff] %v5612_v23  ;;  %9215 = vst [vmem:[#allocation12_spill] sm:$0xff] %v5625_v29  ;;  %v5651_v42 = vor.u32 %v489_v35, %v5598_v18  ;;  %v517_v43 = vshll.u32 %v5628_v31, 16  ;;  %v5662_v47 = vcombine.low %v4775_v40, %v4776_v41  ;;  %v4778_v48 = vld [vmem:[%s5574_s26 + $0x6c] sm:$0xf] }
  0x1c   : > { %600 = vrot.lane.b32.xlu1 %v5604_v20, %s5520_s27  ;;  %9217 = vst [vmem:[#allocation14_spill] sm:$0xff] %v5634_v34  ;;  %9218 = vst [vmem:[#allocation15_spill] sm:$0xff] %v5640_v36  ;;  %v5657_v44 = vor.u32 %v510_v37, %v5634_v34  ;;  %v5659_v45 = vrot.slane %v514_v38, 7  ;;  %v521_v46 = vshrl.u32 %v5644_v39, 16  ;;  %v4779_v49 = vld [vmem:[%s5574_s26 + $0x70] sm:$0xf] }
  0x1d   : > { %590 = vrot.lane.b32.xlu0 %v5612_v23, %s5520_s27  ;;  %9219 = vst [vmem:[#allocation16_spill] sm:$0xff] %v5644_v39  ;;  %9220 = vst [vmem:[#allocation17_spill] sm:$0xff] %v5651_v42  ;;  %v5668_v50 = vcombine.low %v4778_v48, %v4779_v49  ;;  %v4781_v51 = vld [vmem:[%s5574_s26 + $0x78] sm:$0xf]  ;;  %v4782_v52 = vld [vmem:[%s5574_s26 + $0x7c] sm:$0xf] }
  0x1e   : > { %9221 = vst [vmem:[#allocation18_spill] sm:$0xff] %v5657_v44  ;;  %9222 = vst [vmem:[#allocation19_spill] sm:$0xff] %v5659_v45  ;;  %v5675_v53 = vor.u32 %v517_v43, %v5659_v45  ;;  %v5677_v54 = vrot.slane %v521_v46, 7  ;;  %v524_v55 = vshll.u32 %v5644_v39, 16  ;;  %v528_v56 = vshrl.u32 %v5662_v47, 16 }
  0x1f   : > { %9223 = vst [vmem:[#allocation20_spill] sm:$0xff] %v5662_v47  ;;  %9224 = vst [vmem:[#allocation21_spill] sm:$0xff] %v5668_v50  ;;  %v5683_v57 = vcombine.low %v4781_v51, %v4782_v52  ;;  %v531_v60 = vshll.u32 %v5662_v47, 16  ;;  %v535_v61 = vshrl.u32 %v5668_v50, 16  ;;  %v4784_v62 = vld [vmem:[%s5574_s26 + $0x84] sm:$0xf] }
  0x20   : > { %604 = vrot.lane.b32.xlu1 %v5619_v27, %s5520_s27  ;;  %9225 = vst [vmem:[#allocation22_spill] sm:$0xff] %v5675_v53  ;;  %9226 = vst [vmem:[#allocation23_spill] sm:$0xff] %v5677_v54  ;;  %v5688_v58 = vor.u32 %v524_v55, %v5677_v54  ;;  %v5690_v59 = vrot.slane %v528_v56, 7  ;;  %v4785_v63 = vld [vmem:[%s5574_s26 + $0x88] sm:$0xf]  ;;  %v538_v0 = vshll.u32 %v5668_v50, 16 }
  0x21   : > { %598 = vrot.lane.b32.xlu0 %v5625_v29, %s5520_s27  ;;  %9227 = vst [vmem:[#allocation24_spill] sm:$0xff] %v5683_v57  ;;  %v5704_v2 = vrot.slane %v535_v61, 7  ;;  %v542_v4 = vshrl.u32 %v5683_v57, 16  ;;  %v5707_v5 = vcombine.low %v4784_v62, %v4785_v63  ;;  %v4787_v6 = vld [vmem:[%s5574_s26 + $0x90] sm:$0xf]  ;;  %v545_v10 = vshll.u32 %v5683_v57, 16 }
  0x22   : > { %9228 = vst [vmem:[#allocation25_spill] sm:$0xff] %v5688_v58  ;;  %9229 = vst [vmem:[#allocation26_spill] sm:$0xff] %v5690_v59  ;;  %v5702_v1 = vor.u32 %v531_v60, %v5690_v59  ;;  %v4788_v9 = vld [vmem:[%s5574_s26 + $0x94] sm:$0xf]  ;;  %v4790_v11 = vld [vmem:[%s5574_s26 + $0x9c] sm:$0xf] }
  0x23   : > { %9231 = vst [vmem:[#allocation28_spill] sm:$0xff] %v5704_v2  ;;  %9232 = vst [vmem:[#allocation29_spill] sm:$0xff] %v5707_v5  ;;  %v5718_v13 = vor.u32 %v538_v0, %v5704_v2  ;;  %v5720_v14 = vrot.slane %v542_v4, 7  ;;  %v549_v15 = vshrl.u32 %v5707_v5, 16  ;;  %v5723_v16 = vcombine.low %v4787_v6, %v4788_v9  ;;  %v4791_v17 = vld [vmem:[%s5574_s26 + $0xa0] sm:$0xf] }
  0x24   : > { %608 = vrot.lane.b32.xlu1 %v5634_v34, %s5520_s27  ;;  %9230 = vst [vmem:[#allocation27_spill] sm:$0xff] %v5702_v1  ;;  %v5728_v21 = vcombine.low %v4790_v11, %v4791_v17  ;;  %v552_v26 = vshll.u32 %v5707_v5, 16  ;;  %v4793_v30 = vld [vmem:[%s5574_s26 + $0xa8] sm:$0xf]  ;;  %v4794_v32 = vld [vmem:[%s5574_s26 + $0xac] sm:$0xf] }
  0x25   : > { %602 = vrot.lane.b32.xlu0 %v5640_v36, %s5520_s27  ;;  %9233 = vst [vmem:[#allocation30_spill] sm:$0xff] %v5718_v13  ;;  %9234 = vst [vmem:[#allocation31_spill] sm:$0xff] %v5720_v14  ;;  %v5733_v24 = vor.u32 %v545_v10, %v5720_v14  ;;  %v5735_v25 = vrot.slane %v549_v15, 7  ;;  %v556_v28 = vshrl.u32 %v5723_v16, 16  ;;  %v559_v33 = vshll.u32 %v5723_v16, 16 }
  0x26   : > { %9235 = vst [vmem:[#allocation32_spill] sm:$0xff] %v5723_v16  ;;  %9236 = vst [vmem:[#allocation33_spill] sm:$0xff] %v5728_v21  ;;  %v563_v38 = vshrl.u32 %v5728_v21, 16  ;;  %v5752_v40 = vcombine.low %v4793_v30, %v4794_v32  ;;  %v4796_v41 = vld [vmem:[%s5574_s26 + $0xb4] sm:$0xf]  ;;  %v566_v46 = vshll.u32 %v5728_v21, 16 }
  0x27   : > { %9237 = vst [vmem:[#allocation34_spill] sm:$0xff] %v5733_v24  ;;  %9238 = vst [vmem:[#allocation35_spill] sm:$0xff] %v5735_v25  ;;  %v5747_v35 = vor.u32 %v552_v26, %v5735_v25  ;;  %v5749_v37 = vrot.slane %v556_v28, 7  ;;  %v4797_v43 = vld [vmem:[%s5574_s26 + $0xb8] sm:$0xf] }
  0x28   : > { %594 = vrot.lane.b32.xlu1 %v5651_v42, %s5520_s27  ;;  %9241 = vst [vmem:[#allocation38_spill] sm:$0xff] %v5752_v40  ;;  %v4799_v48 = vld [vmem:[%s5574_s26 + $0xc0] sm:$0xf]  ;;  %v5765_v51 = vrot.slane %v563_v38, 7  ;;  %v570_v52 = vshrl.u32 %v5752_v40, 16  ;;  %v5768_v55 = vcombine.low %v4796_v41, %v4797_v43  ;;  %v573_v63 = vshll.u32 %v5752_v40, 16 }
  0x29   : > { %606 = vrot.lane.b32.xlu0 %v5657_v44, %s5520_s27  ;;  %9239 = vst [vmem:[#allocation36_spill] sm:$0xff] %v5747_v35  ;;  %9240 = vst [vmem:[#allocation37_spill] sm:$0xff] %v5749_v37  ;;  %v5763_v49 = vor.u32 %v559_v33, %v5749_v37  ;;  %v4800_v56 = vld [vmem:[%s5574_s26 + $0xc4] sm:$0xf]  ;;  %v302_v28 = vld [vmem:[%s5574_s26] sm:$0xf] }
  0x2a   : > { %9243 = vst [vmem:[#allocation40_spill] sm:$0xff] %v5765_v51  ;;  %9244 = vst [vmem:[#allocation41_spill] sm:$0xff] %v5768_v55  ;;  %v5773_v60 = vcombine.low %v4799_v48, %v4800_v56  ;;  %v5778_v61 = vor.u32 %v566_v46, %v5765_v51  ;;  %v5780_v62 = vrot.slane %v570_v52, 7  ;;  %v577_v0 = vshrl.u32 %v5768_v55, 16  ;;  %v5814_v30 = vld [vmem:[%s5574_s26 + $0x4] sm:$0xf] }
  0x2b   : > { %9242 = vst [vmem:[#allocation39_spill] sm:$0xff] %v5763_v49  ;;  %v580_v9 = vshll.u32 %v5768_v55, 16  ;;  %v5819_v32 = vld [vmem:[%s5574_s26 + $0x8] ss:$0 sps:$4 sm:$0x11]   ;;  %v5824_v33 = vcombine.low %v302_v28, %v5814_v30 }
  0x2c   : > { %612 = vrot.lane.b32.xlu1 %v5659_v45, %s5520_s27  ;;  %9245 = vst [vmem:[#allocation42_spill] sm:$0xff] %v5773_v60  ;;  %9246 = vst [vmem:[#allocation43_spill] sm:$0xff] %v5778_v61  ;;  %v5789_v4 = vor.u32 %v573_v63, %v5780_v62  ;;  %v5791_v6 = vrot.slane %v577_v0, 7  ;;  %v584_v10 = vshrl.u32 %v5773_v60, 16  ;;  %v587_v17 = vshll.u32 %v5773_v60, 16 }
  0x2d   : > { %610 = vrot.lane.b32.xlu0 %v5675_v53, %s5520_s27  ;;  %9247 = vst [vmem:[#allocation44_spill] sm:$0xff] %v5780_v62  ;;  %v305_v38 = vld [vmem:[%s5574_s26 + $0xc] sm:$0xf]  ;;  %v5828_v41 = vld [vmem:[%s5574_s26 + $0x10] sm:$0xf] }
  0x2e   : > { %9248 = vst [vmem:[#allocation45_spill] sm:$0xff] %v5789_v4  ;;  %9249 = vst [vmem:[#allocation46_spill] sm:$0xff] %v5791_v6  ;;  %v5800_v11 = vor.u32 %v580_v9, %v5791_v6  ;;  %v5802_v15 = vrot.slane %v584_v10, 7  ;;  %v5833_v43 = vld [vmem:[%s5574_s26 + $0x14] ss:$0 sps:$4 sm:$0x11]   ;;  %v5838_v46 = vcombine.low %v305_v38, %v5828_v41 }
  0x2f   : > { %v308_v48 = vld [vmem:[%s5574_s26 + $0x18] sm:$0xf]  ;;  %v5842_v52 = vld [vmem:[%s5574_s26 + $0x1c] sm:$0xf]  ;;  %v311_v0 = vld [vmem:[%s5574_s26 + $0x24] sm:$0xf] }
  0x30   : > { %616 = vrot.lane.b32.xlu1 %v5677_v54, %s5520_s27  ;;  %9250 = vst [vmem:[#allocation47_spill] sm:$0xff] %v5800_v11  ;;  %9251 = vst [vmem:[#allocation48_spill] sm:$0xff] %v5802_v15  ;;  %v5810_v26 = vor.u32 %v587_v17, %v5802_v15  ;;  %v5847_v56 = vld [vmem:[%s5574_s26 + $0x20] ss:$0 sps:$4 sm:$0x11]   ;;  %v5852_v63 = vcombine.low %v308_v48, %v5842_v52 }
  0x31   : > { %614 = vrot.lane.b32.xlu0 %v5688_v58, %s5520_s27  ;;  %v5856_v9 = vld [vmem:[%s5574_s26 + $0x28] sm:$0xf]  ;;  %v5861_v10 = vld [vmem:[%s5574_s26 + $0x2c] ss:$0 sps:$4 sm:$0x11]  }
  0x32   : > { %9252 = vst [vmem:[#allocation49_spill] sm:$0xff] %v5810_v26  ;;  %v5866_v17 = vcombine.low %v311_v0, %v5856_v9  ;;  %v5869_v28 = vld [vmem:[%s5574_s26 + $0x38] ss:$0 sps:$4 sm:$0x11]   ;;  %v314_v38 = vld [vmem:[%s5574_s26 + $0x30] sm:$0xf] }
  0x33   : > { %v5873_v48 = vld [vmem:[%s5574_s26 + $0x34] sm:$0xf]  ;;  %v5883_v0 = vld [vmem:[%s5574_s26 + $0x44] ss:$0 sps:$4 sm:$0x11]  }
  0x34   : > { %620 = vrot.lane.b32.xlu1 %v5690_v59, %s5520_s27  ;;  %v5917_v58 = vld [vmem:[%s5574_s26 + $0x5c] ss:$0 sps:$4 sm:$0x11]   ;;  %v5926_v44 = vld [vmem:[%s5574_s26 + $0x64] sm:$0xf] }
  0x35   : > { %618 = vrot.lane.b32.xlu0 %v5702_v1, %s5520_s27  ;;  %v5931_v53 = vld [vmem:[%s5574_s26 + $0x68] ss:$0 sps:$4 sm:$0x11]   ;;  %v5940_v36 = vld [vmem:[%s5574_s26 + $0x70] sm:$0xf] }
  0x36   : > { %v5945_v23 = vld [vmem:[%s5574_s26 + $0x74] ss:$0 sps:$4 sm:$0x11]   ;;  %v5954_v60 = vld [vmem:[%s5574_s26 + $0x7c] sm:$0xf] }
  0x37   : > { %9253 = vst [vmem:[#allocation50_spill] sm:$0xff] %v5954_v60  ;;  %v5959_v55 = vld [vmem:[%s5574_s26 + $0x80] ss:$0 sps:$4 sm:$0x11]   ;;  %v5968_v21 = vld [vmem:[%s5574_s26 + $0x88] sm:$0xf] }
  0x38   : > { %624 = vrot.lane.b32.xlu1 %v5704_v2, %s5520_s27  ;;  %9254 = vst [vmem:[#allocation51_spill] sm:$0xff] %v5968_v21  ;;  %v5973_v16 = vld [vmem:[%s5574_s26 + $0x8c] ss:$0 sps:$4 sm:$0x11]   ;;  %v338_v57 = vld [vmem:[%s5574_s26 + $0x90] sm:$0xf] }
  0x39   : > { %622 = vrot.lane.b32.xlu0 %v5718_v13, %s5520_s27  ;;  %v5912_v13 = vld [vmem:[%s5574_s26 + $0x58] sm:$0xf]  ;;  %9255 = vst [vmem:[#allocation52_spill] sm:$0xff] %v5973_v16  ;;  %v341_v39 = vld [vmem:[%s5574_s26 + $0x9c] sm:$0xf] }
  0x3a   : > { %v5987_v50 = vld [vmem:[%s5574_s26 + $0x98] ss:$0 sps:$4 sm:$0x11]   ;;  %v5996_v31 = vld [vmem:[%s5574_s26 + $0xa0] sm:$0xf] }
  0x3b   : > { %9257 = vst [vmem:[#allocation54_spill] sm:$0xff] %v5987_v50  ;;  %9258 = vst [vmem:[#allocation55_spill] sm:$0xff] %v5996_v31  ;;  %v6006_v22 = vcombine.low %v341_v39, %v5996_v31  ;;  %v6012_v12 = vld [vmem:[%s5574_s26 + $0xac] sm:$0xf]  ;;  %v847_v39 = vshrl.u32 %v5824_v33, 16 }
  0x3c   : > { %628 = vrot.lane.b32.xlu1 %v5720_v14, %s5520_s27  ;;  %9261 = vst [vmem:[#allocation58_spill] sm:$0xff] %v6012_v12  ;;  %v6019_v7 = vld [vmem:[%s5574_s26 + $0xb0] ss:$0 sps:$4 sm:$0x11]  }
  0x3d   : > { %626 = vrot.lane.b32.xlu0 %v5733_v24, %s5520_s27  ;;  %9263 = vst [vmem:[#allocation60_spill] sm:$0xff] %v6019_v7 }
  0x40   : > { %632 = vrot.lane.b32.xlu1 %v5735_v25, %s5520_s27 }
  0x41   : > { %630 = vrot.lane.b32.xlu0 %v5747_v35, %s5520_s27  ;;  %v5903_v35 = vld [vmem:[%s5574_s26 + $0x50] ss:$0 sps:$4 sm:$0x11]  }
  0x44   : > { %636 = vrot.lane.b32.xlu1 %v5749_v37, %s5520_s27 }
  0x45   : > { %634 = vrot.lane.b32.xlu0 %v5763_v49, %s5520_s27  ;;  %v5898_v49 = vld [vmem:[%s5574_s26 + $0x4c] sm:$0xf] }
  0x48   : > { %640 = vrot.lane.b32.xlu1 %v5765_v51, %s5520_s27 }
  0x49   : > { %638 = vrot.lane.b32.xlu0 %v5778_v61, %s5520_s27 }
  0x4c   : > { %644 = vrot.lane.b32.xlu1 %v5780_v62, %s5520_s27 }
  0x4d   : > { %642 = vrot.lane.b32.xlu0 %v5789_v4, %s5520_s27  ;;  %v5887_v4 = vld [vmem:[%s5574_s26 + $0x40] sm:$0xf] }
  0x50   : > { %648 = vrot.lane.b32.xlu1 %v5791_v6, %s5520_s27 }
  0x51   : > { %646 = vrot.lane.b32.xlu0 %v5800_v11, %s5520_s27  ;;  %v317_v11 = vld [vmem:[%s5574_s26 + $0x3c] sm:$0xf] }
  0x52   : > { %v5894_v61 = vcombine.low %v317_v11, %v5887_v4  ;;  %v323_v11 = vld [vmem:[%s5574_s26 + $0x54] sm:$0xf] }
  0x53   : > { %v5922_v1 = vcombine.low %v323_v11, %v5912_v13  ;;  %v329_v11 = vld [vmem:[%s5574_s26 + $0x6c] sm:$0xf] }
  0x54   : > { %652 = vrot.lane.b32.xlu1 %v5802_v15, %s5520_s27  ;;  %v5950_v42 = vcombine.low %v329_v11, %v5940_v36  ;;  %v335_v11 = vld [vmem:[%s5574_s26 + $0x84] sm:$0xf] }
  0x55   : > { %650 = vrot.lane.b32.xlu0 %v5810_v26, %s5520_s27  ;;  %v5880_v26 = vcombine.low %v314_v38, %v5873_v48  ;;  %v320_v38 = vld [vmem:[%s5574_s26 + $0x48] sm:$0xf]  ;;  %v5978_v5 = vcombine.low %v335_v11, %v5968_v21  ;;  %v6001_v11 = vld [vmem:[%s5574_s26 + $0xa4] ss:$0 sps:$4 sm:$0x11]  }
  0x56   : > { %v5908_v24 = vcombine.low %v320_v38, %v5898_v49  ;;  %v326_v38 = vld [vmem:[%s5574_s26 + $0x60] sm:$0xf]  ;;  %9259 = vst [vmem:[#allocation56_spill] sm:$0xff] %v6001_v11 }
  0x57   : > { %v5936_v29 = vcombine.low %v326_v38, %v5926_v44  ;;  %v332_v38 = vld [vmem:[%s5574_s26 + $0x78] sm:$0xf] }
  0x58   : > { %784 = vrot.lane.b32.xlu1 %v5819_v32, %s5521_s28  ;;  %v5964_v40 = vcombine.low %v332_v38, %v5954_v60  ;;  %v5982_v38 = vld [vmem:[%s5574_s26 + $0x94] sm:$0xf] }
  0x59   : > { %782 = vrot.lane.b32.xlu0 %v5824_v33, %s5521_s28  ;;  %9256 = vst [vmem:[#allocation53_spill] sm:$0xff] %v5982_v38  ;;  %v5992_v47 = vcombine.low %v338_v57, %v5982_v38  ;;  %v344_v57 = vld [vmem:[%s5574_s26 + $0xa8] sm:$0xf] }
  0x5a   : > { %v6024_v38 = vcombine.low %v344_v57, %v6012_v12  ;;  %v854_v12 = vshrl.u32 %v5838_v46, 16 }
  0x5c   : > { %788 = vrot.lane.b32.xlu1 %v5833_v43, %s5521_s28 }
  0x5d   : > { %786 = vrot.lane.b32.xlu0 %v5838_v46, %s5521_s28 }
  0x60   : > { %792 = vrot.lane.b32.xlu1 %v5847_v56, %s5521_s28 }
  0x61   : > { %790 = vrot.lane.b32.xlu0 %v5852_v63, %s5521_s28 }
  0x64   : > { %796 = vrot.lane.b32.xlu1 %v5861_v10, %s5521_s28 }
  0x65   : > { %794 = vrot.lane.b32.xlu0 %v5866_v17, %s5521_s28 }
  0x68   : > { %800 = vrot.lane.b32.xlu1 %v5869_v28, %s5521_s28 }
  0x69   : > { %798 = vrot.lane.b32.xlu0 %v5880_v26, %s5521_s28 }
  0x6c   : > { %804 = vrot.lane.b32.xlu1 %v5883_v0, %s5521_s28 }
  0x6d   : > { %802 = vrot.lane.b32.xlu0 %v5894_v61, %s5521_s28 }
  0x70   : > { %808 = vrot.lane.b32.xlu1 %v5903_v35, %s5521_s28 }
  0x71   : > { %806 = vrot.lane.b32.xlu0 %v5908_v24, %s5521_s28 }
  0x74   : > { %812 = vrot.lane.b32.xlu1 %v5917_v58, %s5521_s28 }
  0x75   : > { %810 = vrot.lane.b32.xlu0 %v5922_v1, %s5521_s28 }
  0x78   : > { %816 = vrot.lane.b32.xlu1 %v5931_v53, %s5521_s28 }
  0x79   : > { %814 = vrot.lane.b32.xlu0 %v5936_v29, %s5521_s28 }
  0x7c   : > { %820 = vrot.lane.b32.xlu1 %v5945_v23, %s5521_s28 }
  0x7d   : > { %818 = vrot.lane.b32.xlu0 %v5950_v42, %s5521_s28 }
  0x80   : > { %824 = vrot.lane.b32.xlu1 %v5959_v55, %s5521_s28 }
  0x81   : > { %822 = vrot.lane.b32.xlu0 %v5964_v40, %s5521_s28 }
  0x84   : > { %828 = vrot.lane.b32.xlu1 %v5973_v16, %s5521_s28 }
  0x85   : > { %826 = vrot.lane.b32.xlu0 %v5978_v5, %s5521_s28 }
  0x88   : > { %832 = vrot.lane.b32.xlu1 %v5987_v50, %s5521_s28  ;;  %v6031_v50 = vld [vmem:[%s5574_s26 + $0xb8] sm:$0xf] }
  0x89   : > { %830 = vrot.lane.b32.xlu0 %v5992_v47, %s5521_s28  ;;  %9265 = vst [vmem:[#allocation62_spill] sm:$0xff] %v6031_v50 }
  0x8a   : > { %v6008_v3 = vpop.permute.xlu1 %596 }
  0x8b   : > { %9260 = vst [vmem:[#allocation57_spill] sm:$0xff] %v6008_v3  ;;  %v6014_v8 = vpop.permute.xlu0 %592  ;;  %v347_v3 = vld [vmem:[%s5574_s26 + $0xb4] sm:$0xf] }
  0x8c   : > { %9262 = vst [vmem:[#allocation59_spill] sm:$0xff] %v6014_v8  ;;  %836 = vrot.lane.b32.xlu1 %v6001_v11, %s5521_s28  ;;  %v6038_v11 = vld [vmem:[%s5574_s26 + $0xbc] ss:$0 sps:$4 sm:$0x11]   ;;  %v6043_v57 = vcombine.low %v347_v3, %v6031_v50  ;;  %v6045_v8 = vrot.slane %v847_v39, 7  ;;  %v857_v39 = vshll.u32 %v5838_v46, 16 }
  0x8d   : > { %834 = vrot.lane.b32.xlu0 %v6006_v22, %s5521_s28  ;;  %9267 = vst [vmem:[#allocation64_spill] sm:$0xff] %v6038_v11  ;;  %v868_v46 = vshrl.u32 %v5866_v17, 16 }
  0x8e   : > { %v6027_v31 = vpop.permute.xlu1 %600  ;;  %9268 = vst [vmem:[#allocation65_spill] sm:$0xff] %v6045_v8 }
  0x8f   : > { %9264 = vst [vmem:[#allocation61_spill] sm:$0xff] %v6027_v31  ;;  %v6033_v21 = vpop.permute.xlu0 %590  ;;  %v850_v31 = vshll.u32 %v5824_v33, 16  ;;  %v6061_v33 = vrot.slane %v854_v12, 7  ;;  %v864_v12 = vshll.u32 %v5852_v63, 16 }
  0x90   : > { %9266 = vst [vmem:[#allocation63_spill] sm:$0xff] %v6033_v21  ;;  %840 = vrot.lane.b32.xlu1 %v6019_v7, %s5521_s28  ;;  %v5412_v7 = vld [vmem:[%s8999_s1] sm:$0xff]  }
  0x91   : > { %838 = vrot.lane.b32.xlu0 %v6024_v38, %s5521_s28  ;;  %5166 = vmatprep.subr.bf16.mxu0 %v5412_v7  ;;  %v852_v3 = vor.u32 %v850_v31, %v6045_v8 }
  0x92   : > { %v6049_v16 = vpop.permute.xlu1 %604  ;;  %5167 = vmatpush3.bf16.msra.mxu0 %v5412_v7 }
  0x93   : > { %9269 = vst [vmem:[#allocation66_spill] sm:$0xff] %v6049_v16  ;;  %v6054_v21 = vpop.permute.xlu0 %598  ;;  %v861_v16 = vshrl.u32 %v5852_v63, 16 }
  0x94   : > { %9270 = vst [vmem:[#allocation67_spill] sm:$0xff] %v6054_v21  ;;  %844 = vrot.lane.b32.xlu1 %v6038_v11, %s5521_s28  ;;  %v859_v11 = vor.u32 %v857_v39, %v6061_v33  ;;  %v875_v39 = vshrl.u32 %v5880_v26, 16 }
  0x95   : > { %842 = vrot.lane.b32.xlu0 %v6043_v57, %s5521_s28  ;;  %v6073_v31 = vrot.slane %v861_v16, 7  ;;  %v871_v16 = vshll.u32 %v5866_v17, 16 }
  0x96   : > { %v6065_v50 = vpop.permute.xlu1 %608 }
  0x97   : > { %v6067_v60 = vpop.permute.xlu0 %602  ;;  %9272 = vst [vmem:[#allocation69_spill] sm:$0xff] %v6073_v31 }
  0x98   : > { %9271 = vst [vmem:[#allocation68_spill] sm:$0xff] %v6067_v60  ;;  %960 = vrot.lane.b32.xlu1 %v6045_v8, %s5522_s7  ;;  %v866_v8 = vor.u32 %v864_v12, %v6073_v31  ;;  %v878_v12 = vshll.u32 %v5880_v26, 16 }
  0x99   : > { %958 = vrot.lane.b32.xlu0 %v852_v3, %s5522_s7  ;;  %v6085_v3 = vrot.slane %v868_v46, 7  ;;  %v882_v46 = vshrl.u32 %v5894_v61, 16 }
  0x9a   : > { %v6077_v21 = vpop.permute.xlu1 %594 }
  0x9b   : > { %9273 = vst [vmem:[#allocation70_spill] sm:$0xff] %v6077_v21  ;;  %v6079_v7 = vpop.permute.xlu0 %606 }
  0x9c   : > { %9274 = vst [vmem:[#allocation71_spill] sm:$0xff] %v6079_v7  ;;  %964 = vrot.lane.b32.xlu1 %v6061_v33, %s5522_s7  ;;  %v873_v7 = vor.u32 %v871_v16, %v6085_v3  ;;  %v885_v16 = vshll.u32 %v5894_v61, 16 }
  0x9d   : > { %962 = vrot.lane.b32.xlu0 %v859_v11, %s5522_s7  ;;  %v6097_v11 = vrot.slane %v875_v39, 7  ;;  %v889_v39 = vshrl.u32 %v5908_v24, 16 }
  0x9e   : > { %v6089_v63 = vpop.permute.xlu1 %612 }
  0x9f   : > { %v6091_v60 = vpop.permute.xlu0 %610 }
  0xa0   : > { %9275 = vst [vmem:[#allocation72_spill] sm:$0xff] %v6091_v60  ;;  %968 = vrot.lane.b32.xlu1 %v6073_v31, %s5522_s7  ;;  %v880_v60 = vor.u32 %v878_v12, %v6097_v11  ;;  %v892_v12 = vshll.u32 %v5908_v24, 16 }
  0xa1   : > { %966 = vrot.lane.b32.xlu0 %v866_v8, %s5522_s7  ;;  %v6109_v8 = vrot.slane %v882_v46, 7  ;;  %v896_v46 = vshrl.u32 %v5922_v1, 16 }
  0xa2   : > { %v6101_v17 = vpop.permute.xlu1 %616 }
  0xa3   : > { %9276 = vst [vmem:[#allocation73_spill] sm:$0xff] %v6101_v17  ;;  %v6103_v21 = vpop.permute.xlu0 %614 }
  0xa4   : > { %9277 = vst [vmem:[#allocation74_spill] sm:$0xff] %v6103_v21  ;;  %972 = vrot.lane.b32.xlu1 %v6085_v3, %s5522_s7  ;;  %v887_v21 = vor.u32 %v885_v16, %v6109_v8  ;;  %v899_v16 = vshll.u32 %v5922_v1, 16 }
  0xa5   : > { %970 = vrot.lane.b32.xlu0 %v873_v7, %s5522_s7  ;;  %v6121_v7 = vrot.slane %v889_v39, 7  ;;  %v903_v39 = vshrl.u32 %v5936_v29, 16 }
  0xa6   : > { %v6113_v26 = vpop.permute.xlu1 %620 }
  0xa7   : > { %9278 = vst [vmem:[#allocation75_spill] sm:$0xff] %v6113_v26  ;;  %v6115_v31 = vpop.permute.xlu0 %618  ;;  %9280 = vst [vmem:[#allocation77_spill] sm:$0xff] %v6121_v7 }
  0xa8   : > { %9279 = vst [vmem:[#allocation76_spill] sm:$0xff] %v6115_v31  ;;  %976 = vrot.lane.b32.xlu1 %v6097_v11, %s5522_s7  ;;  %v894_v31 = vor.u32 %v892_v12, %v6121_v7  ;;  %v906_v12 = vshll.u32 %v5936_v29, 16 }
  0xa9   : > { %974 = vrot.lane.b32.xlu0 %v880_v60, %s5522_s7  ;;  %v6133_v60 = vrot.slane %v896_v46, 7  ;;  %v910_v46 = vshrl.u32 %v5950_v42, 16 }
  0xaa   : > { %v6125_v61 = vpop.permute.xlu1 %624 }
  0xab   : > { %9281 = vst [vmem:[#allocation78_spill] sm:$0xff] %v6125_v61  ;;  %v6127_v17 = vpop.permute.xlu0 %622 }
  0xac   : > { %9282 = vst [vmem:[#allocation79_spill] sm:$0xff] %v6127_v17  ;;  %980 = vrot.lane.b32.xlu1 %v6109_v8, %s5522_s7  ;;  %v901_v17 = vor.u32 %v899_v16, %v6133_v60  ;;  %v913_v16 = vshll.u32 %v5950_v42, 16 }
  0xad   : > { %978 = vrot.lane.b32.xlu0 %v887_v21, %s5522_s7  ;;  %v6145_v21 = vrot.slane %v903_v39, 7  ;;  %v917_v39 = vshrl.u32 %v5964_v40, 16 }
  0xae   : > { %v6137_v24 = vpop.permute.xlu1 %628 }
  0xaf   : > { %9283 = vst [vmem:[#allocation80_spill] sm:$0xff] %v6137_v24  ;;  %v6139_v26 = vpop.permute.xlu0 %626  ;;  %9285 = vst [vmem:[#allocation82_spill] sm:$0xff] %v6145_v21 }
  0xb0   : > { %9284 = vst [vmem:[#allocation81_spill] sm:$0xff] %v6139_v26  ;;  %984 = vrot.lane.b32.xlu1 %v6121_v7, %s5522_s7  ;;  %v908_v26 = vor.u32 %v906_v12, %v6145_v21  ;;  %v920_v12 = vshll.u32 %v5964_v40, 16  ;;  %v6274_v7 = vld [vmem:[%s5574_s26 + $0x50] ss:$0 sps:$4 sm:$0x11]  }
  0xb1   : > { %982 = vrot.lane.b32.xlu0 %v894_v31, %s5522_s7  ;;  %v6157_v31 = vrot.slane %v910_v46, 7  ;;  %v924_v46 = vshrl.u32 %v5978_v5, 16 }
  0xb2   : > { %v6149_v1 = vpop.permute.xlu1 %632 }
  0xb3   : > { %9286 = vst [vmem:[#allocation83_spill] sm:$0xff] %v6149_v1  ;;  %v6151_v61 = vpop.permute.xlu0 %630  ;;  %9288 = vst [vmem:[#allocation85_spill] sm:$0xff] %v6157_v31 }
  0xb4   : > { %9287 = vst [vmem:[#allocation84_spill] sm:$0xff] %v6151_v61  ;;  %988 = vrot.lane.b32.xlu1 %v6133_v60, %s5522_s7  ;;  %v915_v61 = vor.u32 %v913_v16, %v6157_v31  ;;  %v927_v16 = vshll.u32 %v5978_v5, 16 }
  0xb5   : > { %986 = vrot.lane.b32.xlu0 %v901_v17, %s5522_s7  ;;  %v6169_v17 = vrot.slane %v917_v39, 7  ;;  %v931_v39 = vshrl.u32 %v5992_v47, 16 }
  0xb6   : > { %v6161_v29 = vpop.permute.xlu1 %636 }
  0xb7   : > { %9289 = vst [vmem:[#allocation86_spill] sm:$0xff] %v6161_v29  ;;  %v6163_v24 = vpop.permute.xlu0 %634  ;;  %9291 = vst [vmem:[#allocation88_spill] sm:$0xff] %v6169_v17 }
  0xb8   : > { %9290 = vst [vmem:[#allocation87_spill] sm:$0xff] %v6163_v24  ;;  %992 = vrot.lane.b32.xlu1 %v6145_v21, %s5522_s7  ;;  %v922_v24 = vor.u32 %v920_v12, %v6169_v17  ;;  %v934_v12 = vshll.u32 %v5992_v47, 16 }
  0xb9   : > { %990 = vrot.lane.b32.xlu0 %v908_v26, %s5522_s7  ;;  %v6181_v26 = vrot.slane %v924_v46, 7  ;;  %v938_v46 = vshrl.u32 %v6006_v22, 16 }
  0xba   : > { %v6173_v42 = vpop.permute.xlu1 %640 }
  0xbb   : > { %9292 = vst [vmem:[#allocation89_spill] sm:$0xff] %v6173_v42  ;;  %v6175_v1 = vpop.permute.xlu0 %638  ;;  %9294 = vst [vmem:[#allocation91_spill] sm:$0xff] %v6181_v26 }
  0xbc   : > { %9293 = vst [vmem:[#allocation90_spill] sm:$0xff] %v6175_v1  ;;  %996 = vrot.lane.b32.xlu1 %v6157_v31, %s5522_s7  ;;  %v929_v1 = vor.u32 %v927_v16, %v6181_v26  ;;  %v941_v16 = vshll.u32 %v6006_v22, 16  ;;  %v952_v22 = vshrl.u32 %v6043_v57, 16 }
  0xbd   : > { %994 = vrot.lane.b32.xlu0 %v915_v61, %s5522_s7  ;;  %v6193_v61 = vrot.slane %v931_v39, 7  ;;  %v945_v39 = vshrl.u32 %v6024_v38, 16 }
  0xbe   : > { %v6185_v40 = vpop.permute.xlu1 %644 }
  0xbf   : > { %9295 = vst [vmem:[#allocation92_spill] sm:$0xff] %v6185_v40  ;;  %v6187_v29 = vpop.permute.xlu0 %642  ;;  %9297 = vst [vmem:[#allocation94_spill] sm:$0xff] %v6193_v61 }
  0xc0   : > { %9296 = vst [vmem:[#allocation93_spill] sm:$0xff] %v6187_v29  ;;  %1000 = vrot.lane.b32.xlu1 %v6169_v17, %s5522_s7  ;;  %v936_v29 = vor.u32 %v934_v12, %v6193_v61  ;;  %v6217_v12 = vrot.slane %v945_v39, 7  ;;  %v955_v39 = vshll.u32 %v6043_v57, 16 }
  0xc1   : > { %998 = vrot.lane.b32.xlu0 %v922_v24, %s5522_s7  ;;  %v6205_v24 = vrot.slane %v938_v46, 7  ;;  %v948_v46 = vshll.u32 %v6024_v38, 16 }
  0xc2   : > { %v6197_v5 = vpop.permute.xlu1 %648  ;;  %9303 = vst [vmem:[#allocation100_spill] sm:$0xff] %v6217_v12 }
  0xc3   : > { %9298 = vst [vmem:[#allocation95_spill] sm:$0xff] %v6197_v5  ;;  %v6199_v42 = vpop.permute.xlu0 %646  ;;  %9300 = vst [vmem:[#allocation97_spill] sm:$0xff] %v6205_v24 }
  0xc4   : > { %9299 = vst [vmem:[#allocation96_spill] sm:$0xff] %v6199_v42  ;;  %1004 = vrot.lane.b32.xlu1 %v6181_v26, %s5522_s7  ;;  %v6256_v26 = vld [vmem:[%s5574_s26 + $0x2c] ss:$0 sps:$4 sm:$0x11]  }
  0xc5   : > { %1002 = vrot.lane.b32.xlu0 %v929_v1, %s5522_s7  ;;  %v943_v1 = vor.u32 %v941_v16, %v6205_v24  ;;  %v6229_v16 = vrot.slane %v952_v22, 7  ;;  %v1699_v31 = vshll.u32 %v6256_v26, 16 }
  0xc6   : > { %v6209_v47 = vpop.permute.xlu1 %652 }
  0xc7   : > { %9301 = vst [vmem:[#allocation98_spill] sm:$0xff] %v6209_v47  ;;  %v6211_v40 = vpop.permute.xlu0 %650  ;;  %9305 = vst [vmem:[#allocation102_spill] sm:$0xff] %v6229_v16 }
  0xc8   : > { %9302 = vst [vmem:[#allocation99_spill] sm:$0xff] %v6211_v40  ;;  %1008 = vrot.lane.b32.xlu1 %v6193_v61, %s5522_s7  ;;  %v6235_v40 = vld [vmem:[%s5574_s26 + $0x20] ss:$0 sps:$4 sm:$0x11]  }
  0xc9   : > { %1006 = vrot.lane.b32.xlu0 %v936_v29, %s5522_s7  ;;  %v950_v29 = vor.u32 %v948_v46, %v6217_v12  ;;  %v6240_v61 = vld [vmem:[%s5574_s26 + $0x14] ss:$0 sps:$4 sm:$0x11]   ;;  %v1696_v46 = vshll.u32 %v6235_v40, 16 }
  0xca   : > { %v6221_v42 = vpop.permute.xlu1 %784  ;;  %v1693_v22 = vshll.u32 %v6240_v61, 16 }
  0xcb   : > { %9304 = vst [vmem:[#allocation101_spill] sm:$0xff] %v6221_v42  ;;  %v6223_v47 = vpop.permute.xlu0 %782 }
  0xcc   : > { %1012 = vrot.lane.b32.xlu1 %v6205_v24, %s5522_s7  ;;  %v6251_v24 = vld [vmem:[%s5574_s26 + $0x38] ss:$0 sps:$4 sm:$0x11]   ;;  %v6270_v21 = vsel %vm1692_vm0, %v5600_v19, %v1693_v22  ;;  %v1708_v22 = vshll.u32 %v6274_v7, 16 }
  0xcd   : > { %1010 = vrot.lane.b32.xlu0 %v943_v1, %s5522_s7  ;;  %v957_v1 = vor.u32 %v955_v39, %v6229_v16  ;;  %v1702_v39 = vshll.u32 %v6251_v24, 16  ;;  %9308 = vst [vmem:[#allocation105_spill] sm:$0xff] %v6270_v21 }
  0xce   : > { %v6232_v38 = vpop.permute.xlu1 %788 }
  0xcf   : > { %v6237_v5 = vpop.permute.xlu0 %786 }
  0xd0   : > { %1016 = vrot.lane.b32.xlu1 %v6217_v12, %s5522_s7 }
  0xd1   : > { %1014 = vrot.lane.b32.xlu0 %v950_v29, %s5522_s7  ;;  %v6263_v29 = vsel %vm1692_vm0, %v5598_v18, %v1696_v46  ;;  %v6287_v46 = vsel %vm1692_vm0, %v5619_v27, %v1702_v39  ;;  %v6294_v18 = vsel %vm1692_vm0, %v5604_v20, %v1699_v31  ;;  %v6311_v39 = vsel %vm1692_vm0, %v5659_v45, %v1708_v22 }
  0xd2   : > { %v6247_v57 = vpop.permute.xlu1 %792  ;;  %9306 = vst [vmem:[#allocation103_spill] sm:$0xff] %v6263_v29  ;;  %9310 = vst [vmem:[#allocation107_spill] sm:$0xff] %v6287_v46 }
  0xd3   : > { %v6253_v17 = vpop.permute.xlu0 %790  ;;  %9312 = vst [vmem:[#allocation109_spill] sm:$0xff] %v6294_v18  ;;  %9314 = vst [vmem:[#allocation111_spill] sm:$0xff] %v6311_v39 }
  0xd4   : > { %1020 = vrot.lane.b32.xlu1 %v6229_v16, %s5522_s7 }
  0xd5   : > { %1018 = vrot.lane.b32.xlu0 %v957_v1, %s5522_s7  ;;  %v6279_v1 = vld [vmem:[%s5574_s26 + $0x44] ss:$0 sps:$4 sm:$0x11]  }
  0xd6   : > { %v6266_v12 = vpop.permute.xlu1 %796 }
  0xd7   : > { %9307 = vst [vmem:[#allocation104_spill] sm:$0xff] %v6266_v12  ;;  %v6276_v16 = vpop.permute.xlu0 %794 }
  0xd8   : > { %9309 = vst [vmem:[#allocation106_spill] sm:$0xff] %v6276_v16  ;;  %1743 = vrot.lane.b32.xlu1 %v6263_v29, %s5520_s27  ;;  %v1705_v16 = vshll.u32 %v6279_v1, 16  ;;  %v6298_v29 = vld [vmem:[%s5574_s26 + $0x68] ss:$0 sps:$4 sm:$0x11]  }
  0xd9   : > { %1741 = vrot.lane.b32.xlu0 %v6270_v21, %s5520_s27  ;;  %v6303_v21 = vld [vmem:[%s5574_s26 + $0x5c] ss:$0 sps:$4 sm:$0x11]   ;;  %v1714_v31 = vshll.u32 %v6298_v29, 16 }
  0xda   : > { %v6290_v19 = vpop.permute.xlu1 %800  ;;  %v6318_v27 = vsel %vm1692_vm0, %v5634_v34, %v1705_v16 }
  0xdb   : > { %9311 = vst [vmem:[#allocation108_spill] sm:$0xff] %v6290_v19  ;;  %v6300_v12 = vpop.permute.xlu0 %798  ;;  %9316 = vst [vmem:[#allocation113_spill] sm:$0xff] %v6318_v27  ;;  %v6335_v22 = vsel %vm1692_vm0, %v5690_v59, %v1714_v31 }
  0xdc   : > { %9313 = vst [vmem:[#allocation110_spill] sm:$0xff] %v6300_v12  ;;  %1747 = vrot.lane.b32.xlu1 %v6287_v46, %s5520_s27  ;;  %v1711_v12 = vshll.u32 %v6303_v21, 16  ;;  %v6322_v46 = vld [vmem:[%s5574_s26 + $0x80] ss:$0 sps:$4 sm:$0x11]   ;;  %9318 = vst [vmem:[#allocation115_spill] sm:$0xff] %v6335_v22 }
  0xdd   : > { %1745 = vrot.lane.b32.xlu0 %v6294_v18, %s5520_s27  ;;  %v6327_v18 = vld [vmem:[%s5574_s26 + $0x74] ss:$0 sps:$4 sm:$0x11]   ;;  %v1720_v16 = vshll.u32 %v6322_v46, 16 }
  0xde   : > { %v6314_v20 = vpop.permute.xlu1 %804  ;;  %v6342_v45 = vsel %vm1692_vm0, %v5677_v54, %v1711_v12 }
  0xdf   : > { %9315 = vst [vmem:[#allocation112_spill] sm:$0xff] %v6314_v20  ;;  %v6324_v19 = vpop.permute.xlu0 %802  ;;  %9320 = vst [vmem:[#allocation117_spill] sm:$0xff] %v6342_v45  ;;  %v6359_v31 = vsel %vm1692_vm0, %v5720_v14, %v1720_v16 }
  0xe0   : > { %9317 = vst [vmem:[#allocation114_spill] sm:$0xff] %v6324_v19  ;;  %1751 = vrot.lane.b32.xlu1 %v6311_v39, %s5520_s27  ;;  %v1717_v19 = vshll.u32 %v6327_v18, 16  ;;  %v6346_v39 = vld [vmem:[%s5574_s26 + $0x98] ss:$0 sps:$4 sm:$0x11]   ;;  %9322 = vst [vmem:[#allocation119_spill] sm:$0xff] %v6359_v31 }
  0xe1   : > { %1749 = vrot.lane.b32.xlu0 %v6318_v27, %s5520_s27  ;;  %v6351_v27 = vld [vmem:[%s5574_s26 + $0x8c] ss:$0 sps:$4 sm:$0x11]   ;;  %v1726_v12 = vshll.u32 %v6346_v39, 16 }
  0xe2   : > { %v6338_v34 = vpop.permute.xlu1 %808  ;;  %v6366_v59 = vsel %vm1692_vm0, %v5704_v2, %v1717_v19 }
  0xe3   : > { %9319 = vst [vmem:[#allocation116_spill] sm:$0xff] %v6338_v34  ;;  %v6348_v20 = vpop.permute.xlu0 %806  ;;  %9324 = vst [vmem:[#allocation121_spill] sm:$0xff] %v6366_v59  ;;  %v6383_v16 = vsel %vm1692_vm0, %v5749_v37, %v1726_v12 }
  0xe4   : > { %9321 = vst [vmem:[#allocation118_spill] sm:$0xff] %v6348_v20  ;;  %1755 = vrot.lane.b32.xlu1 %v6335_v22, %s5520_s27  ;;  %v1723_v20 = vshll.u32 %v6351_v27, 16  ;;  %v6370_v22 = vld [vmem:[%s5574_s26 + $0xb0] ss:$0 sps:$4 sm:$0x11]   ;;  %9327 = vst [vmem:[#allocation124_spill] sm:$0xff] %v6383_v16 }
  0xe5   : > { %1753 = vrot.lane.b32.xlu0 %v6342_v45, %s5520_s27  ;;  %9325 = vst [vmem:[#allocation122_spill] sm:$0xff] %v6370_v22  ;;  %v6375_v45 = vld [vmem:[%s5574_s26 + $0xa4] ss:$0 sps:$4 sm:$0x11]   ;;  %v1732_v19 = vshll.u32 %v6370_v22, 16 }
  0xe6   : > { %v6362_v54 = vpop.permute.xlu1 %812  ;;  %v6390_v14 = vsel %vm1692_vm0, %v5735_v25, %v1723_v20 }
  0xe7   : > { %9323 = vst [vmem:[#allocation120_spill] sm:$0xff] %v6362_v54  ;;  %v6372_v34 = vpop.permute.xlu0 %810  ;;  %9328 = vst [vmem:[#allocation125_spill] sm:$0xff] %v6390_v14  ;;  %v6407_v12 = vsel %vm1692_vm0, %v5780_v62, %v1732_v19  ;;  %v1628_v62 = vld [vmem:[%s5574_s26] sm:$0xe] }
  0xe8   : > { %9326 = vst [vmem:[#allocation123_spill] sm:$0xff] %v6372_v34  ;;  %1759 = vrot.lane.b32.xlu1 %v6359_v31, %s5520_s27  ;;  %v1729_v34 = vshll.u32 %v6375_v45, 16  ;;  %v6394_v31 = vld [vmem:[%s5574_s26 + $0xc8] ss:$0 sps:$4 sm:$0x11]   ;;  %9331 = vst [vmem:[#allocation128_spill] sm:$0xff] %v6407_v12 }
  0xe9   : > { %1757 = vrot.lane.b32.xlu0 %v6366_v59, %s5520_s27  ;;  %9329 = vst [vmem:[#allocation126_spill] sm:$0xff] %v6394_v31  ;;  %v6399_v59 = vld [vmem:[%s5574_s26 + $0xbc] ss:$0 sps:$4 sm:$0x11]   ;;  %v1738_v20 = vshll.u32 %v6394_v31, 16 }
  0xea   : > { %v6386_v2 = vpop.permute.xlu1 %816  ;;  %9330 = vst [vmem:[#allocation127_spill] sm:$0xff] %v6399_v59  ;;  %v6414_v37 = vsel %vm1692_vm0, %v5765_v51, %v1729_v34  ;;  %v1735_v22 = vshll.u32 %v6399_v59, 16 }
  0xeb   : > { %v6396_v54 = vpop.permute.xlu0 %814  ;;  %9332 = vst [vmem:[#allocation129_spill] sm:$0xff] %v6414_v37  ;;  %v6426_v19 = vsel %vm1692_vm0, %v5802_v15, %v1738_v20  ;;  %v1631_v20 = vld [vmem:[%s5574_s26 + $0x24] sm:$0xe]  ;;  %v1630_v15 = vld [vmem:[%s5574_s26 + $0x18] sm:$0xe] }
  0xec   : > { %1763 = vrot.lane.b32.xlu1 %v6383_v16, %s5520_s27  ;;  %9334 = vst [vmem:[#allocation131_spill] sm:$0xff] %v6426_v19  ;;  %v6433_v51 = vsel %vm1692_vm0, %v5791_v6, %v1735_v22  ;;  %v4918_v6 = vcombine.low %v1631_v20, %v5856_v9  ;;  %v1635_v9 = vld [vmem:[%s5574_s26 + $0x54] sm:$0xe]  ;;  %v1858_v20 = vshll.u32 %v5833_v43, 16 }
  0xed   : > { %1761 = vrot.lane.b32.xlu0 %v6390_v14, %s5520_s27  ;;  %v1629_v14 = vld [vmem:[%s5574_s26 + $0xc] sm:$0xe]  ;;  %9336 = vst [vmem:[#allocation133_spill] sm:$0xff] %v6433_v51  ;;  %v6501_v43 = vld [vmem:[%s5574_s26 + $0xb4] sm:$0xe] }
  0xee   : > { %v6410_v25 = vpop.permute.xlu1 %820 }
  0xef   : > { %v6417_v16 = vpop.permute.xlu0 %818 }
  0xf0   : > { %9333 = vst [vmem:[#allocation130_spill] sm:$0xff] %v6417_v16  ;;  %1767 = vrot.lane.b32.xlu1 %v6407_v12, %s5520_s27  ;;  %v4916_v12 = vcombine.low %v1629_v14, %v5828_v41  ;;  %v4917_v14 = vcombine.low %v1630_v15, %v5842_v52  ;;  %v1633_v41 = vld [vmem:[%s5574_s26 + $0x3c] sm:$0xe]  ;;  %v1854_v52 = vshll.u32 %v5819_v32, 16  ;;  %v1637_v32 = vld [vmem:[%s5574_s26 + $0x6c] sm:$0xe] }
  0xf1   : > { %1765 = vrot.lane.b32.xlu0 %v6414_v37, %s5520_s27  ;;  %v4915_v37 = vcombine.low %v1628_v62, %v5814_v30  ;;  %v1632_v62 = vld [vmem:[%s5574_s26 + $0x30] sm:$0xe] }
  0xf2   : > { %v6429_v34 = vpop.permute.xlu1 %824 }
  0xf3   : > { %9335 = vst [vmem:[#allocation132_spill] sm:$0xff] %v6429_v34  ;;  %v6435_v31 = vpop.permute.xlu0 %822  ;;  %v9350_v34 = vld [vmem:[#allocation53_spill] sm:$0xff] }
  0xf4   : > { %9337 = vst [vmem:[#allocation134_spill] sm:$0xff] %v6435_v31  ;;  %1771 = vrot.lane.b32.xlu1 %v6426_v19, %s5520_s27  ;;  %v9357_v31 = vld [vmem:[#allocation59_spill] sm:$0xff] }
  0xf5   : > { %1769 = vrot.lane.b32.xlu0 %v6433_v51, %s5520_s27  ;;  %v4920_v51 = vcombine.low %v1633_v41, %v5887_v4  ;;  %v4922_v4 = vcombine.low %v1635_v9, %v5912_v13  ;;  %v6498_v13 = vld [vmem:[%s5574_s26 + $0xa8] sm:$0xe] }
  0xf6   : > { %v6445_v59 = vpop.permute.xlu1 %828 }
  0xf7   : > { %9338 = vst [vmem:[#allocation135_spill] sm:$0xff] %v6445_v59  ;;  %v6447_v22 = vpop.permute.xlu0 %826  ;;  %v9349_v59 = vld [vmem:[#allocation54_spill] sm:$0xff] }
  0xf8   : > { %9339 = vst [vmem:[#allocation136_spill] sm:$0xff] %v6447_v22  ;;  %1823 = vrot.lane.b32.xlu1 %v4916_v12, %s5521_s28  ;;  %v4919_v22 = vcombine.low %v1632_v62, %v5873_v48  ;;  %v1634_v12 = vld [vmem:[%s5574_s26 + $0x48] sm:$0xe]  ;;  %v1866_v48 = vshll.u32 %v5861_v10, 16  ;;  %v1636_v62 = vld [vmem:[%s5574_s26 + $0x60] sm:$0xe] }
  0xf9   : > { %1821 = vrot.lane.b32.xlu0 %v4915_v37, %s5521_s28  ;;  %v4921_v41 = vcombine.low %v1634_v12, %v5898_v49  ;;  %v4924_v12 = vcombine.low %v1637_v32, %v5940_v36  ;;  %v9348_v32 = vld [vmem:[#allocation51_spill] sm:$0xff]  ;;  %v9353_v10 = vld [vmem:[#allocation58_spill] sm:$0xff] }
  0xfa   : > { %v6455_v30 = vpop.permute.xlu1 %832  ;;  %v9360_v36 = vld [vmem:[#allocation3_spill] sm:$0xff] }
  0xfb   : > { %9340 = vst [vmem:[#allocation137_spill] sm:$0xff] %v6455_v30  ;;  %v6457_v19 = vpop.permute.xlu0 %830 }
  0xfc   : > { %9341 = vst [vmem:[#allocation138_spill] sm:$0xff] %v6457_v19  ;;  %1827 = vrot.lane.b32.xlu1 %v4918_v6, %s5521_s28 }
  0xfd   : > { %1825 = vrot.lane.b32.xlu0 %v4917_v14, %s5521_s28  ;;  %v1639_v14 = vld [vmem:[%s5574_s26 + $0x84] sm:$0xe] }
  0xfe   : > { %v6465_v15 = vpop.permute.xlu1 %836  ;;  %v4926_v30 = vcombine.low %v1639_v14, %v9348_v32  ;;  %v9356_v14 = vld [vmem:[#allocation57_spill] sm:$0xff] }
  0xff   : > { %9342 = vst [vmem:[#allocation139_spill] sm:$0xff] %v6465_v15  ;;  %v6467_v37 = vpop.permute.xlu0 %834  ;;  %v9346_v15 = vld [vmem:[#allocation50_spill] sm:$0xff]  ;;  %v1032_v32 = vsel %vm1022_vm1, %v6235_v40, %v9356_v14  ;;  %v9362_v40 = vld [vmem:[#allocation67_spill] sm:$0xff]  ;;  %v9365_v14 = vld [vmem:[#allocation5_spill] sm:$0xff] }
 0x100   : > { %9343 = vst [vmem:[#allocation140_spill] sm:$0xff] %v6467_v37  ;;  %1831 = vrot.lane.b32.xlu1 %v4920_v51, %s5521_s28  ;;  %v1638_v51 = vld [vmem:[%s5574_s26 + $0x78] sm:$0xe]  ;;  %v6489_v37 = vld [vmem:[%s5574_s26 + $0x90] sm:$0xe] }
 0x101   : > { %1829 = vrot.lane.b32.xlu0 %v4919_v22, %s5521_s28  ;;  %v6495_v22 = vld [vmem:[%s5574_s26 + $0x9c] sm:$0xe]  ;;  %v4925_v19 = vcombine.low %v1638_v51, %v9346_v15  ;;  %v4927_v16 = vcombine.low %v6489_v37, %v9350_v34  ;;  %v9354_v15 = vld [vmem:[#allocation62_spill] sm:$0xff]  ;;  %v1027_v34 = vsel %vm1022_vm1, %v6240_v61, %v9357_v31  ;;  %v9363_v61 = vld [vmem:[#allocation4_spill] sm:$0xff]  ;;  %v6549_v31 = vsel %vm1022_vm1, %v6279_v1, %v6065_v50 }
 0x102   : > { %v6483_v9 = vpop.permute.xlu1 %840  ;;  %v9358_v37 = vld [vmem:[#allocation61_spill] sm:$0xff]  ;;  %v6565_v50 = vsel %vm1692_vm0, %v6061_v33, %v1858_v20  ;;  %v6592_v20 = vsel %vm1022_vm1, %v6274_v7, %v6089_v63  ;;  %v1111_v63 = vsel %vm1103_vm2, %v1032_v32, %v6232_v38 }
 0x103   : > { %9344 = vst [vmem:[#allocation141_spill] sm:$0xff] %v6483_v9  ;;  %v6491_v49 = vpop.permute.xlu0 %838  ;;  %v4923_v9 = vcombine.low %v1636_v62, %v5926_v44  ;;  %v9352_v44 = vld [vmem:[#allocation55_spill] sm:$0xff]  ;;  %v9367_v1 = vld [vmem:[#allocation65_spill] sm:$0xff] }
 0x104   : > { %9345 = vst [vmem:[#allocation142_spill] sm:$0xff] %v6491_v49  ;;  %1835 = vrot.lane.b32.xlu1 %v4922_v4, %s5521_s28  ;;  %v9347_v49 = vld [vmem:[#allocation52_spill] sm:$0xff]  ;;  %v4928_v62 = vcombine.low %v6495_v22, %v9352_v44  ;;  %v1037_v22 = vsel %vm1022_vm1, %v6256_v26, %v9358_v37  ;;  %v9359_v44 = vld [vmem:[#allocation63_spill] sm:$0xff]  ;;  %v1034_v26 = vsel %vm1022_vm1, %v9363_v61, %v9362_v40 }
 0x105   : > { %1833 = vrot.lane.b32.xlu0 %v4921_v41, %s5521_s28  ;;  %v1024_v6 = vsel %vm1022_vm1, %v9360_v36, %v9359_v44  ;;  %v9361_v41 = vld [vmem:[#allocation66_spill] sm:$0xff]  ;;  %v6569_v61 = vsel %vm1692_vm0, %v9367_v1, %v1854_v52  ;;  %v6587_v52 = vsel %vm1692_vm0, %v6085_v3, %v1866_v48  ;;  %v9376_v48 = vshll.u32 %v5883_v0, 16  ;;  %v9378_v0 = vld [vmem:[#allocation73_spill] sm:$0xff] }
 0x106   : > { %v6514_v4 = vpop.permute.xlu1 %844 }
 0x107   : > { %9351 = vst [vmem:[#allocation50_spill] sm:$0xff] %v6514_v4  ;;  %v6522_v51 = vpop.permute.xlu0 %842 }
 0x108   : > { %9355 = vst [vmem:[#allocation52_spill] sm:$0xff] %v6522_v51  ;;  %1839 = vrot.lane.b32.xlu1 %v4924_v12, %s5521_s28  ;;  %v6540_v51 = vsel %vm1022_vm1, %v6251_v24, %v9361_v41  ;;  %v9364_v12 = vld [vmem:[#allocation68_spill] sm:$0xff]  ;;  %v1107_v24 = vsel %vm1103_vm2, %v1027_v34, %v6221_v42  ;;  %v1105_v41 = vsel %vm1103_vm2, %v1024_v6, %v6223_v47  ;;  %v5429_v34 = vld [vmem:[%s9000_s2] sm:$0xff]   ;;  %v9370_v6 = vld [vmem:[#allocation71_spill] sm:$0xff] }
 0x109   : > { %1837 = vrot.lane.b32.xlu0 %v4923_v9, %s5521_s28  ;;  %v6554_v37 = vsel %vm1022_vm1, %v9365_v14, %v9364_v12  ;;  %v9368_v12 = vld [vmem:[#allocation70_spill] sm:$0xff]  ;;  %5200 = vmatprep.subr.bf16.mxu1 %v5429_v34 }
 0x10a   : > { %v961_v9 = vpop.permute.xlu1 %960  ;;  %v9369_v42 = vld [vmem:[#allocation2_spill] sm:$0xff]  ;;  %5201 = vmatpush3.bf16.msra.mxu1 %v5429_v34 }
 0x10b   : > { %v1172_v44 = vsel %vm1168_vm3, %v1107_v24, %v961_v9  ;;  %v6561_v40 = vpop.permute.xlu0 %958  ;;  %v1029_v47 = vsel %vm1022_vm1, %v9369_v42, %v9368_v12  ;;  %v9371_v24 = vld [vmem:[#allocation9_spill] sm:$0xff] }
 0x10c   : > { %9366 = vst [vmem:[#allocation51_spill] sm:$0xff] %v6561_v40  ;;  %v6580_v9 = vsel %vm1022_vm1, %v9371_v24, %v9370_v6  ;;  %v1170_v33 = vsel %vm1168_vm3, %v1105_v41, %v6561_v40  ;;  %1843 = vrot.lane.b32.xlu1 %v4926_v30, %s5521_s28  ;;  %v1240_v1 = vshll.u32 %v1172_v44, 16  ;;  %v9372_v6 = vshll.u32 %v5847_v56, 16  ;;  %v9373_v24 = vld [vmem:[#allocation69_spill] sm:$0xff]  ;;  %v9374_v30 = vld [vmem:[#allocation72_spill] sm:$0xff] }
 0x10d   : > { %v1236_v14 = vshll.u32 %v1170_v33, 16  ;;  %1841 = vrot.lane.b32.xlu0 %v4925_v19, %s5521_s28  ;;  %v9375_v40 = vld [vmem:[#allocation13_spill] sm:$0xff]  ;;  %v6612_v19 = vsel %vm1692_vm0, %v6109_v8, %v9376_v48  ;;  %v9377_v56 = vshll.u32 %v5869_v28, 16  ;;  %v6628_v8 = vsel %vm1022_vm1, %v6303_v21, %v9378_v0  ;;  %v9379_v28 = vld [vmem:[#allocation74_spill] sm:$0xff]  ;;  %v9380_v48 = vld [vmem:[#allocation16_spill] sm:$0xff] }
 0x10e   : > { %v6599_v41 = vsel %vm1692_vm0, %v9373_v24, %v9372_v6  ;;  %v6604_v3 = vsel %vm1022_vm1, %v9375_v40, %v9374_v30  ;;  %v965_v7 = vpop.permute.xlu1 %964  ;;  %v1109_v6 = vsel %vm1103_vm2, %v1029_v47, %v6237_v5  ;;  %v1234_v24 = vshrl.u32 %v1170_v33, 16 }
 0x10f   : > { %v6618_v44 = vsel %vm1692_vm0, %v6097_v11, %v9377_v56  ;;  %v1238_v30 = vrot.slane %v1236_v14, 1  ;;  %v1176_v32 = vsel %vm1168_vm3, %v1111_v63, %v965_v7  ;;  %v6623_v40 = vpop.permute.xlu0 %962  ;;  %v6633_v11 = vsel %vm1022_vm1, %v9380_v48, %v9379_v28  ;;  %v9382_v7 = vld [vmem:[#allocation75_spill] sm:$0xff]  ;;  %v9387_v28 = vld [vmem:[#allocation20_spill] sm:$0xff] }
 0x110   : > { %v1174_v34 = vsel %vm1168_vm3, %v1109_v6, %v6623_v40  ;;  %1847 = vrot.lane.b32.xlu1 %v4928_v62, %s5521_s28  ;;  %v9381_v5 = vshll.u32 %v5917_v58, 16  ;;  %v1242_v47 = vrot.slane %v1240_v1, 1  ;;  %v1250_v33 = vshll.u32 %v1176_v32, 16  ;;  %v9384_v1 = vld [vmem:[#allocation77_spill] sm:$0xff] }
 0x111   : > { %v1246_v21 = vshll.u32 %v1174_v34, 16  ;;  %1845 = vrot.lane.b32.xlu0 %v4927_v16, %s5521_s28  ;;  %v1239_v63 = vor.u32 %v1238_v30, %v1234_v24  ;;  %v6648_v56 = vsel %vm1022_vm1, %v6298_v29, %v9382_v7  ;;  %v1115_v62 = vsel %vm1103_vm2, %v1037_v22, %v6247_v57  ;;  %v9386_v7 = vld [vmem:[#allocation76_spill] sm:$0xff] }
 0x112   : > { %v6642_v14 = vsel %vm1692_vm0, %v6133_v60, %v9381_v5  ;;  %v1113_v58 = vsel %vm1103_vm2, %v1034_v26, %v6253_v17  ;;  %v969_v6 = vpop.permute.xlu1 %968  ;;  %v9383_v60 = vshll.u32 %v5903_v35, 16  ;;  %v1244_v16 = vshrl.u32 %v1174_v34, 16  ;;  %v9385_v5 = vld [vmem:[#allocation56_spill] sm:$0xff] }
 0x113   : > { %v1248_v30 = vrot.slane %v1246_v21, 1  ;;  %v1180_v24 = vsel %vm1168_vm3, %v1115_v62, %v969_v6  ;;  %v6661_v0 = vpop.permute.xlu0 %966  ;;  %v1243_v29 = vsel %vm1233_vm4, %v1239_v63, %v1242_v47  ;;  %v1906_v22 = vshll.u32 %v9385_v5, 16  ;;  %v9390_v47 = vld [vmem:[#allocation85_spill] sm:$0xff] }
 0x114   : > { %v6658_v32 = vsel %vm1692_vm0, %v9384_v1, %v9383_v60  ;;  %v6668_v17 = vsel %vm1022_vm1, %v9387_v28, %v9386_v7  ;;  %v1178_v35 = vsel %vm1168_vm3, %v1113_v58, %v6661_v0  ;;  %5168 = vmatprep.mubr.msk.bf16.mxu0 %vm1402_vm5, %v1243_v29  ;;  %v9388_v26 = vcombine.low %v6501_v43, %v9354_v15  ;;  %v9392_v1 = vld [vmem:[#allocation78_spill] sm:$0xff]  ;;  %v9393_v15 = vld [vmem:[#allocation104_spill] sm:$0xff]  ;;  %v9408_v7 = vld [vmem:[#allocation81_spill] sm:$0xff] }
 0x115   : > { %v9389_v34 = vshll.u32 %v5945_v23, 16  ;;  %v1252_v63 = vrot.slane %v1250_v33, 1  ;;  %v1249_v62 = vor.u32 %v1248_v30, %v1244_v16  ;;  %v1260_v6 = vshll.u32 %v1180_v24, 16  ;;  %v9394_v29 = vld [vmem:[#allocation106_spill] sm:$0xff]  ;;  %v9409_v28 = vld [vmem:[#allocation24_spill] sm:$0xff] }
 0x116   : > { %1851 = vrot.lane.b32.xlu1 %v9388_v26, %s5521_s28  ;;  %v1256_v60 = vshll.u32 %v1178_v35, 16  ;;  %v9391_v58 = vcombine.low %v6498_v13, %v9353_v10  ;;  %v6690_v43 = vsel %vm1022_vm1, %v6327_v18, %v9392_v1  ;;  %v1119_v23 = vsel %vm1103_vm2, %v6540_v51, %v9393_v15  ;;  %v973_v16 = vpop.permute.xlu1 %972  ;;  %v9396_v24 = vld [vmem:[#allocation82_spill] sm:$0xff] }
 0x117   : > { %v6681_v21 = vsel %vm1692_vm0, %v9390_v47, %v9389_v34  ;;  %v1117_v33 = vsel %vm1103_vm2, %v6554_v37, %v9394_v29  ;;  %v9395_v30 = vshll.u32 %v5931_v53, 16  ;;  %v1254_v10 = vshrl.u32 %v1178_v35, 16  ;;  %v6705_v26 = vpop.permute.xlu0 %970  ;;  %v9397_v34 = vld [vmem:[#allocation60_spill] sm:$0xff]  ;;  %v9399_v37 = vld [vmem:[#allocation21_spill] sm:$0xff] }
 0x118   : > { %1849 = vrot.lane.b32.xlu0 %v9391_v58, %s5521_s28  ;;  %v1258_v5 = vrot.slane %v1256_v60, 1  ;;  %v1184_v18 = vsel %vm1168_vm3, %v1119_v23, %v973_v16  ;;  %v1253_v51 = vsel %vm1233_vm4, %v1249_v62, %v1252_v63  ;;  %v9398_v58 = vld [vmem:[#allocation79_spill] sm:$0xff]  ;;  %v1182_v53 = vsel %vm1168_vm3, %v1117_v33, %v6705_v26  ;;  %v4948_v62 = vld [vmem:[%s5574_s26 + $0x18] sm:$0xf]  ;;  %v4949_v33 = vld [vmem:[%s5574_s26 + $0x1c] sm:$0xf] }
 0x119   : > { %v6702_v13 = vsel %vm1692_vm0, %v9396_v24, %v9395_v30  ;;  %v6712_v1 = vsel %vm1022_vm1, %v9399_v37, %v9398_v58  ;;  %5169 = vmatmul.mubr.msk.bf16.vlgmr.msra.gmra.mxu0 %vm1402_vm5, %v1253_v51  ;;  %v9400_v35 = vshll.u32 %v9347_v49, 16  ;;  %v9401_v60 = vld [vmem:[#allocation91_spill] sm:$0xff]  ;;  %v1262_v23 = vrot.slane %v1260_v6, 1  ;;  %v9402_v24 = vld [vmem:[#allocation80_spill] sm:$0xff] }
 0x11a   : > { %1919 = vrot.lane.b32.xlu1 %v6565_v50, %s5522_s7  ;;  %v1259_v29 = vor.u32 %v1258_v5, %v1254_v10  ;;  %v1270_v16 = vshll.u32 %v1184_v18, 16  ;;  %v1266_v30 = vshll.u32 %v1182_v53, 16  ;;  %v6732_v51 = vsel %vm1022_vm1, %v6322_v46, %v9402_v24  ;;  %v9403_v50 = vld [vmem:[#allocation108_spill] sm:$0xff]  ;;  %v977_v10 = vpop.permute.xlu1 %976 }
 0x11b   : > { %v6723_v63 = vsel %vm1692_vm0, %v9401_v60, %v9400_v35  ;;  %v1123_v49 = vsel %vm1103_vm2, %v6549_v31, %v9403_v50  ;;  %v9404_v35 = vld [vmem:[#allocation110_spill] sm:$0xff]  ;;  %v9405_v5 = vshll.u32 %v5959_v55, 16  ;;  %v9406_v18 = vld [vmem:[#allocation88_spill] sm:$0xff]  ;;  %v1264_v60 = vshrl.u32 %v1182_v53, 16  ;;  %v6747_v24 = vpop.permute.xlu0 %974 }
 0x11c   : > { %1917 = vrot.lane.b32.xlu0 %v6569_v61, %s5522_s7  ;;  %v1121_v6 = vsel %vm1103_vm2, %v6580_v9, %v9404_v35  ;;  %v1268_v47 = vrot.slane %v1266_v30, 1  ;;  %v1188_v46 = vsel %vm1168_vm3, %v1123_v49, %v977_v10  ;;  %v1263_v37 = vsel %vm1233_vm4, %v1259_v29, %v1262_v23  ;;  %v9407_v31 = vld [vmem:[#allocation64_spill] sm:$0xff]  ;;  %v9412_v10 = vld [vmem:[#allocation114_spill] sm:$0xff] }
 0x11d   : > { %v6744_v61 = vsel %vm1692_vm0, %v9406_v18, %v9405_v5  ;;  %v1914_v58 = vshll.u32 %v9407_v31, 16  ;;  %v6754_v9 = vsel %vm1022_vm1, %v9409_v28, %v9408_v7  ;;  %v1186_v55 = vsel %vm1168_vm3, %v1121_v6, %v6747_v24  ;;  %5172 = vmatprep.mubr.msk.bf16.mxu0 %vm1402_vm5, %v1263_v37  ;;  %v9411_v35 = vld [vmem:[#allocation112_spill] sm:$0xff]  ;;  %v4952_v31 = vld [vmem:[%s5574_s26 + $0x28] sm:$0xf] }
 0x11e   : > { %1923 = vrot.lane.b32.xlu1 %v6587_v52, %s5522_s7  ;;  %v6761_v53 = vcombine.low %v4948_v62, %v4949_v33  ;;  %v1272_v30 = vrot.slane %v1270_v16, 1  ;;  %v1269_v23 = vor.u32 %v1268_v47, %v1264_v60  ;;  %v1280_v29 = vshll.u32 %v1188_v46, 16  ;;  %v981_v52 = vpop.permute.xlu1 %980  ;;  %v9413_v62 = vld [vmem:[#allocation97_spill] sm:$0xff]  ;;  %v9415_v16 = vld [vmem:[#allocation94_spill] sm:$0xff] }
 0x11f   : > { %v1276_v49 = vshll.u32 %v1186_v55, 16  ;;  %v1127_v6 = vsel %vm1103_vm2, %v6592_v20, %v9411_v35  ;;  %v1125_v37 = vsel %vm1103_vm2, %v6604_v3, %v9412_v10  ;;  %v6773_v33 = vsel %vm1692_vm0, %v9413_v62, %v1906_v22  ;;  %v6782_v20 = vpop.permute.xlu0 %978  ;;  %v4951_v3 = vld [vmem:[%s5574_s26 + $0x24] sm:$0xf]  ;;  %v9416_v10 = vld [vmem:[#allocation83_spill] sm:$0xff]  ;;  %v9418_v62 = vld [vmem:[#allocation29_spill] sm:$0xff] }
 0x120   : > { %9410 = vst [vmem:[#allocation54_spill] sm:$0xff] %v6761_v53  ;;  %1921 = vrot.lane.b32.xlu0 %v6599_v41, %s5522_s7  ;;  %v9414_v47 = vshll.u32 %v9349_v59, 16  ;;  %v1274_v41 = vshrl.u32 %v1186_v55, 16  ;;  %v1192_v60 = vsel %vm1168_vm3, %v1127_v6, %v981_v52  ;;  %v1273_v46 = vsel %vm1233_vm4, %v1269_v23, %v1272_v30  ;;  %v9417_v59 = vld [vmem:[#allocation84_spill] sm:$0xff] }
 0x121   : > { %v1278_v18 = vrot.slane %v1276_v49, 1  ;;  %v6790_v22 = vsel %vm1022_vm1, %v6351_v27, %v9416_v10  ;;  %v1190_v55 = vsel %vm1168_vm3, %v1125_v37, %v6782_v20  ;;  %5173 = vmatmul.mubr.msk.bf16.gmra.mxu0 %vm1402_vm5, %v1273_v46  ;;  %v2585_v30 = vshrl.u32 %v6761_v53, 16  ;;  %v9419_v52 = vld [vmem:[#allocation116_spill] sm:$0xff]  ;;  %v9420_v10 = vld [vmem:[#allocation118_spill] sm:$0xff] }
 0x122   : > { %v6779_v5 = vsel %vm1692_vm0, %v9415_v16, %v9414_v47  ;;  %v6795_v47 = vsel %vm1022_vm1, %v9418_v62, %v9417_v59  ;;  %1927 = vrot.lane.b32.xlu1 %v6612_v19, %s5522_s7  ;;  %v1282_v23 = vrot.slane %v1280_v29, 1  ;;  %v1290_v6 = vshll.u32 %v1192_v60, 16  ;;  %v985_v46 = vpop.permute.xlu1 %984  ;;  %v9421_v19 = vld [vmem:[#allocation102_spill] sm:$0xff] }
 0x123   : > { %v1279_v49 = vor.u32 %v1278_v18, %v1274_v41  ;;  %v1286_v27 = vshll.u32 %v1190_v55, 16  ;;  %v1131_v16 = vsel %vm1103_vm2, %v6628_v8, %v9419_v52  ;;  %v1129_v37 = vsel %vm1103_vm2, %v6633_v11, %v9420_v10  ;;  %v6818_v60 = vpop.permute.xlu0 %982 }
 0x124   : > { %1925 = vrot.lane.b32.xlu0 %v6618_v44, %s5522_s7  ;;  %v6813_v62 = vsel %vm1692_vm0, %v9421_v19, %v1914_v58  ;;  %v6815_v29 = vcombine.low %v4951_v3, %v4952_v31  ;;  %v1284_v41 = vshrl.u32 %v1190_v55, 16  ;;  %v1196_v44 = vsel %vm1168_vm3, %v1131_v16, %v985_v46  ;;  %v9424_v58 = vld [vmem:[#allocation100_spill] sm:$0xff]  ;;  %v9427_v19 = vld [vmem:[#allocation123_spill] sm:$0xff] }
 0x125   : > { %v1288_v18 = vrot.slane %v1286_v27, 1  ;;  %v1283_v8 = vsel %vm1233_vm4, %v1279_v49, %v1282_v23  ;;  %v1194_v28 = vsel %vm1168_vm3, %v1129_v37, %v6818_v60  ;;  %v9423_v11 = vshll.u32 %v9397_v34, 16  ;;  %v4954_v27 = vld [vmem:[%s5574_s26 + $0x30] sm:$0xf]  ;;  %v4955_v37 = vld [vmem:[%s5574_s26 + $0x34] sm:$0xf] }
 0x126   : > { %9422 = vst [vmem:[#allocation53_spill] sm:$0xff] %v6815_v29  ;;  %5176 = vmatprep.mubr.msk.bf16.mxu0 %vm1402_vm5, %v1283_v8  ;;  %1931 = vrot.lane.b32.xlu1 %v6642_v14, %s5522_s7  ;;  %v6832_v31 = vrot.slane %v2585_v30, 7  ;;  %v2588_v55 = vshll.u32 %v6761_v53, 16  ;;  %v1292_v23 = vrot.slane %v1290_v6, 1  ;;  %v1300_v16 = vshll.u32 %v1196_v44, 16  ;;  %v9425_v14 = vld [vmem:[#allocation86_spill] sm:$0xff] }
 0x127   : > { %v6830_v3 = vsel %vm1692_vm0, %v9424_v58, %v9423_v11  ;;  %v1289_v49 = vor.u32 %v1288_v18, %v1284_v41  ;;  %v1296_v10 = vshll.u32 %v1194_v28, 16  ;;  %v6842_v34 = vsel %vm1022_vm1, %v6346_v39, %v9425_v14  ;;  %v9426_v46 = vld [vmem:[#allocation120_spill] sm:$0xff]  ;;  %v989_v41 = vpop.permute.xlu1 %988  ;;  %v6852_v11 = vpop.permute.xlu0 %986 }
 0x128   : > { %1929 = vrot.lane.b32.xlu0 %v6658_v32, %s5522_s7  ;;  %v1135_v30 = vsel %vm1103_vm2, %v6648_v56, %v9426_v46  ;;  %v1133_v6 = vsel %vm1103_vm2, %v6668_v17, %v9427_v19  ;;  %v2592_v18 = vshrl.u32 %v6815_v29, 16  ;;  %v1294_v44 = vshrl.u32 %v1194_v28, 16 }
 0x129   : > { %v1298_v8 = vrot.slane %v1296_v10, 1  ;;  %v1200_v32 = vsel %vm1168_vm3, %v1135_v30, %v989_v41  ;;  %v1293_v39 = vsel %vm1233_vm4, %v1289_v49, %v1292_v23  ;;  %v1198_v58 = vsel %vm1168_vm3, %v1133_v6, %v6852_v11  ;;  %v4957_v41 = vld [vmem:[%s5574_s26 + $0x3c] sm:$0xf] }
 0x12a   : > { %5177 = vmatmul.mubr.msk.bf16.gmra.mxu0 %vm1402_vm5, %v1293_v39  ;;  %1935 = vrot.lane.b32.xlu1 %v6681_v21, %s5522_s7  ;;  %v6861_v56 = vor.u32 %v2588_v55, %v6832_v31  ;;  %v6863_v17 = vcombine.low %v4954_v27, %v4955_v37  ;;  %v1302_v28 = vrot.slane %v1300_v16, 1  ;;  %v1310_v14 = vshll.u32 %v1200_v32, 16 }
 0x12b   : > { %v1299_v10 = vor.u32 %v1298_v8, %v1294_v44  ;;  %v1306_v30 = vshll.u32 %v1198_v58, 16  ;;  %v1139_v23 = vsel %vm1103_vm2, %v6690_v43, %v6386_v2  ;;  %v1137_v21 = vsel %vm1103_vm2, %v6712_v1, %v6396_v54  ;;  %v993_v55 = vpop.permute.xlu1 %992  ;;  %v6877_v6 = vpop.permute.xlu0 %990  ;;  %v4958_v44 = vld [vmem:[%s5574_s26 + $0x40] sm:$0xf]  ;;  %v9429_v43 = vld [vmem:[#allocation87_spill] sm:$0xff]  ;;  %v9430_v8 = vld [vmem:[#allocation32_spill] sm:$0xff] }
 0x12c   : > { %9428 = vst [vmem:[#allocation55_spill] sm:$0xff] %v6863_v17  ;;  %1933 = vrot.lane.b32.xlu0 %v6702_v13, %s5522_s7  ;;  %v6873_v27 = vrot.slane %v2592_v18, 7  ;;  %v2595_v49 = vshll.u32 %v6815_v29, 16  ;;  %v1304_v16 = vshrl.u32 %v1198_v58, 16  ;;  %v1204_v19 = vsel %vm1168_vm3, %v1139_v23, %v993_v55  ;;  %v9431_v54 = vld [vmem:[#allocation89_spill] sm:$0xff]  ;;  %v9432_v23 = vld [vmem:[#allocation130_spill] sm:$0xff] }
 0x12d   : > { %v1308_v37 = vrot.slane %v1306_v30, 1  ;;  %v1303_v13 = vsel %vm1233_vm4, %v1299_v10, %v1302_v28  ;;  %v1079_v32 = vsel %vm1022_vm1, %v9430_v8, %v9429_v43  ;;  %v6888_v1 = vsel %vm1022_vm1, %v6375_v45, %v9431_v54  ;;  %v9436_v54 = vld [vmem:[#allocation33_spill] sm:$0xff]  ;;  %v9449_v8 = vld [vmem:[#allocation38_spill] sm:$0xff] }
 0x12e   : > { %v1202_v18 = vsel %vm1168_vm3, %v1137_v21, %v6877_v6  ;;  %5180 = vmatprep.mubr.msk.bf16.mxu0 %vm1402_vm5, %v1303_v13  ;;  %1939 = vrot.lane.b32.xlu1 %v6723_v63, %s5522_s7  ;;  %v2599_v39 = vshrl.u32 %v6863_v17, 16  ;;  %v1312_v58 = vrot.slane %v1310_v14, 1  ;;  %v1320_v10 = vshll.u32 %v1204_v19, 16  ;;  %v9435_v13 = vld [vmem:[#allocation90_spill] sm:$0xff] }
 0x12f   : > { %v1309_v28 = vor.u32 %v1308_v37, %v1304_v16  ;;  %v1316_v30 = vshll.u32 %v1202_v18, 16  ;;  %v1143_v45 = vsel %vm1103_vm2, %v6732_v51, %v6410_v25  ;;  %v1141_v21 = vsel %vm1103_vm2, %v6754_v9, %v9432_v23  ;;  %v997_v55 = vpop.permute.xlu1 %996  ;;  %v6910_v19 = vpop.permute.xlu0 %994  ;;  %v9438_v23 = vld [vmem:[#allocation92_spill] sm:$0xff]  ;;  %v5469_v43 = vld [vmem:[%s5574_s26 + $0x38] ss:$0 sps:$4 sm:$0x11]  }
 0x130   : > { %1937 = vrot.lane.b32.xlu0 %v6744_v61, %s5522_s7  ;;  %v6905_v63 = vor.u32 %v2595_v49, %v6873_v27  ;;  %v6907_v14 = vcombine.low %v4957_v41, %v4958_v44  ;;  %v1314_v16 = vshrl.u32 %v1202_v18, 16  ;;  %v1208_v61 = vsel %vm1168_vm3, %v1143_v45, %v997_v55  ;;  %9434 = vst [vmem:[#allocation62_spill] sm:$0xff] %v6910_v19  ;;  %v4960_v44 = vld [vmem:[%s5574_s26 + $0x48] sm:$0xf]  ;;  %v4961_v45 = vld [vmem:[%s5574_s26 + $0x4c] sm:$0xf] }
 0x131   : > { %v1318_v37 = vrot.slane %v1316_v30, 1  ;;  %v1313_v51 = vsel %vm1233_vm4, %v1309_v28, %v1312_v58  ;;  %v1084_v53 = vsel %vm1022_vm1, %v9436_v54, %v9435_v13  ;;  %v1206_v9 = vsel %vm1168_vm3, %v1141_v21, %v6910_v19  ;;  %v9439_v21 = vld [vmem:[#allocation122_spill] sm:$0xff] }
 0x132   : > { %9433 = vst [vmem:[#allocation58_spill] sm:$0xff] %v6907_v14  ;;  %5181 = vmatmul.mubr.msk.bf16.gmra.mxu0 %vm1402_vm5, %v1313_v51  ;;  %1943 = vrot.lane.b32.xlu1 %v6773_v33, %s5522_s7  ;;  %v6921_v49 = vrot.slane %v2599_v39, 7  ;;  %v2602_v41 = vshll.u32 %v6863_v17, 16  ;;  %v1322_v18 = vrot.slane %v1320_v10, 1  ;;  %v1330_v58 = vshll.u32 %v1208_v61, 16  ;;  %v9440_v33 = vld [vmem:[#allocation132_spill] sm:$0xff] }
 0x133   : > { %v1319_v30 = vor.u32 %v1318_v37, %v1314_v16  ;;  %v1326_v28 = vshll.u32 %v1206_v9, 16  ;;  %v6931_v55 = vsel %vm1022_vm1, %v9439_v21, %v9438_v23  ;;  %v1147_v39 = vsel %vm1103_vm2, %v6790_v22, %v9440_v33  ;;  %v9441_v51 = vld [vmem:[#allocation134_spill] sm:$0xff]  ;;  %v1001_v16 = vpop.permute.xlu1 %1000  ;;  %v6941_v17 = vpop.permute.xlu0 %998 }
 0x134   : > { %9437 = vst [vmem:[#allocation57_spill] sm:$0xff] %v6921_v49  ;;  %1941 = vrot.lane.b32.xlu0 %v6779_v5, %s5522_s7  ;;  %v1145_v10 = vsel %vm1103_vm2, %v6795_v47, %v9441_v51  ;;  %v2606_v37 = vshrl.u32 %v6907_v14, 16  ;;  %v1324_v61 = vshrl.u32 %v1206_v9, 16  ;;  %v1212_v54 = vsel %vm1168_vm3, %v1147_v39, %v1001_v16  ;;  %9442 = vst [vmem:[#allocation59_spill] sm:$0xff] %v6941_v17  ;;  %v4963_v9 = vld [vmem:[%s5574_s26 + $0x54] sm:$0xf] }
 0x135   : > { %v1328_v5 = vrot.slane %v1326_v28, 1  ;;  %v1323_v23 = vsel %vm1233_vm4, %v1319_v30, %v1322_v18  ;;  %v1210_v21 = vsel %vm1168_vm3, %v1145_v10, %v6941_v17  ;;  %v6950_v22 = vor.u32 %v2602_v41, %v6921_v49  ;;  %v4964_v18 = vld [vmem:[%s5574_s26 + $0x58] sm:$0xf]  ;;  %v9444_v30 = vld [vmem:[#allocation135_spill] sm:$0xff]  ;;  %v5473_v33 = vld [vmem:[%s5574_s26 + $0x40] sm:$0xf] }
 0x136   : > { %5184 = vmatprep.mubr.msk.bf16.mxu0 %vm1402_vm5, %v1323_v23  ;;  %1947 = vrot.lane.b32.xlu1 %v6813_v62, %s5522_s7  ;;  %v6952_v47 = vcombine.low %v4960_v44, %v4961_v45  ;;  %v1332_v28 = vrot.slane %v1330_v58, 1  ;;  %v1340_v51 = vshll.u32 %v1212_v54, 16  ;;  %v1336_v16 = vshll.u32 %v1210_v21, 16  ;;  %v9445_v23 = vld [vmem:[#allocation136_spill] sm:$0xff] }
 0x137   : > { %v1329_v39 = vor.u32 %v1328_v5, %v1324_v61  ;;  %v1151_v10 = vsel %vm1103_vm2, %v6842_v34, %v9444_v30  ;;  %v1149_v62 = vsel %vm1103_vm2, %v1079_v32, %v9445_v23  ;;  %v1005_v41 = vpop.permute.xlu1 %1004  ;;  %v6963_v29 = vrot.slane %v2606_v37, 7  ;;  %v6967_v61 = vpop.permute.xlu0 %1002  ;;  %v9448_v5 = vld [vmem:[#allocation93_spill] sm:$0xff]  ;;  %v9451_v23 = vld [vmem:[#allocation95_spill] sm:$0xff] }
 0x138   : > { %9443 = vst [vmem:[#allocation61_spill] sm:$0xff] %v6952_v47  ;;  %1945 = vrot.lane.b32.xlu0 %v6830_v3, %s5522_s7  ;;  %v2609_v44 = vshll.u32 %v6907_v14, 16  ;;  %v1334_v58 = vshrl.u32 %v1210_v21, 16  ;;  %v1338_v45 = vrot.slane %v1336_v16, 1  ;;  %v1216_v54 = vsel %vm1168_vm3, %v1151_v10, %v1005_v41  ;;  %9447 = vst [vmem:[#allocation66_spill] sm:$0xff] %v6967_v61  ;;  %v9454_v14 = vld [vmem:[#allocation138_spill] sm:$0xff] }
 0x139   : > { %9446 = vst [vmem:[#allocation3_spill] sm:$0xff] %v6963_v29  ;;  %v1333_v3 = vsel %vm1233_vm4, %v1329_v39, %v1332_v28  ;;  %v1089_v34 = vsel %vm1022_vm1, %v9449_v8, %v9448_v5  ;;  %v1214_v32 = vsel %vm1168_vm3, %v1149_v62, %v6967_v61  ;;  %v2613_v37 = vshrl.u32 %v6952_v47, 16  ;;  %v9452_v62 = vld [vmem:[#allocation127_spill] sm:$0xff]  ;;  %v4966_v61 = vld [vmem:[%s5574_s26 + $0x60] sm:$0xf] }
 0x13a   : > { %5185 = vmatmul.mubr.msk.bf16.gmra.mxu0 %vm1402_vm5, %v1333_v3  ;;  %2698 = vrot.lane.b32.xlu1 %v6832_v31, %s5520_s27  ;;  %v6979_v21 = vcombine.low %v4963_v9, %v4964_v18  ;;  %v1342_v16 = vrot.slane %v1340_v51, 1  ;;  %v1339_v28 = vor.u32 %v1338_v45, %v1334_v58  ;;  %v1350_v39 = vshll.u32 %v1216_v54, 16  ;;  %v9453_v3 = vld [vmem:[#allocation137_spill] sm:$0xff] }
 0x13b   : > { %v1346_v10 = vshll.u32 %v1214_v32, 16  ;;  %v1097_v41 = vsel %vm1022_vm1, %v9452_v62, %v9451_v23  ;;  %v1155_v8 = vsel %vm1103_vm2, %v6888_v1, %v9453_v3  ;;  %v1153_v9 = vsel %vm1103_vm2, %v1084_v53, %v9454_v14  ;;  %v1009_v18 = vpop.permute.xlu1 %1008  ;;  %v6993_v5 = vpop.permute.xlu0 %1006  ;;  %v4967_v23 = vld [vmem:[%s5574_s26 + $0x64] sm:$0xf] }
 0x13c   : > { %9450 = vst [vmem:[#allocation65_spill] sm:$0xff] %v6979_v21  ;;  %2696 = vrot.lane.b32.xlu0 %v6861_v56, %s5520_s27  ;;  %v2611_v51 = vor.u32 %v2609_v44, %v6963_v29  ;;  %v1344_v58 = vshrl.u32 %v1214_v32, 16  ;;  %v1220_v54 = vsel %vm1168_vm3, %v1155_v8, %v1009_v18  ;;  %9455 = vst [vmem:[#allocation70_spill] sm:$0xff] %v6993_v5  ;;  %v7003_v53 = vrot.slane %v2613_v37, 7  ;;  %v9459_v18 = vld [vmem:[#allocation139_spill] sm:$0xff]  ;;  %v9464_v3 = vld [vmem:[#allocation126_spill] sm:$0xff] }
 0x13d   : > { %v1348_v45 = vrot.slane %v1346_v10, 1  ;;  %v1343_v56 = vsel %vm1233_vm4, %v1339_v28, %v1342_v16  ;;  %v1218_v62 = vsel %vm1168_vm3, %v1153_v9, %v6993_v5  ;;  %v2616_v1 = vshll.u32 %v6952_v47, 16  ;;  %v9457_v28 = vld [vmem:[#allocation96_spill] sm:$0xff]  ;;  %v9458_v10 = vld [vmem:[#allocation41_spill] sm:$0xff] }
 0x13e   : > { %5188 = vmatprep.mubr.msk.bf16.mxu0 %vm1402_vm5, %v1343_v56  ;;  %2702 = vrot.lane.b32.xlu1 %v6873_v27, %s5520_s27  ;;  %9456 = vst [vmem:[#allocation2_spill] sm:$0xff] %v7003_v53  ;;  %v2620_v8 = vshrl.u32 %v6979_v21, 16  ;;  %v1352_v14 = vrot.slane %v1350_v39, 1  ;;  %v1360_v32 = vshll.u32 %v1220_v54, 16  ;;  %v1356_v16 = vshll.u32 %v1218_v62, 16  ;;  %v9460_v56 = vld [vmem:[#allocation140_spill] sm:$0xff] }
 0x13f   : > { %v1349_v44 = vor.u32 %v1348_v45, %v1344_v58  ;;  %v1094_v9 = vsel %vm1022_vm1, %v9458_v10, %v9457_v28  ;;  %v1159_v37 = vsel %vm1103_vm2, %v6931_v55, %v9459_v18  ;;  %v1157_v47 = vsel %vm1103_vm2, %v1089_v34, %v9460_v56  ;;  %v1013_v5 = vpop.permute.xlu1 %1012  ;;  %v7020_v54 = vpop.permute.xlu0 %1010  ;;  %v9463_v28 = vld [vmem:[#allocation98_spill] sm:$0xff]  ;;  %v5467_v18 = vld [vmem:[%s5574_s26 + $0x1c] sm:$0xf] }
 0x140   : > { %2700 = vrot.lane.b32.xlu0 %v6905_v63, %s5520_s27  ;;  %v7017_v39 = vcombine.low %v4966_v61, %v4967_v23  ;;  %v1354_v58 = vshrl.u32 %v1218_v62, 16  ;;  %v1358_v45 = vrot.slane %v1356_v16, 1  ;;  %v1224_v63 = vsel %vm1168_vm3, %v1159_v37, %v1013_v5  ;;  %9462 = vst [vmem:[#allocation73_spill] sm:$0xff] %v7020_v54  ;;  %v4969_v5 = vld [vmem:[%s5574_s26 + $0x6c] sm:$0xf]  ;;  %v9466_v16 = vld [vmem:[#allocation141_spill] sm:$0xff] }
 0x141   : > { %v1353_v10 = vsel %vm1233_vm4, %v1349_v44, %v1352_v14  ;;  %v1102_v30 = vsel %vm1022_vm1, %v9464_v3, %v9463_v28  ;;  %v1222_v55 = vsel %vm1168_vm3, %v1157_v47, %v7020_v54  ;;  %v2618_v61 = vor.u32 %v2616_v1, %v7003_v53  ;;  %v4970_v3 = vld [vmem:[%s5574_s26 + $0x70] sm:$0xf]  ;;  %v9467_v28 = vld [vmem:[#allocation142_spill] sm:$0xff] }
 0x142   : > { %9461 = vst [vmem:[#allocation69_spill] sm:$0xff] %v7017_v39  ;;  %5189 = vmatmul.mubr.msk.bf16.gmra.mxu0 %vm1402_vm5, %v1353_v10  ;;  %2706 = vrot.lane.b32.xlu1 %v6921_v49, %s5520_s27  ;;  %v7032_v34 = vrot.slane %v2620_v8, 7  ;;  %v1362_v23 = vrot.slane %v1360_v32, 1  ;;  %v1359_v62 = vor.u32 %v1358_v45, %v1354_v58  ;;  %v1370_v14 = vshll.u32 %v1224_v63, 16  ;;  %v9469_v63 = vld [vmem:[#allocation99_spill] sm:$0xff]  ;;  %v9470_v54 = vld [vmem:[#allocation42_spill] sm:$0xff] }
 0x143   : > { %v1366_v44 = vshll.u32 %v1222_v55, 16  ;;  %v1163_v47 = vsel %vm1103_vm2, %v1097_v41, %v9466_v16  ;;  %v1161_v10 = vsel %vm1103_vm2, %v1094_v9, %v9467_v28  ;;  %v1017_v37 = vpop.permute.xlu1 %1016  ;;  %v2623_v1 = vshll.u32 %v6979_v21, 16  ;;  %v7045_v45 = vpop.permute.xlu0 %1014  ;;  %v5468_v49 = vld [vmem:[%s5574_s26 + $0x10] sm:$0xf] }
 0x144   : > { %9465 = vst [vmem:[#allocation16_spill] sm:$0xff] %v7032_v34  ;;  %2704 = vrot.lane.b32.xlu0 %v6950_v22, %s5520_s27  ;;  %v2627_v8 = vshrl.u32 %v7017_v39, 16  ;;  %v1364_v32 = vshrl.u32 %v1222_v55, 16  ;;  %v1228_v58 = vsel %vm1168_vm3, %v1163_v47, %v1017_v37  ;;  %9468 = vst [vmem:[#allocation75_spill] sm:$0xff] %v7045_v45  ;;  %v1363_v22 = vsel %vm1233_vm4, %v1359_v62, %v1362_v23  ;;  %v4973_v23 = vld [vmem:[%s5574_s26 + $0x7c] sm:$0xf] }
 0x145   : > { %v1368_v56 = vrot.slane %v1366_v44, 1  ;;  %v1099_v41 = vsel %vm1022_vm1, %v9470_v54, %v9469_v63  ;;  %v1226_v9 = vsel %vm1168_vm3, %v1161_v10, %v7045_v45  ;;  %5192 = vmatprep.mubr.msk.bf16.mxu0 %vm1402_vm5, %v1363_v22  ;;  %v7056_v55 = vcombine.low %v4969_v5, %v4970_v3  ;;  %v4972_v44 = vld [vmem:[%s5574_s26 + $0x78] sm:$0xf]  ;;  %v9472_v54 = vld [vmem:[#allocation52_spill] sm:$0xff] }
 0x146   : > { %2710 = vrot.lane.b32.xlu1 %v6963_v29, %s5520_s27  ;;  %v1372_v47 = vrot.slane %v1370_v14, 1  ;;  %v1380_v37 = vshll.u32 %v1228_v58, 16  ;;  %v1376_v21 = vshll.u32 %v1226_v9, 16  ;;  %v1167_v62 = vsel %vm1103_vm2, %v1102_v30, %v6514_v4  ;;  %v4994_v4 = vld [vmem:[%s5574_s26 + $0xd0] sm:$0xf] }
 0x147   : > { %9471 = vst [vmem:[#allocation77_spill] sm:$0xff] %v7056_v55  ;;  %v1369_v28 = vor.u32 %v1368_v56, %v1364_v32  ;;  %v1165_v10 = vsel %vm1103_vm2, %v1099_v41, %v9472_v54  ;;  %v1021_v22 = vpop.permute.xlu1 %1020  ;;  %v2625_v63 = vor.u32 %v2623_v1, %v7032_v34  ;;  %v7066_v5 = vrot.slane %v2627_v8, 7  ;;  %v7069_v56 = vpop.permute.xlu0 %1018  ;;  %v4975_v8 = vld [vmem:[%s5574_s26 + $0x84] sm:$0xf] }
 0x148   : > { %2708 = vrot.lane.b32.xlu0 %v2611_v51, %s5520_s27  ;;  %v1374_v3 = vshrl.u32 %v1226_v9, 16  ;;  %v1378_v14 = vrot.slane %v1376_v21, 1  ;;  %v1232_v32 = vsel %vm1168_vm3, %v1167_v62, %v1021_v22  ;;  %9474 = vst [vmem:[#allocation85_spill] sm:$0xff] %v7069_v56  ;;  %v1230_v30 = vsel %vm1168_vm3, %v1165_v10, %v7069_v56 }
 0x149   : > { %9473 = vst [vmem:[#allocation56_spill] sm:$0xff] %v7066_v5  ;;  %v1373_v51 = vsel %vm1233_vm4, %v1369_v28, %v1372_v47  ;;  %v2630_v54 = vshll.u32 %v7017_v39, 16  ;;  %v2634_v1 = vshrl.u32 %v7056_v55, 16  ;;  %v7079_v21 = vcombine.low %v4972_v44, %v4973_v23  ;;  %v4976_v47 = vld [vmem:[%s5574_s26 + $0x88] sm:$0xf] }
 0x14a   : > { %5193 = vmatmul.mubr.msk.bf16.gmra.mxu0 %vm1402_vm5, %v1373_v51  ;;  %2714 = vrot.lane.b32.xlu1 %v7003_v53, %s5520_s27  ;;  %v1382_v58 = vrot.slane %v1380_v37, 1  ;;  %v1379_v41 = vor.u32 %v1378_v14, %v1374_v3  ;;  %v1390_v9 = vshll.u32 %v1232_v32, 16  ;;  %v1386_v62 = vshll.u32 %v1230_v30, 16 }
 0x14b   : > { %9475 = vst [vmem:[#allocation78_spill] sm:$0xff] %v7079_v21  ;;  %v7084_v28 = vpop.permute.xlu1 %1743  ;;  %v1384_v10 = vshrl.u32 %v1230_v30, 16  ;;  %v7086_v51 = vpop.permute.xlu0 %1741  ;;  %v2632_v44 = vor.u32 %v2630_v54, %v7066_v5  ;;  %v7093_v37 = vrot.slane %v2634_v1, 7  ;;  %v2637_v14 = vshll.u32 %v7056_v55, 16  ;;  %v4978_v30 = vld [vmem:[%s5574_s26 + $0x90] sm:$0xf] }
 0x14c   : > { %2712 = vrot.lane.b32.xlu0 %v2618_v61, %s5520_s27  ;;  %v1388_v22 = vrot.slane %v1386_v62, 1  ;;  %v1383_v39 = vsel %vm1233_vm4, %v1379_v41, %v1382_v58  ;;  %v7095_v61 = vcombine.low %v4975_v8, %v4976_v47  ;;  %v1392_v23 = vrot.slane %v1390_v9, 1  ;;  %v4979_v58 = vld [vmem:[%s5574_s26 + $0x94] sm:$0xf] }
 0x14d   : > { %5196 = vmatprep.mubr.msk.bf16.mxu0 %vm1402_vm5, %v1383_v39  ;;  %9476 = vst [vmem:[#allocation104_spill] sm:$0xff] %v7093_v37  ;;  %v2641_v32 = vshrl.u32 %v7079_v21, 16  ;;  %v2639_v1 = vor.u32 %v2637_v14, %v7093_v37  ;;  %v2644_v9 = vshll.u32 %v7079_v21, 16  ;;  %v7116_v62 = vcombine.low %v4978_v30, %v4979_v58  ;;  %v4984_v58 = vld [vmem:[%s5574_s26 + $0xa8] sm:$0xf] }
 0x14e   : > { %2718 = vrot.lane.b32.xlu1 %v7032_v34, %s5520_s27  ;;  %9477 = vst [vmem:[#allocation106_spill] sm:$0xff] %v7095_v61  ;;  %v1389_v3 = vor.u32 %v1388_v22, %v1384_v10  ;;  %v4981_v10 = vld [vmem:[%s5574_s26 + $0x9c] sm:$0xf]  ;;  %v4982_v22 = vld [vmem:[%s5574_s26 + $0xa0] sm:$0xf]  ;;  %v2651_v14 = vshll.u32 %v7095_v61, 16 }
 0x14f   : > { %v7100_v39 = vpop.permute.xlu1 %1747  ;;  %v7104_v41 = vpop.permute.xlu0 %1745  ;;  %v7113_v8 = vrot.slane %v2641_v32, 7  ;;  %9479 = vst [vmem:[#allocation60_spill] sm:$0xff] %v7116_v62  ;;  %v2655_v32 = vshrl.u32 %v7116_v62, 16  ;;  %v7132_v30 = vcombine.low %v4981_v10, %v4982_v22  ;;  %v2658_v10 = vshll.u32 %v7116_v62, 16  ;;  %v4991_v34 = vld [vmem:[%s5574_s26 + $0xc4] sm:$0xf] }
 0x150   : > { %2716 = vrot.lane.b32.xlu0 %v2625_v63, %s5520_s27  ;;  %v1393_v54 = vsel %vm1233_vm4, %v1389_v3, %v1392_v23  ;;  %v2648_v63 = vshrl.u32 %v7095_v61, 16 }
 0x151   : > { %9478 = vst [vmem:[#allocation82_spill] sm:$0xff] %v7113_v8  ;;  %v2646_v3 = vor.u32 %v2644_v9, %v7113_v8  ;;  %9481 = vst [vmem:[#allocation80_spill] sm:$0xff] %v7132_v30  ;;  %v7146_v9 = vrot.slane %v2655_v32, 7  ;;  %v2662_v22 = vshrl.u32 %v7132_v30, 16 }
 0x152   : > { %5197 = vmatmul.mubr.msk.bf16.gmra.mxu0 %vm1402_vm5, %v1393_v54  ;;  %2722 = vrot.lane.b32.xlu1 %v7066_v5, %s5520_s27  ;;  %v4985_v54 = vld [vmem:[%s5574_s26 + $0xac] sm:$0xf]  ;;  %v4987_v5 = vld [vmem:[%s5574_s26 + $0xb4] sm:$0xf] }
 0x153   : > { %v7118_v47 = vpop.permute.xlu1 %1751  ;;  %v7122_v23 = vpop.permute.xlu0 %1749  ;;  %9483 = vst [vmem:[#allocation110_spill] sm:$0xff] %v7146_v9  ;;  %v7161_v32 = vrot.slane %v2662_v22, 7 }
 0x154   : > { %2720 = vrot.lane.b32.xlu0 %v2632_v44, %s5520_s27  ;;  %v7126_v44 = vrot.slane %v2648_v63, 7  ;;  %v7142_v63 = vcombine.low %v4984_v58, %v4985_v54  ;;  %v2665_v58 = vshll.u32 %v7132_v30, 16 }
 0x155   : > { %9484 = vst [vmem:[#allocation88_spill] sm:$0xff] %v7161_v32 }
 0x156   : > { %2726 = vrot.lane.b32.xlu1 %v7093_v37, %s5520_s27  ;;  %9480 = vst [vmem:[#allocation91_spill] sm:$0xff] %v7126_v44  ;;  %9482 = vst [vmem:[#allocation108_spill] sm:$0xff] %v7142_v63  ;;  %v4988_v37 = vld [vmem:[%s5574_s26 + $0xb8] sm:$0xf]  ;;  %v2667_v22 = vor.u32 %v2665_v58, %v7161_v32 }
 0x157   : > { %v7136_v21 = vpop.permute.xlu1 %1755  ;;  %v7138_v55 = vpop.permute.xlu0 %1753  ;;  %v7164_v54 = vcombine.low %v4987_v5, %v4988_v37 }
 0x158   : > { %2724 = vrot.lane.b32.xlu0 %v2639_v1, %s5520_s27  ;;  %v2653_v1 = vor.u32 %v2651_v14, %v7126_v44  ;;  %v2660_v14 = vor.u32 %v2658_v10, %v7146_v9  ;;  %v2672_v10 = vshll.u32 %v7142_v63, 16 }
 0x159   : > { %9485 = vst [vmem:[#allocation64_spill] sm:$0xff] %v7164_v54  ;;  %v2676_v5 = vshrl.u32 %v7164_v54, 16  ;;  %v2679_v58 = vshll.u32 %v7164_v54, 16 }
 0x15a   : > { %2730 = vrot.lane.b32.xlu1 %v7113_v8, %s5520_s27  ;;  %v4990_v8 = vld [vmem:[%s5574_s26 + $0xc0] sm:$0xf] }
 0x15b   : > { %v7150_v61 = vpop.permute.xlu1 %1759  ;;  %v7154_v53 = vpop.permute.xlu0 %1757  ;;  %v7180_v37 = vcombine.low %v4990_v8, %v4991_v34 }
 0x15c   : > { %2728 = vrot.lane.b32.xlu0 %v2646_v3, %s5520_s27  ;;  %v2669_v3 = vshrl.u32 %v7142_v63, 16 }
 0x15d   : > { %9488 = vst [vmem:[#allocation114_spill] sm:$0xff] %v7180_v37  ;;  %v2683_v34 = vshrl.u32 %v7180_v37, 16 }
 0x15e   : > { %2734 = vrot.lane.b32.xlu1 %v7126_v44, %s5520_s27  ;;  %v4993_v44 = vld [vmem:[%s5574_s26 + $0xcc] sm:$0xf] }
 0x15f   : > { %v7166_v62 = vpop.permute.xlu1 %1763  ;;  %v7170_v56 = vpop.permute.xlu0 %1761  ;;  %v7196_v8 = vcombine.low %v4993_v44, %v4994_v4 }
 0x160   : > { %2732 = vrot.lane.b32.xlu0 %v2653_v1, %s5520_s27  ;;  %9486 = vst [vmem:[#allocation81_spill] sm:$0xff] %v7166_v62  ;;  %v7174_v1 = vrot.slane %v2669_v3, 7 }
 0x161   : > { %9492 = vst [vmem:[#allocation84_spill] sm:$0xff] %v7196_v8  ;;  %v2690_v54 = vshrl.u32 %v7196_v8, 16 }
 0x162   : > { %2738 = vrot.lane.b32.xlu1 %v7146_v9, %s5520_s27  ;;  %9487 = vst [vmem:[#allocation112_spill] sm:$0xff] %v7174_v1  ;;  %v2674_v3 = vor.u32 %v2672_v10, %v7174_v1 }
 0x163   : > { %v7182_v30 = vpop.permute.xlu1 %1767  ;;  %v7186_v45 = vpop.permute.xlu0 %1765 }
 0x164   : > { %2736 = vrot.lane.b32.xlu0 %v2660_v14, %s5520_s27  ;;  %9489 = vst [vmem:[#allocation97_spill] sm:$0xff] %v7182_v30  ;;  %9490 = vst [vmem:[#allocation94_spill] sm:$0xff] %v7186_v45  ;;  %v7192_v14 = vrot.slane %v2676_v5, 7  ;;  %v2686_v5 = vshll.u32 %v7180_v37, 16  ;;  %v9499_v30 = vld [vmem:[#allocation4_spill] sm:$0xff] }
 0x165   : > { %v4887_v45 = vld [vmem:[%s5574_s26 + $0x3c] sm:$0xe] }
 0x166   : > { %2742 = vrot.lane.b32.xlu1 %v7161_v32, %s5520_s27  ;;  %9491 = vst [vmem:[#allocation83_spill] sm:$0xff] %v7192_v14  ;;  %v2681_v10 = vor.u32 %v2679_v58, %v7192_v14 }
 0x167   : > { %v7198_v63 = vpop.permute.xlu1 %1771  ;;  %v7200_v9 = vpop.permute.xlu0 %1769 }
 0x168   : > { %2740 = vrot.lane.b32.xlu0 %v2667_v22, %s5520_s27  ;;  %9493 = vst [vmem:[#allocation116_spill] sm:$0xff] %v7198_v63  ;;  %9494 = vst [vmem:[#allocation118_spill] sm:$0xff] %v7200_v9  ;;  %v7206_v22 = vrot.slane %v2683_v34, 7  ;;  %v4883_v63 = vld [vmem:[%s5574_s26 + $0xc] sm:$0xe] }
 0x16a   : > { %2746 = vrot.lane.b32.xlu1 %v7174_v1, %s5520_s27  ;;  %9495 = vst [vmem:[#allocation102_spill] sm:$0xff] %v7206_v22  ;;  %v2688_v44 = vor.u32 %v2686_v5, %v7206_v22  ;;  %v7214_v1 = vrot.slane %v2690_v54, 7 }
 0x16b   : > { %v1824_v32 = vpop.permute.xlu1 %1823  ;;  %v1822_v4 = vpop.permute.xlu0 %1821 }
 0x16c   : > { %2744 = vrot.lane.b32.xlu0 %v2674_v3, %s5520_s27  ;;  %9496 = vst [vmem:[#allocation100_spill] sm:$0xff] %v7214_v1  ;;  %v2693_v3 = vshll.u32 %v7196_v8, 16 }
 0x16e   : > { %2750 = vrot.lane.b32.xlu1 %v7192_v14, %s5520_s27  ;;  %v2695_v37 = vor.u32 %v2693_v3, %v7214_v1 }
 0x16f   : > { %v7217_v58 = vpop.permute.xlu1 %1827  ;;  %v1826_v34 = vpop.permute.xlu0 %1825 }
 0x170   : > { %2748 = vrot.lane.b32.xlu0 %v2681_v10, %s5520_s27 }
 0x172   : > { %2754 = vrot.lane.b32.xlu1 %v7206_v22, %s5520_s27  ;;  %v5465_v22 = vld [vmem:[%s5574_s26 + $0x20] ss:$0 sps:$4 sm:$0x11]  }
 0x173   : > { %v7223_v14 = vpop.permute.xlu1 %1831  ;;  %v7225_v10 = vpop.permute.xlu0 %1829 }
 0x174   : > { %2752 = vrot.lane.b32.xlu0 %v2688_v44, %s5520_s27  ;;  %v5464_v44 = vld [vmem:[%s5574_s26 + $0x14] ss:$0 sps:$4 sm:$0x11]  }
 0x176   : > { %2758 = vrot.lane.b32.xlu1 %v7214_v1, %s5520_s27 }
 0x177   : > { %v7230_v54 = vpop.permute.xlu1 %1835  ;;  %v7232_v5 = vpop.permute.xlu0 %1833 }
 0x178   : > { %2756 = vrot.lane.b32.xlu0 %v2695_v37, %s5520_s27  ;;  %v4884_v37 = vld [vmem:[%s5574_s26 + $0x18] sm:$0xe] }
 0x179   : > { %v7255_v9 = vcombine.low %v4884_v37, %v5467_v18  ;;  %v9502_v37 = vld [vmem:[#allocation5_spill] sm:$0xff] }
 0x17a   : > { %2762 = vrot.lane.b32.xlu1 %v5464_v44, %s5521_s28 }
 0x17b   : > { %v7238_v3 = vpop.permute.xlu1 %1839  ;;  %v7240_v8 = vpop.permute.xlu0 %1837  ;;  %v1954_v18 = vsel %vm1022_vm1, %v7255_v9, %v9368_v12  ;;  %v1956_v12 = vsel %vm1022_vm1, %v5465_v22, %v7084_v28  ;;  %v9504_v28 = vld [vmem:[#allocation9_spill] sm:$0xff] }
 0x17c   : > { %2760 = vrot.lane.b32.xlu0 %v9360_v36, %s5521_s28  ;;  %v5466_v36 = vld [vmem:[%s5574_s26 + $0x2c] ss:$0 sps:$4 sm:$0x11]   ;;  %v2017_v62 = vsel %vm1103_vm2, %v1954_v18, %v1824_v32  ;;  %v7298_v32 = vcombine.low %v4887_v45, %v5473_v33  ;;  %v1964_v33 = vsel %vm1022_vm1, %v5469_v43, %v7100_v39 }
 0x17d   : > { %v2064_v18 = vsel %vm1168_vm3, %v2017_v62, %v6623_v40  ;;  %v9507_v62 = vld [vmem:[#allocation101_spill] sm:$0xff] }
 0x17e   : > { %2766 = vrot.lane.b32.xlu1 %v5465_v22, %s5521_s28  ;;  %v9505_v22 = vld [vmem:[#allocation67_spill] sm:$0xff] }
 0x17f   : > { %v7247_v1 = vpop.permute.xlu1 %1843  ;;  %v7250_v16 = vpop.permute.xlu0 %1841 }
 0x180   : > { %2764 = vrot.lane.b32.xlu0 %v9369_v42, %s5521_s28  ;;  %9497 = vst [vmem:[#allocation86_spill] sm:$0xff] %v7247_v1  ;;  %9498 = vst [vmem:[#allocation120_spill] sm:$0xff] %v7250_v16  ;;  %v7260_v42 = vcombine.low %v4883_v63, %v5468_v49  ;;  %v4885_v1 = vld [vmem:[%s5574_s26 + $0x24] sm:$0xe]  ;;  %v5470_v63 = vld [vmem:[%s5574_s26 + $0x28] sm:$0xf]  ;;  %v1952_v16 = vsel %vm1022_vm1, %v5464_v44, %v7086_v51 }
 0x182   : > { %2770 = vrot.lane.b32.xlu1 %v5466_v36, %s5521_s28 }
 0x183   : > { %v7262_v29 = vpop.permute.xlu1 %1847  ;;  %v7265_v13 = vpop.permute.xlu0 %1845 }
 0x184   : > { %2768 = vrot.lane.b32.xlu0 %v9499_v30, %s5521_s28  ;;  %9500 = vst [vmem:[#allocation123_spill] sm:$0xff] %v7262_v29  ;;  %9501 = vst [vmem:[#allocation89_spill] sm:$0xff] %v7265_v13  ;;  %v9503_v30 = vld [vmem:[#allocation63_spill] sm:$0xff]  ;;  %v7278_v29 = vcombine.low %v4885_v1, %v5470_v63  ;;  %v4886_v13 = vld [vmem:[%s5574_s26 + $0x30] sm:$0xe] }
 0x185   : > { %v1950_v49 = vsel %vm1022_vm1, %v7260_v42, %v9503_v30  ;;  %v5471_v30 = vld [vmem:[%s5574_s26 + $0x44] ss:$0 sps:$4 sm:$0x11]   ;;  %v5472_v1 = vld [vmem:[%s5574_s26 + $0x34] sm:$0xf] }
 0x186   : > { %2774 = vrot.lane.b32.xlu1 %v5469_v43, %s5521_s28  ;;  %v2014_v19 = vsel %vm1103_vm2, %v1950_v49, %v1822_v4  ;;  %v7295_v63 = vcombine.low %v4886_v13, %v5472_v1  ;;  %v1958_v51 = vsel %vm1022_vm1, %v7278_v29, %v9505_v22  ;;  %v9506_v4 = vld [vmem:[#allocation51_spill] sm:$0xff]  ;;  %v2018_v13 = vsel %vm1103_vm2, %v1956_v12, %v6232_v38  ;;  %v5474_v12 = vld [vmem:[%s5574_s26 + $0x50] ss:$0 sps:$4 sm:$0x11]  }
 0x187   : > { %v2061_v44 = vsel %vm1168_vm3, %v2014_v19, %v9506_v4  ;;  %v2020_v40 = vsel %vm1103_vm2, %v1958_v51, %v1826_v34  ;;  %v2015_v1 = vsel %vm1103_vm2, %v1952_v16, %v9507_v62  ;;  %v1960_v19 = vsel %vm1022_vm1, %v5466_v36, %v7104_v41  ;;  %v9508_v34 = vld [vmem:[#allocation13_spill] sm:$0xff]  ;;  %v9509_v51 = vld [vmem:[#allocation68_spill] sm:$0xff] }
 0x188   : > { %2772 = vrot.lane.b32.xlu0 %v9502_v37, %s5521_s28  ;;  %v7283_v17 = vpop.permute.xlu1 %1851  ;;  %v2145_v22 = vrot.slane %v2064_v18, 1  ;;  %v2142_v43 = vrot.slane %v2061_v44, 1  ;;  %v1962_v16 = vsel %vm1022_vm1, %v7295_v63, %v9509_v51  ;;  %v2067_v41 = vsel %vm1168_vm3, %v2020_v40, %v6661_v0  ;;  %v4888_v44 = vld [vmem:[%s5574_s26 + $0x48] sm:$0xe] }
 0x189   : > { %v2021_v62 = vsel %vm1103_vm2, %v1960_v19, %v6247_v57  ;;  %v1968_v0 = vsel %vm1022_vm1, %v5471_v30, %v7122_v23  ;;  %v2023_v40 = vsel %vm1103_vm2, %v1962_v16, %v7217_v58  ;;  %v2148_v57 = vrot.slane %v2067_v41, 1  ;;  %v5462_v23 = vld [vmem:[%s9001_s3] sm:$0xff]   ;;  %v5476_v58 = vld [vmem:[%s5574_s26 + $0x4c] sm:$0xf] }
 0x18a   : > { %v7288_v37 = vpop.permute.xlu0 %1849  ;;  %2778 = vrot.lane.b32.xlu1 %v5471_v30, %s5521_s28  ;;  %v7358_v30 = vcombine.low %v4888_v44, %v5476_v58  ;;  %5234 = vmatprep.subr.bf16.mxu0 %v5462_v23  ;;  %v9511_v44 = vld [vmem:[#allocation20_spill] sm:$0xff] }
 0x18b   : > { %5235 = vmatpush3.bf16.msra.mxu0 %v5462_v23 }
 0x18c   : > { %2776 = vrot.lane.b32.xlu0 %v9504_v28, %s5521_s28  ;;  %v1920_v49 = vpop.permute.xlu1 %1919 }
 0x18d   : > { %v2066_v45 = vsel %vm1168_vm3, %v2018_v13, %v1920_v49  ;;  %v9510_v13 = vld [vmem:[#allocation71_spill] sm:$0xff] }
 0x18e   : > { %v1918_v28 = vpop.permute.xlu0 %1917  ;;  %v2146_v4 = vrot.slane %v2066_v45, 1  ;;  %2782 = vrot.lane.b32.xlu1 %v5474_v12, %s5521_s28  ;;  %v1966_v49 = vsel %vm1022_vm1, %v7298_v32, %v9510_v13  ;;  %v2024_v45 = vsel %vm1103_vm2, %v1964_v33, %v9393_v15  ;;  %v5475_v15 = vld [vmem:[%s5574_s26 + $0x5c] ss:$0 sps:$4 sm:$0x11]  }
 0x18f   : > { %v2063_v38 = vsel %vm1168_vm3, %v2015_v1, %v1918_v28  ;;  %v2026_v33 = vsel %vm1103_vm2, %v1966_v49, %v7225_v10  ;;  %v2070_v10 = vsel %vm1168_vm3, %v2023_v40, %v6705_v26  ;;  %v5478_v13 = vld [vmem:[%s5574_s26 + $0x68] ss:$0 sps:$4 sm:$0x11]   ;;  %v1972_v26 = vsel %vm1022_vm1, %v5474_v12, %v7118_v47  ;;  %v4890_v40 = vld [vmem:[%s5574_s26 + $0x60] sm:$0xe] }
 0x190   : > { %v2143_v39 = vrot.slane %v2063_v38, 1  ;;  %2780 = vrot.lane.b32.xlu0 %v9508_v34, %s5521_s28  ;;  %v1924_v36 = vpop.permute.xlu1 %1923  ;;  %v2147_v18 = vsel %vm2141_vm6, %v2145_v22, %v2146_v4  ;;  %v4889_v38 = vld [vmem:[%s5574_s26 + $0x54] sm:$0xe]  ;;  %v2073_v41 = vsel %vm1168_vm3, %v2026_v33, %v6747_v24  ;;  %v7381_v24 = vld [vmem:[%s5574_s26 + $0x2c] ss:$0 sps:$4 sm:$0x11]  }
 0x191   : > { %v2072_v19 = vsel %vm1168_vm3, %v2024_v45, %v1924_v36  ;;  %v2151_v45 = vrot.slane %v2070_v10, 1 }
 0x192   : > { %v1922_v1 = vpop.permute.xlu0 %1921  ;;  %v2144_v28 = vsel %vm2141_vm6, %v2142_v43, %v2143_v39  ;;  %2786 = vrot.lane.b32.xlu1 %v5475_v15, %s5521_s28  ;;  %v5477_v39 = vld [vmem:[%s5574_s26 + $0x58] sm:$0xf]  ;;  %v2152_v36 = vrot.slane %v2072_v19, 1 }
 0x193   : > { %v2069_v22 = vsel %vm1168_vm3, %v2021_v62, %v1922_v1  ;;  %5202 = vmatprep.mubr.msk.bf16.mxu1 %vm1402_vm5, %v2144_v28  ;;  %v7361_v34 = vcombine.low %v4889_v38, %v5477_v39  ;;  %v7384_v1 = vld [vmem:[%s5574_s26 + $0x20] ss:$0 sps:$4 sm:$0x11]   ;;  %v9512_v28 = vld [vmem:[#allocation72_spill] sm:$0xff]  ;;  %v9514_v19 = vld [vmem:[#allocation17_spill] sm:$0xff] }
 0x194   : > { %v2149_v4 = vrot.slane %v2069_v22, 1  ;;  %2784 = vrot.lane.b32.xlu0 %v9380_v48, %s5521_s28  ;;  %5203 = vmatmul.mubr.msk.bf16.vlgmr.msra.gmra.mxu1 %vm1402_vm5, %v2147_v18  ;;  %v1928_v43 = vpop.permute.xlu1 %1927  ;;  %v2027_v48 = vsel %vm1103_vm2, %v1968_v0, %v9403_v50  ;;  %v1976_v50 = vsel %vm1022_vm1, %v5475_v15, %v7138_v55  ;;  %v1970_v38 = vsel %vm1022_vm1, %v7358_v30, %v9512_v28  ;;  %v9513_v0 = vld [vmem:[#allocation74_spill] sm:$0xff]  ;;  %v4891_v22 = vld [vmem:[%s5574_s26 + $0x6c] sm:$0xe] }
 0x195   : > { %v1974_v47 = vsel %vm1022_vm1, %v7361_v34, %v9513_v0  ;;  %v2154_v55 = vrot.slane %v2073_v41, 1  ;;  %v2029_v15 = vsel %vm1103_vm2, %v1970_v38, %v7223_v14  ;;  %v2033_v33 = vsel %vm1103_vm2, %v1976_v50, %v9419_v52  ;;  %v9515_v39 = vld [vmem:[#allocation10_spill] sm:$0xff]  ;;  %v9517_v38 = vld [vmem:[#allocation7_spill] sm:$0xff] }
 0x196   : > { %v1926_v51 = vpop.permute.xlu0 %1925  ;;  %v2150_v16 = vsel %vm2141_vm6, %v2148_v57, %v2149_v4  ;;  %2790 = vrot.lane.b32.xlu1 %v5478_v13, %s5521_s28  ;;  %v2030_v57 = vsel %vm1103_vm2, %v1972_v26, %v9411_v35  ;;  %v2153_v4 = vsel %vm2141_vm6, %v2151_v45, %v2152_v36  ;;  %v2032_v23 = vsel %vm1103_vm2, %v1974_v47, %v7232_v5  ;;  %v7434_v45 = vld [vmem:[%s5574_s26 + $0x74] ss:$0 sps:$4 sm:$0x11]  }
 0x197   : > { %v2075_v18 = vsel %vm1168_vm3, %v2027_v48, %v1926_v51  ;;  %5206 = vmatprep.mubr.msk.bf16.mxu1 %vm1402_vm5, %v2150_v16  ;;  %v2078_v58 = vsel %vm1168_vm3, %v2030_v57, %v1928_v43  ;;  %v3540_v14 = vshll.u32 %v7381_v24, 16  ;;  %v3537_v5 = vshll.u32 %v7384_v1, 16  ;;  %v5479_v48 = vld [vmem:[%s5574_s26 + $0x64] sm:$0xf]  ;;  %v5480_v51 = vld [vmem:[%s5574_s26 + $0x70] sm:$0xf] }
 0x198   : > { %v2155_v49 = vrot.slane %v2075_v18, 1  ;;  %2788 = vrot.lane.b32.xlu0 %v9511_v44, %s5521_s28  ;;  %v1932_v62 = vpop.permute.xlu1 %1931  ;;  %v7417_v43 = vcombine.low %v4890_v40, %v5479_v48  ;;  %v7420_v16 = vcombine.low %v4891_v22, %v5480_v51  ;;  %v2076_v41 = vsel %vm1168_vm3, %v2029_v15, %v6782_v20  ;;  %v5463_v18 = vld [vmem:[%s9002_s4] sm:$0xff]  }
 0x199   : > { %v2079_v26 = vsel %vm1168_vm3, %v2032_v23, %v6818_v60  ;;  %v2158_v50 = vrot.slane %v2078_v58, 1  ;;  %v1980_v44 = vsel %vm1022_vm1, %v5478_v13, %v7136_v21  ;;  %v1984_v20 = vsel %vm1022_vm1, %v7434_v45, %v7154_v53  ;;  %5268 = vmatprep.subr.bf16.mxu1 %v5463_v18  ;;  %v9518_v13 = vld [vmem:[#allocation76_spill] sm:$0xff]  ;;  %v9519_v53 = vld [vmem:[#allocation79_spill] sm:$0xff]  ;;  %v4893_v15 = vld [vmem:[%s5574_s26 + $0x84] sm:$0xe] }
 0x19a   : > { %v1930_v12 = vpop.permute.xlu0 %1929  ;;  %2828 = vrot.lane.b32.xlu1 %v9514_v19, %s5522_s7  ;;  %v2156_v35 = vsel %vm2141_vm6, %v2154_v55, %v2155_v49  ;;  %v9516_v49 = vld [vmem:[#allocation6_spill] sm:$0xff]  ;;  %v3542_v60 = vsel %vm1692_vm0, %v6873_v27, %v3540_v14  ;;  %v2157_v0 = vrot.slane %v2076_v41, 1  ;;  %v3539_v21 = vsel %vm1692_vm0, %v6832_v31, %v3537_v5  ;;  %5269 = vmatpush3.bf16.msra.mxu1 %v5463_v18  ;;  %v4892_v27 = vld [vmem:[%s5574_s26 + $0x78] sm:$0xe]  ;;  %v5482_v58 = vld [vmem:[%s5574_s26 + $0x7c] sm:$0xf] }
 0x19b   : > { %v2081_v52 = vsel %vm1168_vm3, %v2033_v33, %v1930_v12  ;;  %v1978_v55 = vsel %vm1022_vm1, %v7417_v43, %v9518_v13  ;;  %v1982_v12 = vsel %vm1022_vm1, %v7420_v16, %v9519_v53  ;;  %v2160_v40 = vrot.slane %v2079_v26, 1  ;;  %v7488_v48 = vld [vmem:[%s5574_s26 + $0x80] ss:$0 sps:$4 sm:$0x11]  }
 0x19c   : > { %2824 = vrot.lane.b32.xlu0 %v9515_v39, %s5522_s7  ;;  %5207 = vmatmul.mubr.msk.bf16.gmra.mxu1 %vm1402_vm5, %v2153_v4  ;;  %v7413_v10 = vpop.permute.xlu1 %1935  ;;  %v2161_v28 = vrot.slane %v2081_v52, 1  ;;  %v2035_v57 = vsel %vm1103_vm2, %v1978_v55, %v7230_v54  ;;  %v2036_v31 = vsel %vm1103_vm2, %v1980_v44, %v9426_v46  ;;  %v2039_v33 = vsel %vm1103_vm2, %v1984_v20, %v6386_v2  ;;  %v7494_v41 = vld [vmem:[%s5574_s26 + $0x8c] ss:$0 sps:$4 sm:$0x11]   ;;  %v9520_v20 = vld [vmem:[#allocation132_spill] sm:$0xff] }
 0x19d   : > { %5210 = vmatprep.mubr.msk.bf16.mxu1 %vm1402_vm5, %v2156_v35  ;;  %v2159_v19 = vsel %vm2141_vm6, %v2157_v0, %v2158_v50  ;;  %v2038_v4 = vsel %vm1103_vm2, %v1982_v12, %v7240_v8  ;;  %v2084_v23 = vsel %vm1168_vm3, %v2036_v31, %v1932_v62  ;;  %v7474_v39 = vcombine.low %v4892_v27, %v5482_v58  ;;  %v5483_v8 = vld [vmem:[%s5574_s26 + $0x88] sm:$0xf]  ;;  %v7538_v53 = vld [vmem:[%s5574_s26 + $0x38] ss:$0 sps:$4 sm:$0x11]  }
 0x19e   : > { %v1934_v36 = vpop.permute.xlu0 %1933  ;;  %2830 = vrot.lane.b32.xlu1 %v9516_v49, %s5522_s7  ;;  %v2162_v46 = vsel %vm2141_vm6, %v2160_v40, %v2161_v28  ;;  %v7477_v35 = vcombine.low %v4893_v15, %v5483_v8  ;;  %v2082_v62 = vsel %vm1168_vm3, %v2035_v57, %v6852_v11  ;;  %v2085_v52 = vsel %vm1168_vm3, %v2038_v4, %v6877_v6  ;;  %v7512_v49 = vld [vmem:[%s5574_s26 + $0x44] ss:$0 sps:$4 sm:$0x11]   ;;  %v5486_v12 = vld [vmem:[%s5574_s26 + $0x94] sm:$0xf] }
 0x19f   : > { %v2087_v54 = vsel %vm1168_vm3, %v2039_v33, %v1934_v36  ;;  %v2164_v5 = vrot.slane %v2084_v23, 1  ;;  %v1988_v51 = vsel %vm1022_vm1, %v7488_v48, %v7150_v61  ;;  %v1992_v11 = vsel %vm1022_vm1, %v7494_v41, %v7170_v56  ;;  %v4894_v56 = vld [vmem:[%s5574_s26 + $0x90] sm:$0xe]  ;;  %v9524_v15 = vld [vmem:[#allocation62_spill] sm:$0xff]  ;;  %v9525_v33 = vld [vmem:[#allocation59_spill] sm:$0xff] }
 0x1a0   : > { %2826 = vrot.lane.b32.xlu0 %v9517_v38, %s5522_s7  ;;  %v7443_v47 = vpop.permute.xlu1 %1939  ;;  %v2167_v36 = vrot.slane %v2087_v54, 1  ;;  %v2163_v6 = vrot.slane %v2082_v62, 1  ;;  %v1990_v61 = vsel %vm1022_vm1, %v7477_v35, %v9417_v59  ;;  %v2166_v26 = vrot.slane %v2085_v52, 1  ;;  %v9521_v59 = vld [vmem:[#allocation103_spill] sm:$0xff]  ;;  %v9527_v54 = vld [vmem:[#allocation81_spill] sm:$0xff]  ;;  %v9528_v62 = vld [vmem:[#allocation94_spill] sm:$0xff] }
 0x1a1   : > { %v2045_v28 = vsel %vm1103_vm2, %v1992_v11, %v9520_v20  ;;  %v7541_v40 = vcombine.low %v4894_v56, %v5486_v12  ;;  %v9526_v23 = vld [vmem:[#allocation15_spill] sm:$0xff]  ;;  %v7562_v8 = vld [vmem:[%s5574_s26 + $0xa4] ss:$0 sps:$4 sm:$0x11]  }
 0x1a2   : > { %v1938_v22 = vpop.permute.xlu0 %1937  ;;  %3587 = vrot.lane.b32.xlu1 %v3542_v60, %s5520_s27  ;;  %v2165_v38 = vsel %vm2141_vm6, %v2163_v6, %v2164_v5  ;;  %v9522_v60 = vld [vmem:[#allocation120_spill] sm:$0xff]  ;;  %v2000_v52 = vsel %vm1022_vm1, %v7562_v8, %v9528_v62  ;;  %v3543_v6 = vshll.u32 %v7538_v53, 16  ;;  %v5491_v62 = vld [vmem:[%s5574_s26 + $0xb8] sm:$0xf] }
 0x1a3   : > { %v2044_v0 = vsel %vm1103_vm2, %v1990_v61, %v9522_v60  ;;  %v2093_v13 = vsel %vm1168_vm3, %v2045_v28, %v1938_v22  ;;  %v3546_v22 = vshll.u32 %v7512_v49, 16  ;;  %v4896_v28 = vld [vmem:[%s5574_s26 + $0xa8] sm:$0xe] }
 0x1a4   : > { %3585 = vrot.lane.b32.xlu0 %v3539_v21, %s5520_s27  ;;  %5211 = vmatmul.mubr.msk.bf16.gmra.mxu1 %vm1402_vm5, %v2159_v19  ;;  %v7471_v2 = vpop.permute.xlu1 %1943  ;;  %v2091_v19 = vsel %vm1168_vm3, %v2044_v0, %v9525_v33  ;;  %v2173_v5 = vrot.slane %v2093_v13, 1  ;;  %v9534_v0 = vld [vmem:[#allocation135_spill] sm:$0xff] }
 0x1a5   : > { %5214 = vmatprep.mubr.msk.bf16.mxu1 %vm1402_vm5, %v2162_v46  ;;  %v7556_v46 = vld [vmem:[%s5574_s26 + $0x98] ss:$0 sps:$4 sm:$0x11]   ;;  %v9536_v13 = vld [vmem:[#allocation11_spill] sm:$0xff] }
 0x1a6   : > { %v7481_v14 = vpop.permute.xlu0 %1941  ;;  %3619 = vrot.lane.b32.xlu1 %v7255_v9, %s5521_s28  ;;  %v1986_v9 = vsel %vm1022_vm1, %v7474_v39, %v9408_v7  ;;  %v2042_v7 = vsel %vm1103_vm2, %v1988_v51, %v6410_v25  ;;  %v2168_v25 = vsel %vm2141_vm6, %v2166_v26, %v2167_v36  ;;  %v1996_v58 = vsel %vm1022_vm1, %v7556_v46, %v9527_v54  ;;  %v9529_v51 = vld [vmem:[#allocation12_spill] sm:$0xff]  ;;  %v9531_v26 = vld [vmem:[#allocation90_spill] sm:$0xff] }
 0x1a7   : > { %v2041_v44 = vsel %vm1103_vm2, %v1986_v9, %v7238_v3  ;;  %v2090_v21 = vsel %vm1168_vm3, %v2042_v7, %v7413_v10  ;;  %v9523_v3 = vld [vmem:[#allocation105_spill] sm:$0xff]  ;;  %v5487_v10 = vld [vmem:[%s5574_s26 + $0xa0] sm:$0xf]  ;;  %v9530_v9 = vld [vmem:[#allocation87_spill] sm:$0xff] }
 0x1a8   : > { %3617 = vrot.lane.b32.xlu0 %v7260_v42, %s5521_s28  ;;  %v7501_v18 = vpop.permute.xlu1 %1947  ;;  %v4895_v42 = vld [vmem:[%s5574_s26 + $0x9c] sm:$0xe]  ;;  %v2088_v57 = vsel %vm1168_vm3, %v2041_v44, %v9524_v15  ;;  %v2170_v4 = vrot.slane %v2090_v21, 1  ;;  %v1994_v61 = vsel %vm1022_vm1, %v7541_v40, %v9530_v9  ;;  %v9532_v7 = vld [vmem:[#allocation3_spill] sm:$0xff]  ;;  %v2048_v21 = vsel %vm1103_vm2, %v1996_v58, %v9534_v0  ;;  %v9542_v9 = vld [vmem:[#allocation70_spill] sm:$0xff] }
 0x1a9   : > { %v7544_v27 = vcombine.low %v4895_v42, %v5487_v10  ;;  %v2169_v11 = vrot.slane %v2088_v57, 1  ;;  %v2172_v42 = vrot.slane %v2091_v19, 1  ;;  %v3548_v20 = vsel %vm1692_vm0, %v9532_v7, %v3546_v22  ;;  %v9537_v10 = vld [vmem:[#allocation89_spill] sm:$0xff]  ;;  %v9538_v22 = vld [vmem:[#allocation8_spill] sm:$0xff]  ;;  %v9544_v7 = vld [vmem:[#allocation118_spill] sm:$0xff] }
 0x1aa   : > { %v7509_v50 = vpop.permute.xlu0 %1945  ;;  %3651 = vrot.lane.b32.xlu1 %v9521_v59, %s5522_s7  ;;  %v4897_v59 = vld [vmem:[%s5574_s26 + $0xb4] sm:$0xe]  ;;  %v2096_v57 = vsel %vm1168_vm3, %v2048_v21, %v7443_v47  ;;  %v5490_v47 = vld [vmem:[%s5574_s26 + $0xac] sm:$0xf]  ;;  %v9545_v0 = vld [vmem:[#allocation93_spill] sm:$0xff] }
 0x1ab   : > { %v1998_v56 = vsel %vm1022_vm1, %v7544_v27, %v9531_v26  ;;  %v2171_v12 = vsel %vm2141_vm6, %v2169_v11, %v2170_v4  ;;  %v2174_v33 = vsel %vm2141_vm6, %v2172_v42, %v2173_v5  ;;  %v7609_v58 = vcombine.low %v4896_v28, %v5490_v47  ;;  %v7622_v26 = vld [vmem:[%s5574_s26 + $0xb0] ss:$0 sps:$4 sm:$0x11]   ;;  %v7628_v42 = vld [vmem:[%s5574_s26 + $0xbc] ss:$0 sps:$4 sm:$0x11]  }
 0x1ac   : > { %3649 = vrot.lane.b32.xlu0 %v9523_v3, %s5522_s7  ;;  %5215 = vmatmul.mubr.msk.bf16.gmra.mxu1 %vm1402_vm5, %v2165_v38  ;;  %v7535_v55 = vpop.permute.xlu1 %2698  ;;  %v9533_v38 = vld [vmem:[#allocation86_spill] sm:$0xff]  ;;  %v9535_v3 = vld [vmem:[#allocation137_spill] sm:$0xff]  ;;  %v2050_v15 = vsel %vm1103_vm2, %v1998_v56, %v9537_v10  ;;  %v2008_v28 = vsel %vm1022_vm1, %v7628_v42, %v9544_v7  ;;  %v9546_v21 = vld [vmem:[#allocation96_spill] sm:$0xff] }
 0x1ad   : > { %5218 = vmatprep.mubr.msk.bf16.mxu1 %vm1402_vm5, %v2168_v25  ;;  %v2047_v60 = vsel %vm1103_vm2, %v1994_v61, %v9533_v38  ;;  %v2051_v25 = vsel %vm1103_vm2, %v2000_v52, %v9535_v3  ;;  %v7612_v52 = vcombine.low %v4897_v59, %v5491_v62  ;;  %v2176_v61 = vrot.slane %v2096_v57, 1  ;;  %v9547_v10 = vld [vmem:[#allocation123_spill] sm:$0xff]  ;;  %v9554_v7 = vld [vmem:[#allocation116_spill] sm:$0xff] }
 0x1ae   : > { %v7548_v31 = vpop.permute.xlu0 %2696  ;;  %2836 = vrot.lane.b32.xlu1 %v9526_v23, %s5522_s7  ;;  %v2099_v19 = vsel %vm1168_vm3, %v2051_v25, %v7481_v14  ;;  %v9539_v23 = vld [vmem:[#allocation57_spill] sm:$0xff]  ;;  %v2097_v14 = vsel %vm1168_vm3, %v2050_v15, %v9542_v9  ;;  %v9548_v57 = vld [vmem:[#allocation139_spill] sm:$0xff] }
 0x1af   : > { %v3545_v54 = vsel %vm1692_vm0, %v9539_v23, %v3543_v6  ;;  %9540 = vst [vmem:[#allocation130_spill] sm:$0xff] %v7612_v52  ;;  %v9543_v6 = vld [vmem:[#allocation97_spill] sm:$0xff]  ;;  %v2179_v59 = vrot.slane %v2099_v19, 1  ;;  %v2006_v3 = vsel %vm1022_vm1, %v7612_v52, %v9546_v21  ;;  %v2178_v25 = vrot.slane %v2097_v14, 1  ;;  %v9556_v21 = vld [vmem:[#allocation99_spill] sm:$0xff] }
 0x1b0   : > { %2832 = vrot.lane.b32.xlu0 %v9529_v51, %s5522_s7  ;;  %v7569_v36 = vpop.permute.xlu1 %2702  ;;  %v9541_v51 = vld [vmem:[#allocation66_spill] sm:$0xff]  ;;  %v2004_v56 = vsel %vm1022_vm1, %v7622_v26, %v9543_v6  ;;  %v9551_v9 = vld [vmem:[#allocation73_spill] sm:$0xff] }
 0x1b1   : > { %v2094_v5 = vsel %vm1168_vm3, %v2047_v60, %v9541_v51  ;;  %v2180_v62 = vsel %vm2141_vm6, %v2178_v25, %v2179_v59  ;;  %v5046_v52 = vld [vmem:[%s5574_s26 + $0x24] sm:$0xe] }
 0x1b2   : > { %v7578_v44 = vpop.permute.xlu0 %2700  ;;  %2838 = vrot.lane.b32.xlu1 %v9536_v13, %s5522_s7  ;;  %v2175_v38 = vrot.slane %v2094_v5, 1  ;;  %v5494_v5 = vld [vmem:[%s5574_s26 + $0xc4] sm:$0xf] }
 0x1b4   : > { %2834 = vrot.lane.b32.xlu0 %v9538_v22, %s5522_s7  ;;  %5219 = vmatmul.mubr.msk.bf16.gmra.mxu1 %vm1402_vm5, %v2171_v12  ;;  %v7604_v4 = vpop.permute.xlu1 %2706  ;;  %v4898_v12 = vld [vmem:[%s5574_s26 + $0xc0] sm:$0xe]  ;;  %v2054_v22 = vsel %vm1103_vm2, %v2004_v56, %v9548_v57  ;;  %v2177_v23 = vsel %vm2141_vm6, %v2175_v38, %v2176_v61  ;;  %v7679_v56 = vld [vmem:[%s5574_s26 + $0xc8] ss:$0 sps:$4 sm:$0x11]   ;;  %v9555_v38 = vld [vmem:[#allocation109_spill] sm:$0xff] }
 0x1b5   : > { %5222 = vmatprep.mubr.msk.bf16.mxu1 %vm1402_vm5, %v2174_v33  ;;  %v9549_v33 = vld [vmem:[#allocation141_spill] sm:$0xff]  ;;  %v2102_v47 = vsel %vm1168_vm3, %v2054_v22, %v7471_v2  ;;  %v9557_v57 = vld [vmem:[#allocation50_spill] sm:$0xff] }
 0x1b6   : > { %v7616_v11 = vpop.permute.xlu0 %2704  ;;  %3591 = vrot.lane.b32.xlu1 %v3548_v20, %s5520_s27  ;;  %v2002_v20 = vsel %vm1022_vm1, %v7609_v58, %v9545_v0  ;;  %v2057_v19 = vsel %vm1103_vm2, %v2008_v28, %v9549_v33  ;;  %v2182_v6 = vrot.slane %v2102_v47, 1  ;;  %v2012_v28 = vsel %vm1022_vm1, %v7679_v56, %v9554_v7  ;;  %v7701_v33 = vld [vmem:[%s5574_s26 + $0x50] ss:$0 sps:$4 sm:$0x11]   ;;  %v9559_v47 = vld [vmem:[#allocation18_spill] sm:$0xff] }
 0x1b7   : > { %v2053_v15 = vsel %vm1103_vm2, %v2002_v20, %v9547_v10  ;;  %v2105_v51 = vsel %vm1168_vm3, %v2057_v19, %v7509_v50  ;;  %v9553_v50 = vld [vmem:[#allocation107_spill] sm:$0xff]  ;;  %v2060_v22 = vsel %vm1103_vm2, %v2012_v28, %v9557_v57  ;;  %v9558_v19 = vld [vmem:[#allocation22_spill] sm:$0xff] }
 0x1b8   : > { %3589 = vrot.lane.b32.xlu0 %v3545_v54, %s5520_s27  ;;  %v7634_v60 = vpop.permute.xlu1 %2710  ;;  %v2056_v54 = vsel %vm1103_vm2, %v2006_v3, %v7288_v37  ;;  %v7668_v37 = vcombine.low %v4898_v12, %v5494_v5  ;;  %v2100_v2 = vsel %vm1168_vm3, %v2053_v15, %v9551_v9  ;;  %v2185_v59 = vrot.slane %v2105_v51, 1  ;;  %v7692_v12 = vld [vmem:[%s5574_s26 + $0x5c] ss:$0 sps:$4 sm:$0x11]  }
 0x1b9   : > { %v2181_v0 = vrot.slane %v2100_v2, 1  ;;  %v3549_v5 = vshll.u32 %v7701_v33, 16  ;;  %v9561_v9 = vld [vmem:[#allocation85_spill] sm:$0xff] }
 0x1ba   : > { %v7642_v13 = vpop.permute.xlu0 %2708  ;;  %3623 = vrot.lane.b32.xlu1 %v7295_v63, %s5521_s28  ;;  %9550 = vst [vmem:[#allocation92_spill] sm:$0xff] %v7668_v37  ;;  %v2010_v3 = vsel %vm1022_vm1, %v7668_v37, %v9556_v21 }
 0x1bb   : > { %v2059_v15 = vsel %vm1103_vm2, %v2010_v3, %v7283_v17 }
 0x1bc   : > { %3621 = vrot.lane.b32.xlu0 %v7278_v29, %s5521_s28  ;;  %5223 = vmatmul.mubr.msk.bf16.gmra.mxu1 %vm1402_vm5, %v2177_v23  ;;  %v7665_v63 = vpop.permute.xlu1 %2714  ;;  %v9552_v29 = vld [vmem:[#allocation75_spill] sm:$0xff]  ;;  %v2183_v23 = vsel %vm2141_vm6, %v2181_v0, %v2182_v6  ;;  %v2106_v2 = vsel %vm1168_vm3, %v2059_v15, %v9561_v9  ;;  %v9563_v6 = vld [vmem:[#allocation14_spill] sm:$0xff] }
 0x1bd   : > { %5226 = vmatprep.mubr.msk.bf16.mxu1 %vm1402_vm5, %v2180_v62  ;;  %v2103_v61 = vsel %vm1168_vm3, %v2056_v54, %v9552_v29  ;;  %v2108_v54 = vsel %vm1168_vm3, %v2060_v22, %v7501_v18  ;;  %v3552_v62 = vshll.u32 %v7692_v12, 16  ;;  %v2187_v28 = vrot.slane %v2106_v2, 1 }
 0x1be   : > { %v7672_v14 = vpop.permute.xlu0 %2712  ;;  %3655 = vrot.lane.b32.xlu1 %v9553_v50, %s5522_s7  ;;  %v2184_v25 = vrot.slane %v2103_v61, 1  ;;  %v2188_v18 = vrot.slane %v2108_v54, 1  ;;  %v9562_v61 = vld [vmem:[#allocation19_spill] sm:$0xff]  ;;  %v9564_v50 = vld [vmem:[#allocation16_spill] sm:$0xff] }
 0x1bf   : > { %v3554_v7 = vsel %vm1692_vm0, %v9564_v50, %v3552_v62  ;;  %v9578_v62 = vld [vmem:[#allocation25_spill] sm:$0xff]  ;;  %v9583_v50 = vld [vmem:[#allocation104_spill] sm:$0xff] }
 0x1c0   : > { %3653 = vrot.lane.b32.xlu0 %v9555_v38, %s5522_s7  ;;  %v7686_v20 = vpop.permute.xlu1 %2718  ;;  %v2186_v17 = vsel %vm2141_vm6, %v2184_v25, %v2185_v59  ;;  %v9566_v38 = vld [vmem:[#allocation2_spill] sm:$0xff]  ;;  %v2189_v3 = vsel %vm2141_vm6, %v2187_v28, %v2188_v18 }
 0x1c1   : > { %v3551_v0 = vsel %vm1692_vm0, %v9566_v38, %v3549_v5  ;;  %v9585_v38 = vld [vmem:[#allocation56_spill] sm:$0xff] }
 0x1c2   : > { %v7694_v10 = vpop.permute.xlu0 %2716  ;;  %2844 = vrot.lane.b32.xlu1 %v9558_v19, %s5522_s7  ;;  %v9571_v19 = vld [vmem:[#allocation111_spill] sm:$0xff] }
 0x1c4   : > { %2840 = vrot.lane.b32.xlu0 %v9559_v47, %s5522_s7  ;;  %5227 = vmatmul.mubr.msk.bf16.gmra.mxu1 %vm1402_vm5, %v2183_v23  ;;  %v7714_v51 = vpop.permute.xlu1 %2722  ;;  %v9572_v23 = vld [vmem:[#allocation113_spill] sm:$0xff]  ;;  %v7756_v47 = vld [vmem:[%s5574_s26 + $0x74] ss:$0 sps:$4 sm:$0x11]  }
 0x1c5   : > { %5230 = vmatprep.mubr.msk.bf16.mxu1 %vm1402_vm5, %v2186_v17  ;;  %9560 = vst [vmem:[#allocation122_spill] sm:$0xff] %v7714_v51  ;;  %9574 = vst [vmem:[#allocation98_spill] sm:$0xff] %v7756_v47  ;;  %v3558_v5 = vshll.u32 %v7756_v47, 16  ;;  %v9621_v47 = vld [vmem:[#allocation88_spill] sm:$0xff] }
 0x1c6   : > { %v7719_v29 = vpop.permute.xlu0 %2720  ;;  %2846 = vrot.lane.b32.xlu1 %v9562_v61, %s5522_s7  ;;  %v9581_v61 = vld [vmem:[#allocation26_spill] sm:$0xff] }
 0x1c8   : > { %2842 = vrot.lane.b32.xlu0 %v9563_v6, %s5522_s7  ;;  %v7727_v59 = vpop.permute.xlu1 %2726  ;;  %v9582_v6 = vld [vmem:[#allocation23_spill] sm:$0xff] }
 0x1c9   : > { %9565 = vst [vmem:[#allocation134_spill] sm:$0xff] %v7727_v59 }
 0x1ca   : > { %v7731_v21 = vpop.permute.xlu0 %2724  ;;  %3595 = vrot.lane.b32.xlu1 %v3554_v7, %s5520_s27  ;;  %v3560_v7 = vsel %vm1692_vm0, %v9583_v50, %v3558_v5  ;;  %v9591_v5 = vld [vmem:[#allocation115_spill] sm:$0xff] }
 0x1cc   : > { %3593 = vrot.lane.b32.xlu0 %v3551_v0, %s5520_s27  ;;  %5231 = vmatmul.mubr.msk.bf16.gmra.mxu1 %vm1402_vm5, %v2189_v3  ;;  %v7737_v25 = vpop.permute.xlu1 %2730 }
 0x1cd   : > { %9567 = vst [vmem:[#allocation136_spill] sm:$0xff] %v7737_v25  ;;  %v7889_v25 = vld [vmem:[%s5574_s26 + $0xa4] ss:$0 sps:$4 sm:$0x11]  }
 0x1ce   : > { %v7739_v15 = vpop.permute.xlu0 %2728  ;;  %3627 = vrot.lane.b32.xlu1 %v7358_v30, %s5521_s28  ;;  %v7761_v30 = vld [vmem:[%s5574_s26 + $0x68] ss:$0 sps:$4 sm:$0x11]   ;;  %9616 = vst [vmem:[#allocation6_spill] sm:$0xff] %v7889_v25 }
 0x1cf   : > { %9568 = vst [vmem:[#allocation95_spill] sm:$0xff] %v7739_v15  ;;  %9576 = vst [vmem:[#allocation142_spill] sm:$0xff] %v7761_v30  ;;  %v3555_v2 = vshll.u32 %v7761_v30, 16 }
 0x1d0   : > { %3625 = vrot.lane.b32.xlu0 %v7298_v32, %s5521_s28  ;;  %v7745_v57 = vpop.permute.xlu1 %2734  ;;  %v9577_v32 = vld [vmem:[#allocation27_spill] sm:$0xff] }
 0x1d1   : > { %9569 = vst [vmem:[#allocation127_spill] sm:$0xff] %v7745_v57  ;;  %v3557_v0 = vsel %vm1692_vm0, %v9585_v38, %v3555_v2  ;;  %v9592_v2 = vld [vmem:[#allocation117_spill] sm:$0xff]  ;;  %v9597_v38 = vld [vmem:[#allocation30_spill] sm:$0xff] }
 0x1d2   : > { %v7747_v22 = vpop.permute.xlu0 %2732  ;;  %3659 = vrot.lane.b32.xlu1 %v9571_v19, %s5522_s7 }
 0x1d3   : > { %9570 = vst [vmem:[#allocation138_spill] sm:$0xff] %v7747_v22  ;;  %v7894_v22 = vld [vmem:[%s5574_s26 + $0x98] ss:$0 sps:$4 sm:$0x11]  }
 0x1d4   : > { %3657 = vrot.lane.b32.xlu0 %v9572_v23, %s5522_s7  ;;  %v7753_v54 = vpop.permute.xlu1 %2738  ;;  %9617 = vst [vmem:[#allocation7_spill] sm:$0xff] %v7894_v22 }
 0x1d5   : > { %9573 = vst [vmem:[#allocation140_spill] sm:$0xff] %v7753_v54 }
 0x1d6   : > { %v7758_v17 = vpop.permute.xlu0 %2736  ;;  %2852 = vrot.lane.b32.xlu1 %v9577_v32, %s5522_s7 }
 0x1d7   : > { %9575 = vst [vmem:[#allocation126_spill] sm:$0xff] %v7758_v17  ;;  %v9615_v17 = vld [vmem:[#allocation54_spill] sm:$0xff] }
 0x1d8   : > { %2848 = vrot.lane.b32.xlu0 %v9578_v62, %s5522_s7  ;;  %v7768_v9 = vpop.permute.xlu1 %2742 }
 0x1d9   : > { %9579 = vst [vmem:[#allocation52_spill] sm:$0xff] %v7768_v9 }
 0x1da   : > { %v7771_v18 = vpop.permute.xlu0 %2740  ;;  %2854 = vrot.lane.b32.xlu1 %v9581_v61, %s5522_s7 }
 0x1db   : > { %9580 = vst [vmem:[#allocation4_spill] sm:$0xff] %v7771_v18  ;;  %v9614_v18 = vld [vmem:[#allocation36_spill] sm:$0xff] }
 0x1dc   : > { %2850 = vrot.lane.b32.xlu0 %v9582_v6, %s5522_s7  ;;  %v7779_v28 = vpop.permute.xlu1 %2746 }
 0x1dd   : > { %9584 = vst [vmem:[#allocation5_spill] sm:$0xff] %v7779_v28  ;;  %v9603_v28 = vld [vmem:[#allocation91_spill] sm:$0xff] }
 0x1de   : > { %v7783_v3 = vpop.permute.xlu0 %2744  ;;  %3599 = vrot.lane.b32.xlu1 %v3560_v7, %s5520_s27 }
 0x1df   : > { %9586 = vst [vmem:[#allocation63_spill] sm:$0xff] %v7783_v3 }
 0x1e0   : > { %3597 = vrot.lane.b32.xlu0 %v3557_v0, %s5520_s27  ;;  %v7787_v19 = vpop.permute.xlu1 %2750 }
 0x1e1   : > { %9587 = vst [vmem:[#allocation9_spill] sm:$0xff] %v7787_v19 }
 0x1e2   : > { %v7789_v23 = vpop.permute.xlu0 %2748  ;;  %3631 = vrot.lane.b32.xlu1 %v7417_v43, %s5521_s28  ;;  %v9595_v43 = vld [vmem:[#allocation24_spill] sm:$0xff] }
 0x1e3   : > { %9588 = vst [vmem:[#allocation67_spill] sm:$0xff] %v7789_v23 }
 0x1e4   : > { %3629 = vrot.lane.b32.xlu0 %v7361_v34, %s5521_s28  ;;  %v7795_v32 = vpop.permute.xlu1 %2754  ;;  %v9596_v34 = vld [vmem:[#allocation21_spill] sm:$0xff] }
 0x1e5   : > { %9589 = vst [vmem:[#allocation51_spill] sm:$0xff] %v7795_v32  ;;  %v7823_v32 = vld [vmem:[%s5574_s26 + $0x80] ss:$0 sps:$4 sm:$0x11]  }
 0x1e6   : > { %v7797_v62 = vpop.permute.xlu0 %2752  ;;  %3663 = vrot.lane.b32.xlu1 %v9591_v5, %s5522_s7  ;;  %v7820_v5 = vld [vmem:[%s5574_s26 + $0x8c] ss:$0 sps:$4 sm:$0x11]   ;;  %9599 = vst [vmem:[#allocation20_spill] sm:$0xff] %v7823_v32 }
 0x1e7   : > { %9590 = vst [vmem:[#allocation101_spill] sm:$0xff] %v7797_v62  ;;  %9598 = vst [vmem:[#allocation71_spill] sm:$0xff] %v7820_v5  ;;  %v9602_v62 = vld [vmem:[#allocation28_spill] sm:$0xff] }
 0x1e8   : > { %3661 = vrot.lane.b32.xlu0 %v9592_v2, %s5522_s7  ;;  %v7803_v61 = vpop.permute.xlu1 %2758 }
 0x1e9   : > { %9593 = vst [vmem:[#allocation13_spill] sm:$0xff] %v7803_v61 }
 0x1ea   : > { %v7805_v6 = vpop.permute.xlu0 %2756  ;;  %2796 = vrot.lane.b32.xlu1 %v9595_v43, %s5521_s28  ;;  %v9600_v43 = vld [vmem:[#allocation34_spill] sm:$0xff] }
 0x1eb   : > { %9594 = vst [vmem:[#allocation68_spill] sm:$0xff] %v7805_v6  ;;  %v9601_v6 = vld [vmem:[#allocation31_spill] sm:$0xff] }
 0x1ec   : > { %2792 = vrot.lane.b32.xlu0 %v9596_v34, %s5521_s28  ;;  %v7811_v50 = vpop.permute.xlu1 %2762  ;;  %v3564_v34 = vshll.u32 %v7820_v5, 16 }
 0x1ee   : > { %v2761_v7 = vpop.permute.xlu0 %2760  ;;  %2794 = vrot.lane.b32.xlu1 %v7434_v45, %s5521_s28  ;;  %v3561_v45 = vshll.u32 %v7823_v32, 16 }
 0x1f0   : > { %2856 = vrot.lane.b32.xlu0 %v9597_v38, %s5522_s7  ;;  %v7817_v0 = vpop.permute.xlu1 %2766 }
 0x1f2   : > { %v2765_v2 = vpop.permute.xlu0 %2764  ;;  %2798 = vrot.lane.b32.xlu1 %v7488_v48, %s5521_s28  ;;  %v3566_v48 = vsel %vm1692_vm0, %v9603_v28, %v3564_v34  ;;  %v9605_v34 = vld [vmem:[#allocation119_spill] sm:$0xff] }
 0x1f4   : > { %2860 = vrot.lane.b32.xlu0 %v9600_v43, %s5522_s7  ;;  %v7830_v61 = vpop.permute.xlu1 %2770  ;;  %v9604_v43 = vld [vmem:[#allocation82_spill] sm:$0xff] }
 0x1f5   : > { %v3563_v23 = vsel %vm1692_vm0, %v9604_v43, %v3561_v45 }
 0x1f6   : > { %v7833_v38 = vpop.permute.xlu0 %2768  ;;  %2862 = vrot.lane.b32.xlu1 %v9601_v6, %s5522_s7 }
 0x1f8   : > { %2858 = vrot.lane.b32.xlu0 %v9602_v62, %s5522_s7  ;;  %v7841_v19 = vpop.permute.xlu1 %2774 }
 0x1fa   : > { %v7845_v3 = vpop.permute.xlu0 %2772  ;;  %3603 = vrot.lane.b32.xlu1 %v3566_v48, %s5520_s27 }
 0x1fc   : > { %3601 = vrot.lane.b32.xlu0 %v3563_v23, %s5520_s27  ;;  %v7849_v54 = vpop.permute.xlu1 %2778  ;;  %v9606_v23 = vld [vmem:[#allocation121_spill] sm:$0xff] }
 0x1fe   : > { %v7851_v6 = vpop.permute.xlu0 %2776  ;;  %3635 = vrot.lane.b32.xlu1 %v7474_v39, %s5521_s28  ;;  %v9609_v39 = vld [vmem:[#allocation32_spill] sm:$0xff] }
 0x200   : > { %3633 = vrot.lane.b32.xlu0 %v7420_v16, %s5521_s28  ;;  %v7857_v28 = vpop.permute.xlu1 %2782  ;;  %v9610_v16 = vld [vmem:[#allocation29_spill] sm:$0xff] }
 0x202   : > { %v7859_v62 = vpop.permute.xlu0 %2780  ;;  %3667 = vrot.lane.b32.xlu1 %v9605_v34, %s5522_s7  ;;  %v9613_v34 = vld [vmem:[#allocation53_spill] sm:$0xff] }
 0x204   : > { %3665 = vrot.lane.b32.xlu0 %v9606_v23, %s5522_s7  ;;  %v7865_v45 = vpop.permute.xlu1 %2786  ;;  %v2894_v23 = vsel %vm1022_vm1, %v9613_v34, %v7578_v44 }
 0x205   : > { %9607 = vst [vmem:[#allocation72_spill] sm:$0xff] %v7865_v45  ;;  %v5045_v45 = vld [vmem:[%s5574_s26 + $0x18] sm:$0xe] }
 0x206   : > { %v7867_v48 = vpop.permute.xlu0 %2784  ;;  %2804 = vrot.lane.b32.xlu1 %v9609_v39, %s5521_s28  ;;  %v2889_v39 = vsel %vm1022_vm1, %v9615_v17, %v7548_v31  ;;  %v2897_v17 = vsel %vm1022_vm1, %v7381_v24, %v7569_v36 }
 0x207   : > { %9608 = vst [vmem:[#allocation74_spill] sm:$0xff] %v7867_v48  ;;  %v2969_v5 = vsel %vm1103_vm2, %v2889_v39, %v2761_v7  ;;  %v9618_v7 = vld [vmem:[#allocation39_spill] sm:$0xff]  ;;  %v2892_v39 = vsel %vm1022_vm1, %v7384_v1, %v7535_v55 }
 0x208   : > { %2800 = vrot.lane.b32.xlu0 %v9610_v16, %s5521_s28  ;;  %v7873_v43 = vpop.permute.xlu1 %2790  ;;  %v2973_v16 = vsel %vm1103_vm2, %v2894_v23, %v2765_v2  ;;  %v3570_v23 = vshll.u32 %v7889_v25, 16  ;;  %v2971_v36 = vsel %vm1103_vm2, %v2892_v39, %v7811_v50  ;;  %v5496_v39 = vld [vmem:[%s5574_s26 + $0x28] sm:$0xf] }
 0x209   : > { %9611 = vst [vmem:[#allocation17_spill] sm:$0xff] %v7873_v43 }
 0x20a   : > { %v7875_v9 = vpop.permute.xlu0 %2788  ;;  %2802 = vrot.lane.b32.xlu1 %v7494_v41, %s5521_s28 }
 0x20b   : > { %9612 = vst [vmem:[#allocation10_spill] sm:$0xff] %v7875_v9 }
 0x20c   : > { %2864 = vrot.lane.b32.xlu0 %v9614_v18, %s5522_s7  ;;  %v2829_v32 = vpop.permute.xlu1 %2828 }
 0x20d   : > { %v3037_v41 = vsel %vm1168_vm3, %v2973_v16, %v2829_v32 }
 0x20e   : > { %v2825_v57 = vpop.permute.xlu0 %2824  ;;  %v3108_v34 = vshll.u32 %v3037_v41, 16  ;;  %2806 = vrot.lane.b32.xlu1 %v7556_v46, %s5521_s28  ;;  %v3567_v46 = vshll.u32 %v7894_v22, 16  ;;  %v3106_v43 = vshrl.u32 %v3037_v41, 16  ;;  %v9620_v22 = vld [vmem:[#allocation35_spill] sm:$0xff]  ;;  %v9622_v41 = vld [vmem:[#allocation110_spill] sm:$0xff] }
 0x20f   : > { %v3033_v18 = vsel %vm1168_vm3, %v2969_v5, %v2825_v57  ;;  %v2975_v5 = vsel %vm1103_vm2, %v2897_v17, %v7817_v0 }
 0x210   : > { %v3098_v2 = vshll.u32 %v3033_v18, 16  ;;  %2868 = vrot.lane.b32.xlu0 %v9618_v7, %s5522_s7  ;;  %v3110_v16 = vrot.slane %v3108_v34, 1  ;;  %v2831_v15 = vpop.permute.xlu1 %2830  ;;  %v9619_v34 = vld [vmem:[#allocation37_spill] sm:$0xff]  ;;  %v3096_v17 = vshrl.u32 %v3033_v18, 16 }
 0x211   : > { %v3039_v7 = vsel %vm1168_vm3, %v2975_v5, %v2831_v15  ;;  %v5062_v15 = vcombine.low %v5046_v52, %v5496_v39  ;;  %v9626_v39 = vld [vmem:[#allocation55_spill] sm:$0xff] }
 0x212   : > { %v3100_v37 = vrot.slane %v3098_v2, 1  ;;  %v2827_v25 = vpop.permute.xlu0 %2826  ;;  %v3112_v55 = vshll.u32 %v3039_v7, 16  ;;  %2870 = vrot.lane.b32.xlu1 %v9619_v34, %s5522_s7  ;;  %v3572_v2 = vsel %vm1692_vm0, %v9621_v47, %v3570_v23  ;;  %v3111_v5 = vor.u32 %v3110_v16, %v3106_v43 }
 0x213   : > { %v3035_v30 = vsel %vm1168_vm3, %v2971_v36, %v2827_v25  ;;  %v3569_v7 = vsel %vm1692_vm0, %v9622_v41, %v3567_v46  ;;  %v5497_v25 = vld [vmem:[%s5574_s26 + $0x1c] sm:$0xf]  ;;  %v3686_v52 = vsel %vm1022_vm1, %v5062_v15, %v7578_v44 }
 0x214   : > { %v3102_v51 = vshll.u32 %v3035_v30, 16  ;;  %2866 = vrot.lane.b32.xlu0 %v9620_v22, %s5522_s7  ;;  %v3114_v59 = vrot.slane %v3112_v55, 1  ;;  %v3588_v48 = vpop.permute.xlu1 %3587  ;;  %v5061_v36 = vcombine.low %v5045_v45, %v5497_v25  ;;  %v3101_v9 = vor.u32 %v3100_v37, %v3096_v17 }
 0x215   : > { %v3688_v37 = vsel %vm1022_vm1, %v7381_v24, %v3588_v48 }
 0x216   : > { %v3104_v34 = vrot.slane %v3102_v51, 1  ;;  %v3586_v18 = vpop.permute.xlu0 %3585  ;;  %v3115_v30 = vsel %vm1233_vm4, %v3111_v5, %v3114_v59  ;;  %3607 = vrot.lane.b32.xlu1 %v3572_v2, %s5520_s27  ;;  %v3682_v45 = vsel %vm1022_vm1, %v5061_v36, %v7548_v31  ;;  %v3750_v31 = vsel %vm1103_vm2, %v3688_v37, %v7817_v0  ;;  %v9625_v2 = vld [vmem:[#allocation125_spill] sm:$0xff] }
 0x218   : > { %3605 = vrot.lane.b32.xlu0 %v3569_v7, %s5520_s27  ;;  %v3105_v22 = vsel %vm1233_vm4, %v3101_v9, %v3104_v34  ;;  %v3620_v47 = vpop.permute.xlu1 %3619  ;;  %v3684_v9 = vsel %vm1022_vm1, %v7384_v1, %v3586_v18 }
 0x219   : > { %5236 = vmatprep.mubr.msk.bf16.mxu0 %vm1402_vm5, %v3105_v22  ;;  %v3749_v51 = vsel %vm1103_vm2, %v3686_v52, %v3620_v47  ;;  %v3747_v1 = vsel %vm1103_vm2, %v3684_v9, %v7811_v50  ;;  %v2899_v50 = vsel %vm1022_vm1, %v9626_v39, %v7616_v11  ;;  %v2907_v22 = vsel %vm1022_vm1, %v7512_v49, %v7634_v60  ;;  %v9628_v52 = vld [vmem:[#allocation33_spill] sm:$0xff] }
 0x21a   : > { %5237 = vmatmul.mubr.msk.bf16.vlgmr.msra.gmra.mxu0 %vm1402_vm5, %v3115_v30  ;;  %v3618_v59 = vpop.permute.xlu0 %3617  ;;  %3639 = vrot.lane.b32.xlu1 %v7541_v40, %s5521_s28  ;;  %v3796_v44 = vsel %vm1168_vm3, %v3749_v51, %v2829_v32  ;;  %v9623_v32 = vld [vmem:[#allocation124_spill] sm:$0xff]  ;;  %v2977_v7 = vsel %vm1103_vm2, %v2899_v50, %v7833_v38  ;;  %v2902_v47 = vsel %vm1022_vm1, %v7538_v53, %v7604_v4 }
 0x21b   : > { %v3746_v43 = vsel %vm1103_vm2, %v3682_v45, %v3618_v59  ;;  %v3876_v46 = vrot.slane %v3796_v44, 1  ;;  %v2983_v45 = vsel %vm1103_vm2, %v2907_v22, %v7841_v19  ;;  %v5048_v59 = vld [vmem:[%s5574_s26 + $0x3c] sm:$0xe]  ;;  %v2979_v60 = vsel %vm1103_vm2, %v2902_v47, %v7830_v61  ;;  %v9631_v47 = vld [vmem:[#allocation44_spill] sm:$0xff] }
 0x21c   : > { %3637 = vrot.lane.b32.xlu0 %v7477_v35, %s5521_s28  ;;  %v3793_v24 = vsel %vm1168_vm3, %v3746_v43, %v2825_v57  ;;  %v3652_v48 = vpop.permute.xlu1 %3651  ;;  %v9624_v35 = vld [vmem:[#allocation58_spill] sm:$0xff] }
 0x21d   : > { %v3798_v23 = vsel %vm1168_vm3, %v3750_v31, %v3652_v48  ;;  %v2904_v57 = vsel %vm1022_vm1, %v9624_v35, %v7642_v13  ;;  %v3873_v17 = vrot.slane %v3793_v24, 1  ;;  %v5047_v24 = vld [vmem:[%s5574_s26 + $0x30] sm:$0xe] }
 0x21e   : > { %v3650_v16 = vpop.permute.xlu0 %3649  ;;  %v3877_v55 = vrot.slane %v3798_v23, 1  ;;  %3671 = vrot.lane.b32.xlu1 %v9623_v32, %s5522_s7  ;;  %v2981_v15 = vsel %vm1103_vm2, %v2904_v57, %v7845_v3  ;;  %v9627_v3 = vld [vmem:[#allocation38_spill] sm:$0xff]  ;;  %v5499_v57 = vld [vmem:[%s5574_s26 + $0x34] sm:$0xf] }
 0x21f   : > { %v3795_v40 = vsel %vm1168_vm3, %v3747_v1, %v3650_v16  ;;  %v9629_v16 = vld [vmem:[#allocation43_spill] sm:$0xff] }
 0x220   : > { %v3874_v0 = vrot.slane %v3795_v40, 1  ;;  %3669 = vrot.lane.b32.xlu0 %v9625_v2, %s5522_s7  ;;  %v3878_v5 = vsel %vm2141_vm6, %v3876_v46, %v3877_v55  ;;  %v2837_v41 = vpop.permute.xlu1 %2836  ;;  %v5498_v46 = vld [vmem:[%s5574_s26 + $0x40] sm:$0xf] }
 0x221   : > { %v3045_v25 = vsel %vm1168_vm3, %v2981_v15, %v2837_v41  ;;  %v5064_v55 = vcombine.low %v5048_v59, %v5498_v46  ;;  %v8003_v15 = vld [vmem:[%s5574_s26 + $0xb0] ss:$0 sps:$4 sm:$0x11]  }
 0x222   : > { %v2833_v36 = vpop.permute.xlu0 %2832  ;;  %v3875_v34 = vsel %vm2141_vm6, %v3873_v17, %v3874_v0  ;;  %v3128_v18 = vshll.u32 %v3045_v25, 16  ;;  %2812 = vrot.lane.b32.xlu1 %v9627_v3, %s5521_s28  ;;  %v3126_v31 = vshrl.u32 %v3045_v25, 16  ;;  %v5063_v17 = vcombine.low %v5047_v24, %v5499_v57  ;;  %v8000_v0 = vld [vmem:[%s5574_s26 + $0xbc] ss:$0 sps:$4 sm:$0x11]  }
 0x223   : > { %v3041_v30 = vsel %vm1168_vm3, %v2977_v7, %v2833_v36  ;;  %5270 = vmatprep.mubr.msk.bf16.mxu1 %vm1402_vm5, %v3875_v34  ;;  %v3576_v25 = vshll.u32 %v8000_v0, 16  ;;  %v3694_v34 = vsel %vm1022_vm1, %v5064_v55, %v7642_v13 }
 0x224   : > { %v3118_v38 = vshll.u32 %v3041_v30, 16  ;;  %2808 = vrot.lane.b32.xlu0 %v9628_v52, %s5521_s28  ;;  %5271 = vmatmul.mubr.msk.bf16.vlgmr.msra.gmra.mxu1 %vm1402_vm5, %v3878_v5  ;;  %v3130_v37 = vrot.slane %v3128_v18, 1  ;;  %v2839_v51 = vpop.permute.xlu1 %2838  ;;  %v3116_v23 = vshrl.u32 %v3041_v30, 16  ;;  %v9630_v5 = vld [vmem:[#allocation45_spill] sm:$0xff]  ;;  %v3573_v30 = vshll.u32 %v8003_v15, 16 }
 0x225   : > { %v3047_v43 = vsel %vm1168_vm3, %v2983_v45, %v2839_v51 }
 0x226   : > { %v3120_v9 = vrot.slane %v3118_v38, 1  ;;  %v2835_v44 = vpop.permute.xlu0 %2834  ;;  %v3132_v48 = vshll.u32 %v3047_v43, 16  ;;  %2810 = vrot.lane.b32.xlu1 %v7562_v8, %s5521_s28  ;;  %v3131_v40 = vor.u32 %v3130_v37, %v3126_v31  ;;  %v9633_v37 = vld [vmem:[#allocation83_spill] sm:$0xff] }
 0x227   : > { %v3043_v4 = vsel %vm1168_vm3, %v2979_v60, %v2835_v44 }
 0x228   : > { %v3122_v1 = vshll.u32 %v3043_v4, 16  ;;  %2872 = vrot.lane.b32.xlu0 %v9629_v16, %s5522_s7  ;;  %v3134_v32 = vrot.slane %v3132_v48, 1  ;;  %v3592_v35 = vpop.permute.xlu1 %3591  ;;  %v3121_v2 = vor.u32 %v3120_v9, %v3116_v23 }
 0x229   : > { %v3696_v3 = vsel %vm1022_vm1, %v7512_v49, %v3592_v35  ;;  %v3578_v49 = vsel %vm1692_vm0, %v9633_v37, %v3576_v25  ;;  %v5501_v37 = vld [vmem:[%s5574_s26 + $0x4c] sm:$0xf] }
 0x22a   : > { %v3124_v39 = vrot.slane %v3122_v1, 1  ;;  %v3590_v50 = vpop.permute.xlu0 %3589  ;;  %2814 = vrot.lane.b32.xlu1 %v7622_v26, %s5521_s28  ;;  %v3135_v8 = vsel %vm1233_vm4, %v3131_v40, %v3134_v32  ;;  %v3690_v26 = vsel %vm1022_vm1, %v5063_v17, %v7616_v11  ;;  %v9632_v11 = vld [vmem:[#allocation40_spill] sm:$0xff]  ;;  %v3756_v59 = vsel %vm1103_vm2, %v3696_v3, %v7841_v19  ;;  %v9636_v1 = vld [vmem:[#allocation61_spill] sm:$0xff] }
 0x22b   : > { %v3692_v52 = vsel %vm1022_vm1, %v7538_v53, %v3590_v50  ;;  %v9634_v53 = vld [vmem:[#allocation112_spill] sm:$0xff]  ;;  %v2909_v16 = vsel %vm1022_vm1, %v9636_v1, %v7672_v14 }
 0x22c   : > { %2876 = vrot.lane.b32.xlu0 %v9630_v5, %s5522_s7  ;;  %v3125_v7 = vsel %vm1233_vm4, %v3121_v2, %v3124_v39  ;;  %v3624_v18 = vpop.permute.xlu1 %3623  ;;  %v3575_v9 = vsel %vm1692_vm0, %v9634_v53, %v3573_v30  ;;  %v2985_v40 = vsel %vm1103_vm2, %v2909_v16, %v7851_v6  ;;  %v2912_v39 = vsel %vm1022_vm1, %v7701_v33, %v7665_v63  ;;  %v5050_v5 = vld [vmem:[%s5574_s26 + $0x54] sm:$0xe]  ;;  %v9639_v53 = vld [vmem:[#allocation42_spill] sm:$0xff] }
 0x22d   : > { %5240 = vmatprep.mubr.msk.bf16.mxu0 %vm1402_vm5, %v3125_v7  ;;  %v3755_v22 = vsel %vm1103_vm2, %v3694_v34, %v3624_v18  ;;  %v5049_v34 = vld [vmem:[%s5574_s26 + $0x48] sm:$0xe] }
 0x22e   : > { %5241 = vmatmul.mubr.msk.bf16.gmra.mxu0 %vm1402_vm5, %v3135_v8  ;;  %v3622_v38 = vpop.permute.xlu0 %3621  ;;  %2878 = vrot.lane.b32.xlu1 %v9631_v47, %s5522_s7  ;;  %v3802_v45 = vsel %vm1168_vm3, %v3755_v22, %v2837_v41  ;;  %v3753_v41 = vsel %vm1103_vm2, %v3692_v52, %v7830_v61  ;;  %v5500_v52 = vld [vmem:[%s5574_s26 + $0x58] sm:$0xf] }
 0x22f   : > { %v3752_v13 = vsel %vm1103_vm2, %v3690_v26, %v3622_v38  ;;  %v3882_v24 = vrot.slane %v3802_v45, 1  ;;  %v9637_v26 = vld [vmem:[#allocation128_spill] sm:$0xff]  ;;  %v9638_v38 = vld [vmem:[#allocation129_spill] sm:$0xff] }
 0x230   : > { %2874 = vrot.lane.b32.xlu0 %v9632_v11, %s5522_s7  ;;  %v3799_v51 = vsel %vm1168_vm3, %v3752_v13, %v2833_v36  ;;  %v3656_v60 = vpop.permute.xlu1 %3655  ;;  %v9635_v36 = vld [vmem:[#allocation65_spill] sm:$0xff]  ;;  %v5066_v13 = vcombine.low %v5050_v5, %v5500_v52  ;;  %v9650_v52 = vld [vmem:[#allocation46_spill] sm:$0xff] }
 0x231   : > { %v3804_v43 = vsel %vm1168_vm3, %v3756_v59, %v3656_v60  ;;  %v2914_v19 = vsel %vm1022_vm1, %v9635_v36, %v7694_v10  ;;  %v3879_v4 = vrot.slane %v3799_v51, 1 }
 0x232   : > { %v3654_v44 = vpop.permute.xlu0 %3653  ;;  %v3883_v31 = vrot.slane %v3804_v43, 1  ;;  %3611 = vrot.lane.b32.xlu1 %v3578_v49, %s5520_s27  ;;  %v2989_v61 = vsel %vm1103_vm2, %v2914_v19, %v7859_v62  ;;  %v2917_v62 = vsel %vm1022_vm1, %v7692_v12, %v7686_v20  ;;  %v2987_v20 = vsel %vm1103_vm2, %v2912_v39, %v7849_v54  ;;  %v9640_v43 = vld [vmem:[#allocation41_spill] sm:$0xff] }
 0x233   : > { %v3801_v48 = vsel %vm1168_vm3, %v3753_v41, %v3654_v44  ;;  %v2991_v50 = vsel %vm1103_vm2, %v2917_v62, %v7857_v28  ;;  %v5065_v49 = vcombine.low %v5049_v34, %v5501_v37  ;;  %v3702_v44 = vsel %vm1022_vm1, %v5066_v13, %v7694_v10  ;;  %v9643_v62 = vld [vmem:[#allocation49_spill] sm:$0xff]  ;;  %v9651_v13 = vld [vmem:[#allocation100_spill] sm:$0xff] }
 0x234   : > { %v3880_v23 = vrot.slane %v3801_v48, 1  ;;  %3609 = vrot.lane.b32.xlu0 %v3575_v9, %s5520_s27  ;;  %v2845_v46 = vpop.permute.xlu1 %2844  ;;  %v3884_v55 = vsel %vm2141_vm6, %v3882_v24, %v3883_v31 }
 0x235   : > { %v3053_v32 = vsel %vm1168_vm3, %v2989_v61, %v2845_v46  ;;  %v3698_v31 = vsel %vm1022_vm1, %v5065_v49, %v7672_v14  ;;  %v9641_v14 = vld [vmem:[#allocation47_spill] sm:$0xff]  ;;  %v8110_v61 = vld [vmem:[%s5574_s26 + $0xd4] ss:$0 sps:$4 sm:$0x11]   ;;  %v9654_v49 = vld [vmem:[#allocation17_spill] sm:$0xff] }
 0x236   : > { %v2841_v35 = vpop.permute.xlu0 %2840  ;;  %v3881_v57 = vsel %vm2141_vm6, %v3879_v4, %v3880_v23  ;;  %v3148_v17 = vshll.u32 %v3053_v32, 16  ;;  %3643 = vrot.lane.b32.xlu1 %v7609_v58, %s5521_s28  ;;  %v3146_v18 = vshrl.u32 %v3053_v32, 16 }
 0x237   : > { %v3049_v2 = vsel %vm1168_vm3, %v2985_v40, %v2841_v35  ;;  %5274 = vmatprep.mubr.msk.bf16.mxu1 %vm1402_vm5, %v3881_v57 }
 0x238   : > { %v3138_v6 = vshll.u32 %v3049_v2, 16  ;;  %3641 = vrot.lane.b32.xlu0 %v7544_v27, %s5521_s28  ;;  %5275 = vmatmul.mubr.msk.bf16.gmra.mxu1 %vm1402_vm5, %v3884_v55  ;;  %v3150_v8 = vrot.slane %v3148_v17, 1  ;;  %v2847_v58 = vpop.permute.xlu1 %2846  ;;  %v3136_v3 = vshrl.u32 %v3049_v2, 16 }
 0x239   : > { %v3055_v27 = vsel %vm1168_vm3, %v2991_v50, %v2847_v58  ;;  %v9645_v50 = vld [vmem:[#allocation10_spill] sm:$0xff] }
 0x23a   : > { %v3140_v7 = vrot.slane %v3138_v6, 1  ;;  %v2843_v25 = vpop.permute.xlu0 %2842  ;;  %v3152_v30 = vshll.u32 %v3055_v27, 16  ;;  %3675 = vrot.lane.b32.xlu1 %v9637_v26, %s5522_s7  ;;  %v3151_v47 = vor.u32 %v3150_v8, %v3146_v18  ;;  %v9644_v6 = vld [vmem:[#allocation69_spill] sm:$0xff]  ;;  %v9648_v26 = vld [vmem:[#allocation134_spill] sm:$0xff] }
 0x23b   : > { %v3051_v63 = vsel %vm1168_vm3, %v2987_v20, %v2843_v25  ;;  %v2919_v39 = vsel %vm1022_vm1, %v9644_v6, %v7719_v29  ;;  %v9646_v20 = vld [vmem:[#allocation74_spill] sm:$0xff] }
 0x23c   : > { %v3142_v22 = vshll.u32 %v3051_v63, 16  ;;  %3673 = vrot.lane.b32.xlu0 %v9638_v38, %s5522_s7  ;;  %v3154_v45 = vrot.slane %v3152_v30, 1  ;;  %v3596_v11 = vpop.permute.xlu1 %3595  ;;  %v3141_v51 = vor.u32 %v3140_v7, %v3136_v3  ;;  %v2993_v7 = vsel %vm1103_vm2, %v2919_v39, %v9646_v20  ;;  %v9647_v63 = vld [vmem:[#allocation48_spill] sm:$0xff]  ;;  %v9649_v3 = vld [vmem:[#allocation98_spill] sm:$0xff] }
 0x23d   : > { %v3704_v48 = vsel %vm1022_vm1, %v7692_v12, %v3596_v11  ;;  %v9653_v11 = vld [vmem:[#allocation142_spill] sm:$0xff] }
 0x23e   : > { %v3144_v59 = vrot.slane %v3142_v22, 1  ;;  %v3594_v60 = vpop.permute.xlu0 %3593  ;;  %2820 = vrot.lane.b32.xlu1 %v9639_v53, %s5521_s28  ;;  %v3155_v9 = vsel %vm1233_vm4, %v3151_v47, %v3154_v45  ;;  %v3762_v1 = vsel %vm1103_vm2, %v3704_v48, %v7857_v28  ;;  %v9642_v28 = vld [vmem:[#allocation77_spill] sm:$0xff]  ;;  %v2927_v22 = vsel %vm1022_vm1, %v9649_v3, %v9648_v26  ;;  %v9652_v45 = vld [vmem:[#allocation122_spill] sm:$0xff] }
 0x23f   : > { %v3700_v4 = vsel %vm1022_vm1, %v7701_v33, %v3594_v60  ;;  %v2922_v37 = vsel %vm1022_vm1, %v9653_v11, %v9652_v45  ;;  %v9655_v53 = vld [vmem:[#allocation102_spill] sm:$0xff]  ;;  %v8198_v45 = vpop.f32.mrf.mxu0 }
 0x240   : > { %2816 = vrot.lane.b32.xlu0 %v9640_v43, %s5521_s28  ;;  %v3145_v41 = vsel %vm1233_vm4, %v3141_v51, %v3144_v59  ;;  %v3628_v24 = vpop.permute.xlu1 %3627  ;;  %v3759_v55 = vsel %vm1103_vm2, %v3700_v4, %v7849_v54  ;;  %v3582_v54 = vshll.u32 %v8110_v61, 16  ;;  %v2999_v51 = vsel %vm1103_vm2, %v2927_v22, %v9654_v49  ;;  %v5052_v43 = vld [vmem:[%s5574_s26 + $0x6c] sm:$0xe] }
 0x241   : > { %5244 = vmatprep.mubr.msk.bf16.mxu0 %vm1402_vm5, %v3145_v41  ;;  %v3761_v36 = vsel %vm1103_vm2, %v3702_v44, %v3628_v24  ;;  %v9656_v41 = vld [vmem:[#allocation72_spill] sm:$0xff] }
 0x242   : > { %5245 = vmatmul.mubr.msk.bf16.gmra.mxu0 %vm1402_vm5, %v3155_v9  ;;  %v3626_v19 = vpop.permute.xlu0 %3625  ;;  %2818 = vrot.lane.b32.xlu1 %v7628_v42, %s5521_s28  ;;  %v3808_v23 = vsel %vm1168_vm3, %v3761_v36, %v2845_v46  ;;  %v8116_v42 = vld [vmem:[%s5574_s26 + $0xc8] ss:$0 sps:$4 sm:$0x11]   ;;  %v3584_v47 = vsel %vm1692_vm0, %v9651_v13, %v3582_v54  ;;  %v2995_v44 = vsel %vm1103_vm2, %v2922_v37, %v9656_v41  ;;  %v5051_v36 = vld [vmem:[%s5574_s26 + $0x60] sm:$0xe] }
 0x243   : > { %v3758_v10 = vsel %vm1103_vm2, %v3698_v31, %v3626_v19  ;;  %v3888_v46 = vrot.slane %v3808_v23, 1  ;;  %v3579_v5 = vshll.u32 %v8116_v42, 16 }
 0x244   : > { %2880 = vrot.lane.b32.xlu0 %v9641_v14, %s5522_s7  ;;  %v3805_v12 = vsel %vm1168_vm3, %v3758_v10, %v2841_v35  ;;  %v3660_v16 = vpop.permute.xlu1 %3659  ;;  %v2924_v35 = vsel %vm1022_vm1, %v9642_v28, %v7731_v21 }
 0x245   : > { %v3810_v33 = vsel %vm1168_vm3, %v3762_v1, %v3660_v16  ;;  %v3885_v17 = vrot.slane %v3805_v12, 1  ;;  %v2997_v8 = vsel %vm1103_vm2, %v2924_v35, %v9645_v50  ;;  %v3581_v9 = vsel %vm1692_vm0, %v9655_v53, %v3579_v5  ;;  %v5502_v12 = vld [vmem:[%s5574_s26 + $0x70] sm:$0xf] }
 0x246   : > { %v3658_v40 = vpop.permute.xlu0 %3657  ;;  %v3889_v32 = vrot.slane %v3810_v33, 1  ;;  %2822 = vrot.lane.b32.xlu1 %v7679_v56, %s5521_s28  ;;  %v5068_v1 = vcombine.low %v5052_v43, %v5502_v12  ;;  %v9657_v35 = vld [vmem:[#allocation92_spill] sm:$0xff]  ;;  %v9664_v12 = vld [vmem:[#allocation106_spill] sm:$0xff] }
 0x247   : > { %v3807_v57 = vsel %vm1168_vm3, %v3759_v55, %v3658_v40  ;;  %v5503_v40 = vld [vmem:[%s5574_s26 + $0x64] sm:$0xf] }
 0x248   : > { %v3886_v2 = vrot.slane %v3807_v57, 1  ;;  %2884 = vrot.lane.b32.xlu0 %v9643_v62, %s5522_s7  ;;  %v2853_v58 = vpop.permute.xlu1 %2852  ;;  %v3890_v56 = vsel %vm2141_vm6, %v3888_v46, %v3889_v32  ;;  %v5067_v46 = vcombine.low %v5051_v36, %v5503_v40  ;;  %v9658_v62 = vld [vmem:[#allocation130_spill] sm:$0xff]  ;;  %v3710_v6 = vsel %vm1022_vm1, %v5068_v1, %v7731_v21 }
 0x249   : > { %v3061_v27 = vsel %vm1168_vm3, %v2997_v8, %v2853_v58 }
 0x24a   : > { %v2849_v25 = vpop.permute.xlu0 %2848  ;;  %v3887_v34 = vsel %vm2141_vm6, %v3885_v17, %v3886_v2  ;;  %v3168_v18 = vshll.u32 %v3061_v27, 16  ;;  %2886 = vrot.lane.b32.xlu1 %v9647_v63, %s5522_s7  ;;  %v3166_v19 = vshrl.u32 %v3061_v27, 16  ;;  %v3706_v50 = vsel %vm1022_vm1, %v5067_v46, %v7719_v29  ;;  %v9659_v27 = vld [vmem:[#allocation131_spill] sm:$0xff] }
 0x24b   : > { %v3057_v30 = vsel %vm1168_vm3, %v2993_v7, %v2849_v25  ;;  %5278 = vmatprep.mubr.msk.bf16.mxu1 %vm1402_vm5, %v3887_v34 }
 0x24c   : > { %v3158_v38 = vshll.u32 %v3057_v30, 16  ;;  %2882 = vrot.lane.b32.xlu0 %v9650_v52, %s5522_s7  ;;  %5279 = vmatmul.mubr.msk.bf16.gmra.mxu1 %vm1402_vm5, %v3890_v56  ;;  %v3170_v59 = vrot.slane %v3168_v18, 1  ;;  %v2855_v60 = vpop.permute.xlu1 %2854  ;;  %v3156_v23 = vshrl.u32 %v3057_v30, 16  ;;  %v9660_v18 = vld [vmem:[#allocation133_spill] sm:$0xff] }
 0x24d   : > { %v3063_v31 = vsel %vm1168_vm3, %v2999_v51, %v2855_v60 }
 0x24e   : > { %v3160_v24 = vrot.slane %v3158_v38, 1  ;;  %v2851_v48 = vpop.permute.xlu0 %2850  ;;  %v3172_v4 = vshll.u32 %v3063_v31, 16  ;;  %3615 = vrot.lane.b32.xlu1 %v3584_v47, %s5520_s27  ;;  %v3171_v16 = vor.u32 %v3170_v59, %v3166_v19 }
 0x24f   : > { %v3059_v10 = vsel %vm1168_vm3, %v2995_v44, %v2851_v48  ;;  %v9662_v44 = vld [vmem:[#allocation78_spill] sm:$0xff] }
 0x250   : > { %v3162_v14 = vshll.u32 %v3059_v10, 16  ;;  %3613 = vrot.lane.b32.xlu0 %v3581_v9, %s5520_s27  ;;  %v3174_v33 = vrot.slane %v3172_v4, 1  ;;  %v3600_v55 = vpop.permute.xlu1 %3599  ;;  %v3161_v32 = vor.u32 %v3160_v24, %v3156_v23  ;;  %v8205_v9 = vpop.f32.mrf.mxu0 }
 0x251   : > { %v3712_v8 = vsel %vm1022_vm1, %v9649_v3, %v3600_v55 }
 0x252   : > { %v3164_v57 = vrot.slane %v3162_v14, 1  ;;  %v3598_v28 = vpop.permute.xlu0 %3597  ;;  %3647 = vrot.lane.b32.xlu1 %v9657_v35, %s5521_s28  ;;  %v3175_v17 = vsel %vm1233_vm4, %v3171_v16, %v3174_v33  ;;  %v3768_v63 = vsel %vm1103_vm2, %v3712_v8, %v9654_v49  ;;  %v8220_v10 = vpop.f32.mrf.mxu0  ;;  %v9663_v14 = vld [vmem:[#allocation138_spill] sm:$0xff] }
 0x253   : > { %v3708_v7 = vsel %vm1022_vm1, %v9653_v11, %v3598_v28  ;;  %v2934_v1 = vsel %vm1022_vm1, %v9664_v12, %v9663_v14  ;;  %v9666_v28 = vld [vmem:[#allocation71_spill] sm:$0xff] }
 0x254   : > { %v5204_v2 = vpop.f32.mrf.mxu1  ;;  %3645 = vrot.lane.b32.xlu0 %v9658_v62, %s5521_s28  ;;  %v3165_v54 = vsel %vm1233_vm4, %v3161_v32, %v3164_v57  ;;  %v3632_v39 = vpop.permute.xlu1 %3631  ;;  %v3765_v38 = vsel %vm1103_vm2, %v3708_v7, %v9656_v41  ;;  %v9661_v41 = vld [vmem:[#allocation95_spill] sm:$0xff] }
 0x255   : > { %5248 = vmatprep.mubr.msk.bf16.mxu0 %vm1402_vm5, %v3165_v54  ;;  %v3767_v56 = vsel %vm1103_vm2, %v3710_v6, %v3632_v39  ;;  %v2929_v24 = vsel %vm1022_vm1, %v9662_v44, %v9661_v41  ;;  %v9665_v57 = vld [vmem:[#allocation127_spill] sm:$0xff]  ;;  %v9667_v54 = vld [vmem:[#allocation136_spill] sm:$0xff] }
 0x256   : > { %v2280_v5 = vpop.f32.mrf.mxu1  ;;  %5249 = vmatmul.mubr.msk.bf16.gmra.mxu0 %vm1402_vm5, %v3175_v17  ;;  %v3630_v20 = vpop.permute.xlu0 %3629  ;;  %3679 = vrot.lane.b32.xlu1 %v9659_v27, %s5522_s7  ;;  %v3814_v34 = vsel %vm1168_vm3, %v3767_v56, %v2853_v58  ;;  %v2937_v35 = vsel %vm1022_vm1, %v9666_v28, %v9665_v57  ;;  %v9668_v6 = vld [vmem:[#allocation20_spill] sm:$0xff]  ;;  %v5054_v56 = vld [vmem:[%s5574_s26 + $0x84] sm:$0xe] }
 0x257   : > { %v3764_v21 = vsel %vm1103_vm2, %v3706_v50, %v3630_v20  ;;  %v3894_v13 = vrot.slane %v3814_v34, 1  ;;  %v8234_v17 = vpop.f32.mrf.mxu0  ;;  %v2932_v39 = vsel %vm1022_vm1, %v9668_v6, %v9667_v54 }
 0x258   : > { %v5205_v29 = vpop.f32.mrf.mxu1  ;;  %3677 = vrot.lane.b32.xlu0 %v9660_v18, %s5522_s7  ;;  %v3811_v30 = vsel %vm1168_vm3, %v3764_v21, %v2849_v25  ;;  %v3664_v26 = vpop.permute.xlu1 %3663 }
 0x259   : > { %v3816_v3 = vsel %vm1168_vm3, %v3768_v63, %v3664_v26  ;;  %v3891_v25 = vrot.slane %v3811_v30, 1  ;;  %v8249_v26 = vpop.f32.mrf.mxu0 }
 0x25a   : > { %v2283_v22 = vpop.f32.mrf.mxu1  ;;  %v3662_v52 = vpop.permute.xlu0 %3661  ;;  %v3895_v47 = vrot.slane %v3816_v3, 1 }
 0x25b   : > { %v3813_v58 = vsel %vm1168_vm3, %v3765_v38, %v3662_v52  ;;  %4172 = vrot.lane.b32.xlu1 %v2283_v22, %s5521_s28  ;;  %v5504_v52 = vld [vmem:[%s5574_s26 + $0x88] sm:$0xf] }
 0x25c   : > { %v3892_v11 = vrot.slane %v3813_v58, 1  ;;  %v5208_v37 = vpop.f32.mrf.mxu1  ;;  %4170 = vrot.lane.b32.xlu0 %v2280_v5, %s5521_s28  ;;  %v2797_v49 = vpop.permute.xlu1 %2796  ;;  %v3896_v51 = vsel %vm2141_vm6, %v3894_v13, %v3895_v47  ;;  %v5070_v13 = vcombine.low %v5054_v56, %v5504_v52 }
 0x25d   : > { %v3005_v33 = vsel %vm1103_vm2, %v2934_v1, %v2797_v49 }
 0x25e   : > { %v2296_v59 = vpop.f32.mrf.mxu1  ;;  %v2793_v60 = vpop.permute.xlu0 %2792  ;;  %v3893_v53 = vsel %vm2141_vm6, %v3891_v25, %v3892_v11  ;;  %v5505_v11 = vld [vmem:[%s5574_s26 + $0x7c] sm:$0xf] }
 0x25f   : > { %5282 = vmatprep.mubr.msk.bf16.mxu1 %vm1402_vm5, %v3893_v53  ;;  %4176 = vrot.lane.b32.xlu1 %v5205_v29, %s5521_s28  ;;  %v3001_v48 = vsel %vm1103_vm2, %v2929_v24, %v2793_v60  ;;  %v5053_v29 = vld [vmem:[%s5574_s26 + $0x78] sm:$0xe] }
 0x260   : > { %v5209_v43 = vpop.f32.mrf.mxu1  ;;  %4174 = vrot.lane.b32.xlu0 %v5204_v2, %s5521_s28  ;;  %5283 = vmatmul.mubr.msk.bf16.gmra.mxu1 %vm1402_vm5, %v3896_v51  ;;  %v8212_v31 = vpop.permute.xlu1 %2794 }
 0x261   : > { %v3003_v5 = vsel %vm1103_vm2, %v2932_v39, %v8212_v31 }
 0x262   : > { %v2299_v36 = vpop.f32.mrf.mxu1  ;;  %v8215_v19 = vpop.permute.xlu0 %2856 }
 0x263   : > { %v3065_v4 = vsel %vm1168_vm3, %v3001_v48, %v8215_v19  ;;  %4180 = vrot.lane.b32.xlu1 %v2299_v36, %s5521_s28  ;;  %v3718_v48 = vsel %vm1022_vm1, %v5070_v13, %v9663_v14 }
 0x264   : > { %v5212_v23 = vpop.f32.mrf.mxu1  ;;  %4178 = vrot.lane.b32.xlu0 %v2296_v59, %s5521_s28  ;;  %v8226_v16 = vpop.permute.xlu1 %2798  ;;  %v3178_v55 = vshll.u32 %v3065_v4, 16  ;;  %v3176_v3 = vshrl.u32 %v3065_v4, 16 }
 0x265   : > { %v3007_v50 = vsel %vm1103_vm2, %v2937_v35, %v8226_v16 }
 0x266   : > { %v2312_v40 = vpop.f32.mrf.mxu1  ;;  %v2861_v46 = vpop.permute.xlu0 %2860  ;;  %v3180_v20 = vrot.slane %v3178_v55, 1 }
 0x267   : > { %v3069_v32 = vsel %vm1168_vm3, %v3005_v33, %v2861_v46  ;;  %4184 = vrot.lane.b32.xlu1 %v5209_v43, %s5521_s28  ;;  %v8256_v43 = vpop.f32.mrf.mxu0 }
 0x268   : > { %v3188_v2 = vshll.u32 %v3069_v32, 16  ;;  %v5213_v62 = vpop.f32.mrf.mxu1  ;;  %4182 = vrot.lane.b32.xlu0 %v5208_v37, %s5521_s28  ;;  %v2863_v8 = vpop.permute.xlu1 %2862  ;;  %v3186_v18 = vshrl.u32 %v3069_v32, 16  ;;  %v5069_v37 = vcombine.low %v5053_v29, %v5505_v11  ;;  %v3181_v49 = vor.u32 %v3180_v20, %v3176_v3  ;;  %v9669_v29 = vld [vmem:[#allocation126_spill] sm:$0xff] }
 0x269   : > { %v3071_v21 = vsel %vm1168_vm3, %v3007_v50, %v2863_v8 }
 0x26a   : > { %v3190_v7 = vrot.slane %v3188_v2, 1  ;;  %v2315_v27 = vpop.f32.mrf.mxu1  ;;  %v2859_v34 = vpop.permute.xlu0 %2858  ;;  %v3192_v30 = vshll.u32 %v3071_v21, 16  ;;  %v3714_v4 = vsel %vm1022_vm1, %v5069_v37, %v9661_v41 }
 0x26b   : > { %v3067_v63 = vsel %vm1168_vm3, %v3003_v5, %v2859_v34  ;;  %4188 = vrot.lane.b32.xlu1 %v2315_v27, %s5521_s28 }
 0x26c   : > { %v3182_v22 = vshll.u32 %v3067_v63, 16  ;;  %v5216_v38 = vpop.f32.mrf.mxu1  ;;  %4186 = vrot.lane.b32.xlu0 %v2312_v40, %s5521_s28  ;;  %v3191_v47 = vor.u32 %v3190_v7, %v3186_v18  ;;  %v3194_v58 = vrot.slane %v3192_v30, 1  ;;  %v3604_v25 = vpop.permute.xlu1 %3603  ;;  %v9670_v18 = vld [vmem:[#allocation60_spill] sm:$0xff] }
 0x26d   : > { %v3720_v12 = vsel %vm1022_vm1, %v9666_v28, %v3604_v25  ;;  %v8273_v40 = vpop.f32.mrf.mxu0  ;;  %v2939_v30 = vsel %vm1022_vm1, %v9670_v18, %v9669_v29  ;;  %v9672_v25 = vld [vmem:[#allocation80_spill] sm:$0xff] }
 0x26e   : > { %v3184_v51 = vrot.slane %v3182_v22, 1  ;;  %v2328_v59 = vpop.f32.mrf.mxu1  ;;  %v3602_v60 = vpop.permute.xlu0 %3601  ;;  %v3195_v53 = vsel %vm1233_vm4, %v3191_v47, %v3194_v58  ;;  %v3774_v28 = vsel %vm1103_vm2, %v3720_v12, %v8226_v16  ;;  %v9671_v58 = vld [vmem:[#allocation4_spill] sm:$0xff] }
 0x26f   : > { %4192 = vrot.lane.b32.xlu1 %v5213_v62, %s5521_s28  ;;  %v3716_v55 = vsel %vm1022_vm1, %v9668_v6, %v3602_v60  ;;  %v8286_v8 = vpop.f32.mrf.mxu0  ;;  %v2944_v11 = vsel %vm1022_vm1, %v9672_v25, %v9671_v58  ;;  %v5507_v18 = vld [vmem:[%s5574_s26 + $0x94] sm:$0xf] }
 0x270   : > { %v5217_v44 = vpop.f32.mrf.mxu1  ;;  %4190 = vrot.lane.b32.xlu0 %v5212_v23, %s5521_s28  ;;  %v3185_v24 = vsel %vm1233_vm4, %v3181_v49, %v3184_v51  ;;  %v3636_v36 = vpop.permute.xlu1 %3635  ;;  %v3771_v54 = vsel %vm1103_vm2, %v3716_v55, %v8212_v31 }
 0x271   : > { %5252 = vmatprep.mubr.msk.bf16.mxu0 %vm1402_vm5, %v3185_v24  ;;  %v3773_v1 = vsel %vm1103_vm2, %v3718_v48, %v3636_v36  ;;  %v8293_v27 = vpop.f32.mrf.mxu0  ;;  %v9674_v24 = vld [vmem:[#allocation6_spill] sm:$0xff] }
 0x272   : > { %v2331_v33 = vpop.f32.mrf.mxu1  ;;  %5253 = vmatmul.mubr.msk.bf16.gmra.mxu0 %vm1402_vm5, %v3195_v53  ;;  %v3634_v23 = vpop.permute.xlu0 %3633  ;;  %v3820_v41 = vsel %vm1168_vm3, %v3773_v1, %v2861_v46  ;;  %v9675_v1 = vld [vmem:[#allocation140_spill] sm:$0xff] }
 0x273   : > { %v3770_v14 = vsel %vm1103_vm2, %v3714_v4, %v3634_v23  ;;  %4196 = vrot.lane.b32.xlu1 %v2331_v33, %s5521_s28  ;;  %v3900_v39 = vrot.slane %v3820_v41, 1  ;;  %v8308_v13 = vpop.f32.mrf.mxu0  ;;  %v9676_v33 = vld [vmem:[#allocation7_spill] sm:$0xff]  ;;  %v5056_v41 = vld [vmem:[%s5574_s26 + $0x9c] sm:$0xe] }
 0x274   : > { %v5220_v32 = vpop.f32.mrf.mxu1  ;;  %4194 = vrot.lane.b32.xlu0 %v2328_v59, %s5521_s28  ;;  %v3817_v57 = vsel %vm1168_vm3, %v3770_v14, %v8215_v19  ;;  %v3668_v35 = vpop.permute.xlu1 %3667  ;;  %v2942_v23 = vsel %vm1022_vm1, %v9676_v33, %v9675_v1 }
 0x275   : > { %v3822_v2 = vsel %vm1168_vm3, %v3774_v28, %v3668_v35  ;;  %v3897_v19 = vrot.slane %v3817_v57, 1  ;;  %v8322_v36 = vpop.f32.mrf.mxu0 }
 0x276   : > { %v2344_v62 = vpop.f32.mrf.mxu1  ;;  %v3666_v6 = vpop.permute.xlu0 %3665  ;;  %v3901_v50 = vrot.slane %v3822_v2, 1 }
 0x277   : > { %v3819_v46 = vsel %vm1168_vm3, %v3771_v54, %v3666_v6  ;;  %4200 = vrot.lane.b32.xlu1 %v5217_v44, %s5521_s28  ;;  %v9673_v44 = vld [vmem:[#allocation52_spill] sm:$0xff] }
 0x278   : > { %v3898_v56 = vrot.slane %v3819_v46, 1  ;;  %v5221_v5 = vpop.f32.mrf.mxu1  ;;  %4198 = vrot.lane.b32.xlu0 %v5216_v38, %s5521_s28  ;;  %v2805_v16 = vpop.permute.xlu1 %2804  ;;  %v3902_v20 = vsel %vm2141_vm6, %v3900_v39, %v3901_v50  ;;  %v2947_v48 = vsel %vm1022_vm1, %v9674_v24, %v9673_v44  ;;  %v5055_v54 = vld [vmem:[%s5574_s26 + $0x90] sm:$0xe] }
 0x279   : > { %v3013_v49 = vsel %vm1103_vm2, %v2944_v11, %v2805_v16  ;;  %v8337_v46 = vpop.f32.mrf.mxu0  ;;  %v5506_v16 = vld [vmem:[%s5574_s26 + $0xa0] sm:$0xf] }
 0x27a   : > { %v2347_v7 = vpop.f32.mrf.mxu1  ;;  %v2801_v21 = vpop.permute.xlu0 %2800  ;;  %v3899_v31 = vsel %vm2141_vm6, %v3897_v19, %v3898_v56 }
 0x27b   : > { %5286 = vmatprep.mubr.msk.bf16.mxu1 %vm1402_vm5, %v3899_v31  ;;  %4204 = vrot.lane.b32.xlu1 %v2347_v7, %s5521_s28  ;;  %v3009_v3 = vsel %vm1103_vm2, %v2939_v30, %v2801_v21  ;;  %v5071_v30 = vcombine.low %v5055_v54, %v5507_v18  ;;  %v9680_v18 = vld [vmem:[#allocation67_spill] sm:$0xff] }
 0x27c   : > { %v5224_v34 = vpop.f32.mrf.mxu1  ;;  %4202 = vrot.lane.b32.xlu0 %v2344_v62, %s5521_s28  ;;  %5287 = vmatmul.mubr.msk.bf16.gmra.mxu1 %vm1402_vm5, %v3902_v20  ;;  %v8300_v63 = vpop.permute.xlu1 %2802  ;;  %v5072_v20 = vcombine.low %v5056_v41, %v5506_v16 }
 0x27e   : > { %v2360_v22 = vpop.f32.mrf.mxu1  ;;  %v8303_v38 = vpop.permute.xlu0 %2864 }
 0x27f   : > { %v3073_v52 = vsel %vm1168_vm3, %v3009_v3, %v8303_v38  ;;  %4208 = vrot.lane.b32.xlu1 %v5221_v5, %s5521_s28 }
 0x280   : > { %v5225_v47 = vpop.f32.mrf.mxu1  ;;  %4206 = vrot.lane.b32.xlu0 %v5220_v32, %s5521_s28  ;;  %v8314_v37 = vpop.permute.xlu1 %2806  ;;  %v3198_v51 = vshll.u32 %v3073_v52, 16  ;;  %v3011_v32 = vsel %vm1103_vm2, %v2942_v23, %v8300_v63  ;;  %v3196_v19 = vshrl.u32 %v3073_v52, 16 }
 0x281   : > { %v3015_v55 = vsel %vm1103_vm2, %v2947_v48, %v8314_v37  ;;  %v8344_v52 = vpop.f32.mrf.mxu0 }
 0x282   : > { %v2363_v59 = vpop.f32.mrf.mxu1  ;;  %v2869_v60 = vpop.permute.xlu0 %2868  ;;  %v3200_v57 = vrot.slane %v3198_v51, 1  ;;  %v3726_v51 = vsel %vm1022_vm1, %v5072_v20, %v9671_v58 }
 0x283   : > { %v3077_v53 = vsel %vm1168_vm3, %v3013_v49, %v2869_v60  ;;  %4212 = vrot.lane.b32.xlu1 %v2363_v59, %s5521_s28 }
 0x284   : > { %v3208_v4 = vshll.u32 %v3077_v53, 16  ;;  %v5228_v12 = vpop.f32.mrf.mxu1  ;;  %4210 = vrot.lane.b32.xlu0 %v2360_v22, %s5521_s28  ;;  %v2871_v14 = vpop.permute.xlu1 %2870  ;;  %v3206_v6 = vshrl.u32 %v3077_v53, 16  ;;  %v3201_v3 = vor.u32 %v3200_v57, %v3196_v19  ;;  %v3722_v53 = vsel %vm1022_vm1, %v5071_v30, %v9669_v29  ;;  %v9677_v19 = vld [vmem:[#allocation63_spill] sm:$0xff]  ;;  %v9681_v30 = vld [vmem:[#allocation64_spill] sm:$0xff] }
 0x285   : > { %v3079_v35 = vsel %vm1168_vm3, %v3015_v55, %v2871_v14  ;;  %v8361_v55 = vpop.f32.mrf.mxu0 }
 0x286   : > { %v3210_v28 = vrot.slane %v3208_v4, 1  ;;  %v2376_v2 = vpop.f32.mrf.mxu1  ;;  %v2867_v62 = vpop.permute.xlu0 %2866  ;;  %v3212_v39 = vshll.u32 %v3079_v35, 16 }
 0x287   : > { %v3075_v50 = vsel %vm1168_vm3, %v3011_v32, %v2867_v62  ;;  %4216 = vrot.lane.b32.xlu1 %v5225_v47, %s5521_s28 }
 0x288   : > { %v3202_v56 = vshll.u32 %v3075_v50, 16  ;;  %v5229_v5 = vpop.f32.mrf.mxu1  ;;  %4214 = vrot.lane.b32.xlu0 %v5224_v34, %s5521_s28  ;;  %v3211_v7 = vor.u32 %v3210_v28, %v3206_v6  ;;  %v3214_v21 = vrot.slane %v3212_v39, 1  ;;  %v3608_v31 = vpop.permute.xlu1 %3607 }
 0x289   : > { %v3728_v44 = vsel %vm1022_vm1, %v9674_v24, %v3608_v31 }
 0x28a   : > { %v3204_v22 = vrot.slane %v3202_v56, 1  ;;  %v2379_v25 = vpop.f32.mrf.mxu1  ;;  %v3606_v11 = vpop.permute.xlu0 %3605  ;;  %v3215_v47 = vsel %vm1233_vm4, %v3211_v7, %v3214_v21  ;;  %v3780_v41 = vsel %vm1103_vm2, %v3728_v44, %v8314_v37  ;;  %v9678_v56 = vld [vmem:[#allocation108_spill] sm:$0xff]  ;;  %v9683_v44 = vld [vmem:[#allocation5_spill] sm:$0xff] }
 0x28b   : > { %4220 = vrot.lane.b32.xlu1 %v2379_v25, %s5521_s28  ;;  %v3724_v23 = vsel %vm1022_vm1, %v9676_v33, %v3606_v11 }
 0x28c   : > { %v5232_v49 = vpop.f32.mrf.mxu1  ;;  %4218 = vrot.lane.b32.xlu0 %v2376_v2, %s5521_s28  ;;  %v3205_v34 = vsel %vm1233_vm4, %v3201_v3, %v3204_v22  ;;  %v3640_v59 = vpop.permute.xlu1 %3639  ;;  %v3777_v28 = vsel %vm1103_vm2, %v3724_v23, %v8300_v63  ;;  %v2954_v3 = vsel %vm1022_vm1, %v9681_v30, %v9680_v18  ;;  %v5058_v23 = vld [vmem:[%s5574_s26 + $0xb4] sm:$0xe] }
 0x28d   : > { %5256 = vmatprep.mubr.msk.bf16.mxu0 %vm1402_vm5, %v3205_v34  ;;  %v3779_v48 = vsel %vm1103_vm2, %v3726_v51, %v3640_v59  ;;  %v9682_v34 = vld [vmem:[#allocation9_spill] sm:$0xff] }
 0x28e   : > { %v2392_v4 = vpop.f32.mrf.mxu1  ;;  %5257 = vmatmul.mubr.msk.bf16.gmra.mxu0 %vm1402_vm5, %v3215_v47  ;;  %v3638_v1 = vpop.permute.xlu0 %3637  ;;  %v3826_v29 = vsel %vm1168_vm3, %v3779_v48, %v2869_v60  ;;  %v2957_v51 = vsel %vm1022_vm1, %v8000_v0, %v9682_v34  ;;  %v2952_v48 = vsel %vm1022_vm1, %v8003_v15, %v9683_v44 }
 0x28f   : > { %v3776_v58 = vsel %vm1103_vm2, %v3722_v53, %v3638_v1  ;;  %4224 = vrot.lane.b32.xlu1 %v5229_v5, %s5521_s28  ;;  %v3906_v2 = vrot.slane %v3826_v29, 1  ;;  %v2949_v5 = vsel %vm1022_vm1, %v9678_v56, %v9677_v19 }
 0x290   : > { %v5233_v14 = vpop.f32.mrf.mxu1  ;;  %4222 = vrot.lane.b32.xlu0 %v5228_v12, %s5521_s28  ;;  %v3823_v24 = vsel %vm1168_vm3, %v3776_v58, %v8303_v38  ;;  %v3672_v32 = vpop.permute.xlu1 %3671 }
 0x291   : > { %v3828_v33 = vsel %vm1168_vm3, %v3780_v41, %v3672_v32  ;;  %v8374_v12 = vpop.f32.mrf.mxu0  ;;  %v3903_v38 = vrot.slane %v3823_v24, 1  ;;  %v5057_v32 = vld [vmem:[%s5574_s26 + $0xa8] sm:$0xe] }
 0x292   : > { %v2395_v57 = vpop.f32.mrf.mxu1  ;;  %v3670_v35 = vpop.permute.xlu0 %3669  ;;  %v3907_v62 = vrot.slane %v3828_v33, 1 }
 0x293   : > { %v3825_v60 = vsel %vm1168_vm3, %v3777_v28, %v3670_v35  ;;  %4228 = vrot.lane.b32.xlu1 %v2395_v57, %s5521_s28  ;;  %v8381_v63 = vpop.f32.mrf.mxu0 }
 0x294   : > { %v3904_v54 = vrot.slane %v3825_v60, 1  ;;  %4226 = vrot.lane.b32.xlu0 %v2392_v4, %s5521_s28  ;;  %v2813_v37 = vpop.permute.xlu1 %2812  ;;  %v3908_v6 = vsel %vm2141_vm6, %v3906_v2, %v3907_v62  ;;  %v5508_v60 = vld [vmem:[%s5574_s26 + $0xb8] sm:$0xf] }
 0x295   : > { %v8390_v31 = vpop.f32.mrf.mxu0  ;;  %v3021_v25 = vsel %vm1103_vm2, %v2954_v3, %v2813_v37 }
 0x296   : > { %v2809_v39 = vpop.permute.xlu0 %2808  ;;  %v3905_v50 = vsel %vm2141_vm6, %v3903_v38, %v3904_v54  ;;  %9679 = vst [vmem:[#allocation76_spill] sm:$0xff] %v8390_v31  ;;  %v5074_v38 = vcombine.low %v5058_v23, %v5508_v60 }
 0x297   : > { %5290 = vmatprep.mubr.msk.bf16.mxu1 %vm1402_vm5, %v3905_v50  ;;  %4232 = vrot.lane.b32.xlu1 %v5233_v14, %s5521_s28  ;;  %v3017_v20 = vsel %vm1103_vm2, %v2949_v5, %v2809_v39  ;;  %v8400_v59 = vpop.f32.mrf.mxu0  ;;  %v5509_v39 = vld [vmem:[%s5574_s26 + $0xac] sm:$0xf] }
 0x298   : > { %4230 = vrot.lane.b32.xlu0 %v5232_v49, %s5521_s28  ;;  %5291 = vmatmul.mubr.msk.bf16.gmra.mxu1 %vm1402_vm5, %v3908_v6  ;;  %v2811_v16 = vpop.permute.xlu1 %2810  ;;  %v5073_v50 = vcombine.low %v5057_v32, %v5509_v39  ;;  %v9691_v39 = vld [vmem:[#allocation68_spill] sm:$0xff] }
 0x299   : > { %v3019_v58 = vsel %vm1103_vm2, %v2952_v48, %v2811_v16  ;;  %v8411_v35 = vpop.f32.mrf.mxu0 }
 0x29a   : > { %v2873_v7 = vpop.permute.xlu0 %2872  ;;  %9684 = vst [vmem:[#allocation79_spill] sm:$0xff] %v8411_v35 }
 0x29b   : > { %v3081_v21 = vsel %vm1168_vm3, %v3017_v20, %v2873_v7  ;;  %v8416_v3 = vpop.f32.mrf.mxu0 }
 0x29c   : > { %v2815_v22 = vpop.permute.xlu1 %2814  ;;  %v3218_v11 = vshll.u32 %v3081_v21, 16  ;;  %v3216_v2 = vshrl.u32 %v3081_v21, 16  ;;  %v3734_v21 = vsel %vm1022_vm1, %v5074_v38, %v9680_v18 }
 0x29d   : > { %v3023_v4 = vsel %vm1103_vm2, %v2957_v51, %v2815_v22  ;;  %v8431_v18 = vpop.f32.mrf.mxu0 }
 0x29e   : > { %v2877_v47 = vpop.permute.xlu0 %2876  ;;  %v3220_v29 = vrot.slane %v3218_v11, 1  ;;  %9685 = vst [vmem:[#allocation132_spill] sm:$0xff] %v8431_v18 }
 0x29f   : > { %v3085_v49 = vsel %vm1168_vm3, %v3021_v25, %v2877_v47 }
 0x2a0   : > { %v3228_v53 = vshll.u32 %v3085_v49, 16  ;;  %v2879_v1 = vpop.permute.xlu1 %2878  ;;  %v3226_v33 = vshrl.u32 %v3085_v49, 16  ;;  %v3221_v56 = vor.u32 %v3220_v29, %v3216_v2  ;;  %v3730_v49 = vsel %vm1022_vm1, %v5073_v50, %v9677_v19  ;;  %v9689_v2 = vld [vmem:[#allocation114_spill] sm:$0xff]  ;;  %v9692_v50 = vld [vmem:[#allocation84_spill] sm:$0xff] }
 0x2a1   : > { %v3087_v24 = vsel %vm1168_vm3, %v3023_v4, %v2879_v1 }
 0x2a2   : > { %v3230_v14 = vrot.slane %v3228_v53, 1  ;;  %v2875_v41 = vpop.permute.xlu0 %2874  ;;  %v3232_v57 = vshll.u32 %v3087_v24, 16 }
 0x2a3   : > { %v3083_v28 = vsel %vm1168_vm3, %v3019_v58, %v2875_v41  ;;  %v8439_v41 = vpop.f32.mrf.mxu0 }
 0x2a4   : > { %v3222_v62 = vshll.u32 %v3083_v28, 16  ;;  %v3231_v54 = vor.u32 %v3230_v14, %v3226_v33  ;;  %v3234_v37 = vrot.slane %v3232_v57, 1  ;;  %v3612_v6 = vpop.permute.xlu1 %3611  ;;  %9686 = vst [vmem:[#allocation103_spill] sm:$0xff] %v8439_v41 }
 0x2a5   : > { %v3736_v34 = vsel %vm1022_vm1, %v8000_v0, %v3612_v6  ;;  %v8444_v28 = vpop.f32.mrf.mxu0 }
 0x2a6   : > { %v3224_v5 = vrot.slane %v3222_v62, 1  ;;  %v3610_v20 = vpop.permute.xlu0 %3609  ;;  %v3235_v30 = vsel %vm1233_vm4, %v3231_v54, %v3234_v37  ;;  %v3786_v19 = vsel %vm1103_vm2, %v3736_v34, %v2815_v22  ;;  %9687 = vst [vmem:[#allocation120_spill] sm:$0xff] %v8444_v28 }
 0x2a7   : > { %v3732_v44 = vsel %vm1022_vm1, %v8003_v15, %v3610_v20  ;;  %v8452_v6 = vpop.f32.mrf.mxu0 }
 0x2a8   : > { %v3225_v25 = vsel %vm1233_vm4, %v3221_v56, %v3224_v5  ;;  %v3644_v11 = vpop.permute.xlu1 %3643  ;;  %v3783_v58 = vsel %vm1103_vm2, %v3732_v44, %v2811_v16  ;;  %v9688_v16 = vld [vmem:[#allocation101_spill] sm:$0xff]  ;;  %9690 = vst [vmem:[#allocation105_spill] sm:$0xff] %v8452_v6  ;;  %v2964_v56 = vsel %vm1022_vm1, %v9692_v50, %v9691_v39  ;;  %v5511_v50 = vld [vmem:[%s5574_s26 + $0xc4] sm:$0xf] }
 0x2a9   : > { %5260 = vmatprep.mubr.msk.bf16.mxu0 %vm1402_vm5, %v3225_v25  ;;  %v3785_v51 = vsel %vm1103_vm2, %v3734_v21, %v3644_v11  ;;  %v2959_v62 = vsel %vm1022_vm1, %v9689_v2, %v9688_v16  ;;  %v9693_v11 = vld [vmem:[#allocation13_spill] sm:$0xff]  ;;  %v8462_v34 = vpop.f32.mrf.mxu0 }
 0x2aa   : > { %5261 = vmatmul.mubr.msk.bf16.gmra.mxu0 %vm1402_vm5, %v3235_v30  ;;  %v3642_v53 = vpop.permute.xlu0 %3641  ;;  %v3832_v4 = vsel %vm1168_vm3, %v3785_v51, %v2877_v47  ;;  %9694 = vst [vmem:[#allocation62_spill] sm:$0xff] %v8462_v34 }
 0x2ab   : > { %v3782_v48 = vsel %vm1103_vm2, %v3730_v49, %v3642_v53  ;;  %v3912_v14 = vrot.slane %v3832_v4, 1  ;;  %v2967_v49 = vsel %vm1022_vm1, %v8110_v61, %v9693_v11  ;;  %v9695_v53 = vld [vmem:[#allocation51_spill] sm:$0xff] }
 0x2ac   : > { %v3829_v1 = vsel %vm1168_vm3, %v3782_v48, %v2873_v7  ;;  %v3676_v23 = vpop.permute.xlu1 %3675  ;;  %v2962_v44 = vsel %vm1022_vm1, %v8116_v42, %v9695_v53 }
 0x2ad   : > { %v3834_v0 = vsel %vm1168_vm3, %v3786_v19, %v3676_v23  ;;  %v3909_v32 = vrot.slane %v3829_v1, 1  ;;  %v5060_v1 = vld [vmem:[%s5574_s26 + $0xcc] sm:$0xe] }
 0x2ae   : > { %v3674_v29 = vpop.permute.xlu0 %3673  ;;  %v3913_v24 = vrot.slane %v3834_v0, 1 }
 0x2af   : > { %v3831_v15 = vsel %vm1168_vm3, %v3783_v58, %v3674_v29 }
 0x2b0   : > { %v3910_v33 = vrot.slane %v3831_v15, 1  ;;  %v2821_v57 = vpop.permute.xlu1 %2820  ;;  %v3914_v47 = vsel %vm2141_vm6, %v3912_v14, %v3913_v24  ;;  %v5059_v14 = vld [vmem:[%s5574_s26 + $0xc0] sm:$0xe] }
 0x2b1   : > { %v3029_v20 = vsel %vm1103_vm2, %v2964_v56, %v2821_v57  ;;  %v5075_v56 = vcombine.low %v5059_v14, %v5511_v50 }
 0x2b2   : > { %v2817_v7 = vpop.permute.xlu0 %2816  ;;  %v3911_v22 = vsel %vm2141_vm6, %v3909_v32, %v3910_v33  ;;  %v8473_v33 = vpop.f32.mrf.mxu0 }
 0x2b3   : > { %5294 = vmatprep.mubr.msk.bf16.mxu1 %vm1402_vm5, %v3911_v22  ;;  %v3025_v38 = vsel %vm1103_vm2, %v2959_v62, %v2817_v7  ;;  %9696 = vst [vmem:[#allocation59_spill] sm:$0xff] %v8473_v33  ;;  %v5510_v7 = vld [vmem:[%s5574_s26 + $0xd0] sm:$0xf] }
 0x2b4   : > { %5295 = vmatmul.mubr.msk.bf16.gmra.mxu1 %vm1402_vm5, %v3914_v47  ;;  %v2819_v60 = vpop.permute.xlu1 %2818  ;;  %v5076_v22 = vcombine.low %v5060_v1, %v5510_v7 }
 0x2b5   : > { %v3027_v19 = vsel %vm1103_vm2, %v2962_v44, %v2819_v60  ;;  %v3738_v44 = vsel %vm1022_vm1, %v5075_v56, %v9688_v16 }
 0x2b6   : > { %v2881_v54 = vpop.permute.xlu0 %2880 }
 0x2b7   : > { %v3089_v37 = vsel %vm1168_vm3, %v3025_v38, %v2881_v54 }
 0x2b8   : > { %v2823_v5 = vpop.permute.xlu1 %2822  ;;  %v3238_v30 = vshll.u32 %v3089_v37, 16  ;;  %v3236_v57 = vshrl.u32 %v3089_v37, 16  ;;  %v3742_v37 = vsel %vm1022_vm1, %v5076_v22, %v9691_v39 }
 0x2b9   : > { %v3031_v48 = vsel %vm1103_vm2, %v2967_v49, %v2823_v5 }
 0x2ba   : > { %v2885_v25 = vpop.permute.xlu0 %2884  ;;  %v3240_v23 = vrot.slane %v3238_v30, 1 }
 0x2bb   : > { %v3093_v21 = vsel %vm1168_vm3, %v3029_v20, %v2885_v25 }
 0x2bc   : > { %v3248_v51 = vshll.u32 %v3093_v21, 16  ;;  %v2887_v4 = vpop.permute.xlu1 %2886  ;;  %v3246_v24 = vshrl.u32 %v3093_v21, 16  ;;  %v3241_v20 = vor.u32 %v3240_v23, %v3236_v57  ;;  %v8478_v21 = vpop.f32.mrf.mxu0 }
 0x2bd   : > { %v3095_v58 = vsel %vm1168_vm3, %v3031_v48, %v2887_v4  ;;  %9697 = vst [vmem:[#allocation15_spill] sm:$0xff] %v8478_v21 }
 0x2be   : > { %v3250_v0 = vrot.slane %v3248_v51, 1  ;;  %v2883_v29 = vpop.permute.xlu0 %2882  ;;  %v3252_v15 = vshll.u32 %v3095_v58, 16  ;;  %v8493_v39 = vpop.f32.mrf.mxu0 }
 0x2bf   : > { %v3091_v32 = vsel %vm1168_vm3, %v3027_v19, %v2883_v29  ;;  %9698 = vst [vmem:[#allocation81_spill] sm:$0xff] %v8493_v39 }
 0x2c0   : > { %v3242_v47 = vshll.u32 %v3091_v32, 16  ;;  %v3251_v2 = vor.u32 %v3250_v0, %v3246_v24  ;;  %v3254_v62 = vrot.slane %v3252_v15, 1  ;;  %v3616_v38 = vpop.permute.xlu1 %3615  ;;  %v8501_v57 = vpop.f32.mrf.mxu0 }
 0x2c1   : > { %v3744_v48 = vsel %vm1022_vm1, %v8110_v61, %v3616_v38  ;;  %9699 = vst [vmem:[#allocation94_spill] sm:$0xff] %v8501_v57 }
 0x2c2   : > { %v3244_v30 = vrot.slane %v3242_v47, 1  ;;  %v3614_v11 = vpop.permute.xlu0 %3613  ;;  %v3255_v49 = vsel %vm1233_vm4, %v3251_v2, %v3254_v62  ;;  %v3792_v16 = vsel %vm1103_vm2, %v3744_v48, %v2823_v5 }
 0x2c3   : > { %v3740_v19 = vsel %vm1022_vm1, %v8116_v42, %v3614_v11 }
 0x2c4   : > { %v3245_v51 = vsel %vm1233_vm4, %v3241_v20, %v3244_v30  ;;  %v3648_v53 = vpop.permute.xlu1 %3647  ;;  %v3789_v14 = vsel %vm1103_vm2, %v3740_v19, %v2819_v60 }
 0x2c5   : > { %5264 = vmatprep.mubr.msk.bf16.mxu0 %vm1402_vm5, %v3245_v51  ;;  %v3791_v4 = vsel %vm1103_vm2, %v3742_v37, %v3648_v53 }
 0x2c6   : > { %5265 = vmatmul.mubr.msk.bf16.gmra.mxu0 %vm1402_vm5, %v3255_v49  ;;  %v3646_v1 = vpop.permute.xlu0 %3645  ;;  %v3838_v0 = vsel %vm1168_vm3, %v3791_v4, %v2885_v25  ;;  %v8508_v25 = vpop.f32.mrf.mxu0 }
 0x2c7   : > { %v3788_v23 = vsel %vm1103_vm2, %v3738_v44, %v3646_v1  ;;  %v3918_v15 = vrot.slane %v3838_v0, 1  ;;  %9700 = vst [vmem:[#allocation12_spill] sm:$0xff] %v8508_v25 }
 0x2c8   : > { %v3835_v58 = vsel %vm1168_vm3, %v3788_v23, %v2881_v54  ;;  %v3680_v29 = vpop.permute.xlu1 %3679  ;;  %v8513_v2 = vpop.f32.mrf.mxu0 }
 0x2c9   : > { %v3840_v61 = vsel %vm1168_vm3, %v3792_v16, %v3680_v29  ;;  %v3915_v47 = vrot.slane %v3835_v58, 1  ;;  %9701 = vst [vmem:[#allocation87_spill] sm:$0xff] %v8513_v2 }
 0x2ca   : > { %v3678_v24 = vpop.permute.xlu0 %3677  ;;  %v3919_v32 = vrot.slane %v3840_v61, 1  ;;  %v1600_v38 = vpop.f32.mrf.mxu0 }
 0x2cb   : > { %v3837_v42 = vsel %vm1168_vm3, %v3789_v14, %v3678_v24 }
 0x2cc   : > { %v3916_v7 = vrot.slane %v3837_v42, 1  ;;  %v3920_v54 = vsel %vm2141_vm6, %v3918_v15, %v3919_v32 }
 0x2cd   : > { %v8503_v22 = vpop.permute.xlu1 %4172 }
 0x2ce   : > { %v3917_v5 = vsel %vm2141_vm6, %v3915_v47, %v3916_v7 }
 0x2cf   : > { %5298 = vmatprep.mubr.msk.bf16.mxu1 %vm1402_vm5, %v3917_v5 }
 0x2d0   : > { %5299 = vmatmul.mubr.msk.bf16.gmra.mxu1 %vm1402_vm5, %v3920_v54 }
 0x2d1   : > { %v8511_v60 = vpop.permute.xlu1 %4176 }
 0x2d5   : > { %v8515_v62 = vpop.permute.xlu1 %4180 }
 0x2d9   : > { %v8517_v50 = vpop.permute.xlu1 %4184 }
 0x2da   : > { %v5238_v56 = vpop.f32.mrf.mxu0 }
 0x2dc   : > { %v3346_v20 = vpop.f32.mrf.mxu0 }
 0x2dd   : > { %4298 = vrot.lane.b32.xlu0 %v3346_v20, %s5523_s14  ;;  %v8520_v30 = vpop.permute.xlu1 %4188 }
 0x2de   : > { %v5239_v11 = vpop.f32.mrf.mxu0 }
 0x2e0   : > { %v3349_v49 = vpop.f32.mrf.mxu0 }
 0x2e1   : > { %4300 = vrot.lane.b32.xlu1 %v3349_v49, %s5523_s14  ;;  %4302 = vrot.lane.b32.xlu0 %v5238_v56, %s5523_s14  ;;  %v8524_v51 = vpop.permute.xlu1 %4192 }
 0x2e5   : > { %4304 = vrot.lane.b32.xlu1 %v5239_v11, %s5523_s14  ;;  %v8527_v37 = vpop.permute.xlu1 %4196 }
 0x2e9   : > { %v8529_v53 = vpop.permute.xlu1 %4200 }
 0x2ed   : > { %v8531_v44 = vpop.permute.xlu1 %4204 }
 0x2ee   : > { %v5242_v48 = vpop.f32.mrf.mxu0 }
 0x2f0   : > { %v3362_v4 = vpop.f32.mrf.mxu0 }
 0x2f1   : > { %4306 = vrot.lane.b32.xlu0 %v3362_v4, %s5523_s14  ;;  %v8534_v1 = vpop.permute.xlu1 %4208 }
 0x2f2   : > { %9702 = vst [vmem:[#allocation90_spill] sm:$0xff] %v8534_v1  ;;  %v5243_v19 = vpop.f32.mrf.mxu0 }
 0x2f4   : > { %v3365_v23 = vpop.f32.mrf.mxu0 }
 0x2f5   : > { %4308 = vrot.lane.b32.xlu1 %v3365_v23, %s5523_s14  ;;  %4310 = vrot.lane.b32.xlu0 %v5242_v48, %s5523_s14  ;;  %v8538_v0 = vpop.permute.xlu1 %4212  ;;  %v8565_v23 = vpop.permute.xlu0 %4170 }
 0x2f6   : > { %9703 = vst [vmem:[#allocation3_spill] sm:$0xff] %v8538_v0 }
 0x2f9   : > { %4312 = vrot.lane.b32.xlu1 %v5243_v19, %s5523_s14  ;;  %v8541_v58 = vpop.permute.xlu1 %4216 }
 0x2fa   : > { %9704 = vst [vmem:[#allocation86_spill] sm:$0xff] %v8541_v58 }
 0x2fd   : > { %v8543_v16 = vpop.permute.xlu1 %4220 }
 0x2fe   : > { %9705 = vst [vmem:[#allocation135_spill] sm:$0xff] %v8543_v16 }
 0x301   : > { %v8545_v29 = vpop.permute.xlu1 %4224 }
 0x302   : > { %9706 = vst [vmem:[#allocation137_spill] sm:$0xff] %v8545_v29  ;;  %v5246_v61 = vpop.f32.mrf.mxu0 }
 0x304   : > { %v3378_v14 = vpop.f32.mrf.mxu0 }
 0x305   : > { %4314 = vrot.lane.b32.xlu0 %v3378_v14, %s5523_s14  ;;  %v4229_v24 = vpop.permute.xlu1 %4228  ;;  %v5272_v14 = vpop.f32.mrf.mxu1 }
 0x306   : > { %v8549_v15 = vsel %vm1103_vm2, %v1600_v38, %v4229_v24  ;;  %v5247_v32 = vpop.f32.mrf.mxu0 }
 0x307   : > { %9707 = vst [vmem:[#allocation11_spill] sm:$0xff] %v8549_v15  ;;  %v4011_v24 = vpop.f32.mrf.mxu1 }
 0x308   : > { %v3381_v42 = vpop.f32.mrf.mxu0 }
 0x309   : > { %4316 = vrot.lane.b32.xlu1 %v3381_v42, %s5523_s14  ;;  %4318 = vrot.lane.b32.xlu0 %v5246_v61, %s5523_s14  ;;  %v8568_v61 = vpop.permute.xlu0 %4174  ;;  %v5273_v42 = vpop.f32.mrf.mxu1 }
 0x30d   : > { %4320 = vrot.lane.b32.xlu1 %v5247_v32, %s5523_s14  ;;  %v8570_v32 = vpop.permute.xlu0 %4178 }
 0x316   : > { %v5250_v47 = vpop.f32.mrf.mxu0 }
 0x318   : > { %v3394_v7 = vpop.f32.mrf.mxu0 }
 0x319   : > { %4322 = vrot.lane.b32.xlu0 %v3394_v7, %s5523_s14  ;;  %v4014_v7 = vpop.f32.mrf.mxu1 }
 0x31a   : > { %v5251_v54 = vpop.f32.mrf.mxu0 }
 0x31c   : > { %v3397_v5 = vpop.f32.mrf.mxu0 }
 0x31d   : > { %4324 = vrot.lane.b32.xlu1 %v3397_v5, %s5523_s14  ;;  %4326 = vrot.lane.b32.xlu0 %v5250_v47, %s5523_s14  ;;  %v8572_v47 = vpop.permute.xlu0 %4182  ;;  %v5276_v5 = vpop.f32.mrf.mxu1 }
 0x321   : > { %4328 = vrot.lane.b32.xlu1 %v5251_v54, %s5523_s14 }
 0x332   : > { %v5254_v38 = vpop.f32.mrf.mxu0 }
 0x334   : > { %v3410_v56 = vpop.f32.mrf.mxu0 }
 0x335   : > { %4330 = vrot.lane.b32.xlu0 %v3410_v56, %s5523_s14 }
 0x336   : > { %v5255_v20 = vpop.f32.mrf.mxu0 }
 0x338   : > { %v3413_v11 = vpop.f32.mrf.mxu0 }
 0x339   : > { %4332 = vrot.lane.b32.xlu1 %v3413_v11, %s5523_s14  ;;  %4334 = vrot.lane.b32.xlu0 %v5254_v38, %s5523_s14  ;;  %v4027_v11 = vpop.f32.mrf.mxu1 }
 0x33d   : > { %4336 = vrot.lane.b32.xlu1 %v5255_v20, %s5523_s14  ;;  %v8575_v20 = vpop.permute.xlu0 %4186 }
 0x34e   : > { %v5258_v49 = vpop.f32.mrf.mxu0 }
 0x350   : > { %v3426_v48 = vpop.f32.mrf.mxu0 }
 0x351   : > { %4338 = vrot.lane.b32.xlu0 %v3426_v48, %s5523_s14  ;;  %v5277_v48 = vpop.f32.mrf.mxu1 }
 0x352   : > { %v5259_v4 = vpop.f32.mrf.mxu0 }
 0x354   : > { %v3429_v19 = vpop.f32.mrf.mxu0 }
 0x355   : > { %4342 = vrot.lane.b32.xlu0 %v5258_v49, %s5523_s14  ;;  %4340 = vrot.lane.b32.xlu1 %v3429_v19, %s5523_s14  ;;  %v4030_v19 = vpop.f32.mrf.mxu1 }
 0x357   : > { %v5280_v2 = vpop.f32.mrf.mxu1 }
 0x359   : > { %4344 = vrot.lane.b32.xlu1 %v5259_v4, %s5523_s14  ;;  %v8579_v4 = vpop.permute.xlu0 %4190  ;;  %v4043_v57 = vpop.f32.mrf.mxu1 }
 0x35b   : > { %v5281_v25 = vpop.f32.mrf.mxu1 }
 0x35d   : > { %v8582_v15 = vpop.permute.xlu0 %4194  ;;  %v4046_v21 = vpop.f32.mrf.mxu1 }
 0x36a   : > { %v5262_v54 = vpop.f32.mrf.mxu0 }
 0x36c   : > { %v3442_v38 = vpop.f32.mrf.mxu0 }
 0x36d   : > { %4346 = vrot.lane.b32.xlu0 %v3442_v38, %s5523_s14  ;;  %v8584_v38 = vpop.permute.xlu0 %4198 }
 0x36e   : > { %v5263_v56 = vpop.f32.mrf.mxu0 }
 0x370   : > { %v3445_v49 = vpop.f32.mrf.mxu0 }
 0x371   : > { %4350 = vrot.lane.b32.xlu0 %v5262_v54, %s5523_s14  ;;  %4348 = vrot.lane.b32.xlu1 %v3445_v49, %s5523_s14  ;;  %v8586_v34 = vpop.permute.xlu0 %4202  ;;  %v5284_v54 = vpop.f32.mrf.mxu1 }
 0x373   : > { %v4059_v16 = vpop.f32.mrf.mxu1 }
 0x375   : > { %4352 = vrot.lane.b32.xlu1 %v5263_v56, %s5523_s14  ;;  %v8589_v56 = vpop.permute.xlu0 %4206  ;;  %v5285_v28 = vpop.f32.mrf.mxu1 }
 0x376   : > { %9708 = vst [vmem:[#allocation89_spill] sm:$0xff] %v8589_v56 }
 0x377   : > { %v4062_v18 = vpop.f32.mrf.mxu1 }
 0x379   : > { %v8595_v58 = vpop.permute.xlu0 %4210 }
 0x37a   : > { %9709 = vst [vmem:[#allocation8_spill] sm:$0xff] %v8595_v58 }
 0x37d   : > { %v8599_v6 = vpop.permute.xlu0 %4214 }
 0x37e   : > { %9710 = vst [vmem:[#allocation57_spill] sm:$0xff] %v8599_v6 }
 0x386   : > { %v5266_v29 = vpop.f32.mrf.mxu0 }
 0x388   : > { %v3458_v39 = vpop.f32.mrf.mxu0 }
 0x389   : > { %4354 = vrot.lane.b32.xlu0 %v3458_v39, %s5523_s14  ;;  %v5288_v39 = vpop.f32.mrf.mxu1 }
 0x38a   : > { %v5267_v49 = vpop.f32.mrf.mxu0 }
 0x38c   : > { %v3461_v33 = vpop.f32.mrf.mxu0 }
 0x38d   : > { %4358 = vrot.lane.b32.xlu0 %v5266_v29, %s5523_s14  ;;  %4356 = vrot.lane.b32.xlu1 %v3461_v33, %s5523_s14  ;;  %v4075_v33 = vpop.f32.mrf.mxu1 }
 0x38f   : > { %v5289_v29 = vpop.f32.mrf.mxu1 }
 0x391   : > { %4426 = vrot.lane.b32.xlu0 %v4011_v24, %s5524_s15  ;;  %4360 = vrot.lane.b32.xlu1 %v5267_v49, %s5523_s14  ;;  %v8605_v24 = vpop.permute.xlu0 %4218 }
 0x392   : > { %9711 = vst [vmem:[#allocation66_spill] sm:$0xff] %v8605_v24 }
 0x395   : > { %4430 = vrot.lane.b32.xlu0 %v5272_v14, %s5524_s15  ;;  %4428 = vrot.lane.b32.xlu1 %v4014_v7, %s5524_s15  ;;  %v4078_v14 = vpop.f32.mrf.mxu1  ;;  %v8609_v49 = vpop.permute.xlu0 %4222 }
 0x396   : > { %9712 = vst [vmem:[#allocation70_spill] sm:$0xff] %v8609_v49 }
 0x397   : > { %v5292_v7 = vpop.f32.mrf.mxu1 }
 0x399   : > { %4434 = vrot.lane.b32.xlu0 %v4027_v11, %s5524_s15  ;;  %4432 = vrot.lane.b32.xlu1 %v5273_v42, %s5524_s15  ;;  %v4091_v42 = vpop.f32.mrf.mxu1 }
 0x39b   : > { %v5293_v11 = vpop.f32.mrf.mxu1 }
 0x39d   : > { %4438 = vrot.lane.b32.xlu0 %v5276_v5, %s5524_s15  ;;  %4436 = vrot.lane.b32.xlu1 %v4030_v19, %s5524_s15  ;;  %v8615_v5 = vpop.permute.xlu0 %4226 }
 0x39e   : > { %9713 = vst [vmem:[#allocation97_spill] sm:$0xff] %v8615_v5 }
 0x3a1   : > { %4442 = vrot.lane.b32.xlu0 %v4043_v57, %s5524_s15  ;;  %4440 = vrot.lane.b32.xlu1 %v5277_v48, %s5524_s15  ;;  %v4094_v57 = vpop.f32.mrf.mxu1  ;;  %v8619_v48 = vpop.permute.xlu0 %4230 }
 0x3a2   : > { %9714 = vst [vmem:[#allocation118_spill] sm:$0xff] %v8619_v48 }
 0x3a5   : > { %4446 = vrot.lane.b32.xlu0 %v5280_v2, %s5524_s15  ;;  %4444 = vrot.lane.b32.xlu1 %v4046_v21, %s5524_s15  ;;  %v5296_v21 = vpop.f32.mrf.mxu1  ;;  %v8623_v2 = vpop.permute.xlu1 %4232 }
 0x3a6   : > { %9715 = vst [vmem:[#allocation93_spill] sm:$0xff] %v8623_v2 }
 0x3a9   : > { %4450 = vrot.lane.b32.xlu0 %v4059_v16, %s5524_s15  ;;  %4448 = vrot.lane.b32.xlu1 %v5281_v25, %s5524_s15  ;;  %v4299_v16 = vpop.permute.xlu0 %4298  ;;  %v4107_v25 = vpop.f32.mrf.mxu1 }
 0x3aa   : > { %v8627_v19 = vpop.permute.xlu1 %4300 }
 0x3ad   : > { %4454 = vrot.lane.b32.xlu0 %v5284_v54, %s5524_s15  ;;  %4452 = vrot.lane.b32.xlu1 %v4062_v18, %s5524_s15  ;;  %v5297_v18 = vpop.f32.mrf.mxu1  ;;  %v4303_v54 = vpop.permute.xlu0 %4302 }
 0x3b1   : > { %4458 = vrot.lane.b32.xlu0 %v4075_v33, %s5524_s15  ;;  %4456 = vrot.lane.b32.xlu1 %v5285_v28, %s5524_s15  ;;  %v4110_v28 = vpop.f32.mrf.mxu1  ;;  %v8633_v33 = vpop.permute.xlu1 %4304 }
 0x3b2   : > { %v8635_v2 = vpop.permute.xlu0 %4306 }
 0x3b5   : > { %4462 = vrot.lane.b32.xlu0 %v5288_v39, %s5524_s15  ;;  %4460 = vrot.lane.b32.xlu1 %v4078_v14, %s5524_s15  ;;  %v5300_v39 = vpop.f32.mrf.mxu1  ;;  %v8639_v14 = vpop.permute.xlu1 %4308 }
 0x3b9   : > { %4466 = vrot.lane.b32.xlu0 %v4091_v42, %s5524_s15  ;;  %4464 = vrot.lane.b32.xlu1 %v5289_v29, %s5524_s15  ;;  %v4123_v42 = vpop.f32.mrf.mxu1  ;;  %v8641_v29 = vpop.permute.xlu0 %4310 }
 0x3bd   : > { %4470 = vrot.lane.b32.xlu0 %v5292_v7, %s5524_s15  ;;  %4468 = vrot.lane.b32.xlu1 %v4094_v57, %s5524_s15  ;;  %v5301_v7 = vpop.f32.mrf.mxu1  ;;  %v8645_v57 = vpop.permute.xlu1 %4312 }
 0x3be   : > { %v8647_v48 = vpop.permute.xlu0 %4314 }
 0x3c1   : > { %4474 = vrot.lane.b32.xlu0 %v4107_v25, %s5524_s15  ;;  %4472 = vrot.lane.b32.xlu1 %v5293_v11, %s5524_s15  ;;  %v4126_v25 = vpop.f32.mrf.mxu1  ;;  %v8651_v11 = vpop.permute.xlu1 %4316 }
 0x3c2   : > { %v8655_v5 = vpop.permute.xlu0 %4318 }
 0x3c5   : > { %4478 = vrot.lane.b32.xlu0 %v5296_v21, %s5524_s15  ;;  %4476 = vrot.lane.b32.xlu1 %v4110_v28, %s5524_s15  ;;  %v8658_v21 = vpop.permute.xlu1 %4320 }
 0x3c6   : > { %v8660_v28 = vpop.permute.xlu0 %4322 }
 0x3c9   : > { %4480 = vrot.lane.b32.xlu1 %v5297_v18, %s5524_s15  ;;  %4482 = vrot.lane.b32.xlu0 %v4123_v42, %s5524_s15  ;;  %v8662_v49 = vpop.permute.xlu1 %4324 }
 0x3ca   : > { %v8664_v18 = vpop.permute.xlu0 %4326 }
 0x3cd   : > { %4486 = vrot.lane.b32.xlu0 %v5300_v39, %s5524_s15  ;;  %4484 = vrot.lane.b32.xlu1 %v4126_v25, %s5524_s15  ;;  %v8666_v42 = vpop.permute.xlu1 %4328 }
 0x3ce   : > { %v8668_v24 = vpop.permute.xlu0 %4330 }
 0x3d1   : > { %4488 = vrot.lane.b32.xlu1 %v5301_v7, %s5524_s15  ;;  %v8670_v39 = vpop.permute.xlu1 %4332 }
 0x3d2   : > { %9716 = vst [vmem:[#allocation96_spill] sm:$0xff] %v8670_v39  ;;  %v8672_v25 = vpop.permute.xlu0 %4334 }
 0x3d3   : > { %9717 = vst [vmem:[#allocation123_spill] sm:$0xff] %v8672_v25 }
 0x3d5   : > { %v8674_v6 = vpop.permute.xlu1 %4336 }
 0x3d6   : > { %9718 = vst [vmem:[#allocation139_spill] sm:$0xff] %v8674_v6  ;;  %v8676_v7 = vpop.permute.xlu0 %4338 }
 0x3d9   : > { %v8678_v0 = vpop.permute.xlu1 %4340 }
 0x3da   : > { %v8680_v41 = vpop.permute.xlu0 %4342 }
 0x3dd   : > { %v8682_v58 = vpop.permute.xlu1 %4344 }
 0x3de   : > { %9719 = vst [vmem:[#allocation141_spill] sm:$0xff] %v8682_v58  ;;  %v4522_v58 = vsel %vm1103_vm2, %v8205_v9, %v8565_v23  ;;  %v4523_v23 = vsel %vm1103_vm2, %v8234_v17, %v8503_v22 }
 0x3df   : > { %v8684_v35 = vpop.permute.xlu0 %4346 }
 0x3e3   : > { %v8686_v1 = vpop.permute.xlu1 %4348  ;;  %v8688_v31 = vpop.permute.xlu0 %4350 }
 0x3e4   : > { %9720 = vst [vmem:[#allocation73_spill] sm:$0xff] %v8686_v1  ;;  %9721 = vst [vmem:[#allocation75_spill] sm:$0xff] %v8688_v31  ;;  %v8705_v1 = vld [vmem:[%s9003_s5] ss:$0 sm:$0xff]  ;;  %v4554_v31 = vsel %vm1402_vm5, %v4522_v58, %v4299_v16  ;;  %v4524_v58 = vsel %vm1103_vm2, %v8198_v45, %v8568_v61  ;;  %v4555_v16 = vsel %vm1402_vm5, %v4523_v23, %v8627_v19 }
 0x3e5   : > { %v4525_v45 = vsel %vm1103_vm2, %v8220_v10, %v8511_v60  ;;  %v4526_v61 = vsel %vm1103_vm2, %v8256_v43, %v8570_v32  ;;  %v4527_v32 = vsel %vm1103_vm2, %v8286_v8, %v8515_v62 }
 0x3e6   : > { %v4557_v19 = vsel %vm1402_vm5, %v4525_v45, %v8633_v33  ;;  %v4559_v33 = vsel %vm1402_vm5, %v4527_v32, %v8639_v14  ;;  %v4530_v14 = vsel %vm1103_vm2, %v8308_v13, %v8575_v20  ;;  %v4531_v20 = vsel %vm1103_vm2, %v8337_v46, %v8520_v30 }
 0x3e7   : > { %v8690_v56 = vpop.permute.xlu1 %4352 }
 0x3e8   : > { %9722 = vst [vmem:[#allocation107_spill] sm:$0xff] %v8690_v56 }
 0x3fb   : > { %v8692_v39 = vpop.permute.xlu0 %4354 }
 0x3fc   : > { %9723 = vst [vmem:[#allocation116_spill] sm:$0xff] %v8692_v39 }
 0x3ff   : > { %v8694_v25 = vpop.permute.xlu1 %4356  ;;  %v8696_v6 = vpop.permute.xlu0 %4358 }
 0x400   : > { %9724 = vst [vmem:[#allocation109_spill] sm:$0xff] %v8694_v25  ;;  %9725 = vst [vmem:[#allocation99_spill] sm:$0xff] %v8696_v6 }
 0x403   : > { %v8708_v56 = vpop.permute.xlu1 %4360  ;;  %v4427_v39 = vpop.permute.xlu0 %4426 }
 0x404   : > { %9726 = vst [vmem:[#allocation50_spill] sm:$0xff] %v8708_v56  ;;  %v4587_v6 = vsel %vm4586_vm7, %v4554_v31, %v4427_v39  ;;  %v4556_v56 = vsel %vm1402_vm5, %v4524_v58, %v4303_v54 }
 0x405   : > { %v4626_v9 = vadd.f32 %v8705_v1, %v4587_v6 }
 0x407   : > { %4659 = vst.msk [vmem:[%s8713_s23] sm:$0xff] %vm4658_vm8, %v4626_v9  ;;  %v4429_v31 = vpop.permute.xlu1 %4428  ;;  %v4431_v39 = vpop.permute.xlu0 %4430 }
 0x408   : > { %v4588_v6 = vsel %vm4586_vm7, %v4555_v16, %v4429_v31  ;;  %v4589_v25 = vsel %vm4586_vm7, %v4556_v56, %v4431_v39  ;;  %v4558_v56 = vsel %vm1402_vm5, %v4526_v61, %v8635_v2  ;;  %v4528_v2 = vsel %vm1103_vm2, %v8249_v26, %v8572_v47 }
 0x409   : > { %v4627_v17 = vadd.f32 %v8705_v1, %v4588_v6  ;;  %v4628_v22 = vadd.f32 %v8705_v1, %v4589_v25  ;;  %v4560_v23 = vsel %vm1402_vm5, %v4528_v2, %v8641_v29  ;;  %v4529_v47 = vsel %vm1103_vm2, %v8273_v40, %v8517_v50 }
 0x40a   : > { %v4561_v29 = vsel %vm1402_vm5, %v4529_v47, %v8645_v57  ;;  %v4562_v39 = vsel %vm1402_vm5, %v4530_v14, %v8647_v48  ;;  %v4532_v48 = vsel %vm1103_vm2, %v8293_v27, %v8579_v4  ;;  %v4563_v57 = vsel %vm1402_vm5, %v4531_v20, %v8651_v11 }
 0x40b   : > { %4660 = vst.msk [vmem:[%s8713_s23 + $0x8] sm:$0xff] %vm4658_vm8, %v4627_v17  ;;  %4661 = vst.msk [vmem:[%s8713_s23 + $0x10] sm:$0xff] %vm4658_vm8, %v4628_v22  ;;  %v4433_v54 = vpop.permute.xlu1 %4432  ;;  %v4435_v25 = vpop.permute.xlu0 %4434  ;;  %v4564_v45 = vsel %vm1402_vm5, %v4532_v48, %v8655_v5  ;;  %v4533_v4 = vsel %vm1103_vm2, %v8322_v36, %v8524_v51  ;;  %v4534_v5 = vsel %vm1103_vm2, %v8361_v55, %v8582_v15  ;;  %v9735_v48 = vld [vmem:[#allocation139_spill] sm:$0xff] }
 0x40c   : > { %v4590_v10 = vsel %vm4586_vm7, %v4557_v19, %v4433_v54  ;;  %v4591_v60 = vsel %vm4586_vm7, %v4558_v56, %v4435_v25  ;;  %v4565_v11 = vsel %vm1402_vm5, %v4533_v4, %v8658_v21  ;;  %v4566_v54 = vsel %vm1402_vm5, %v4534_v5, %v8660_v28  ;;  %v9736_v4 = vld [vmem:[#allocation3_spill] sm:$0xff]  ;;  %v9737_v5 = vld [vmem:[#allocation105_spill] sm:$0xff] }
 0x40d   : > { %v4629_v9 = vadd.f32 %v8705_v1, %v4590_v10  ;;  %v4630_v43 = vadd.f32 %v8705_v1, %v4591_v60  ;;  %v4535_v15 = vsel %vm1103_vm2, %v8381_v63, %v8527_v37  ;;  %v4536_v21 = vsel %vm1103_vm2, %v8344_v52, %v8584_v38 }
 0x40e   : > { %v4567_v28 = vsel %vm1402_vm5, %v4535_v15, %v8662_v49  ;;  %v4537_v38 = vsel %vm1103_vm2, %v8374_v12, %v8529_v53  ;;  %v4538_v49 = vsel %vm1103_vm2, %v8400_v59, %v8586_v34  ;;  %v4539_v34 = vsel %vm1103_vm2, %v8416_v3, %v8531_v44 }
 0x40f   : > { %4662 = vst.msk [vmem:[%s8713_s23 + $0x18] sm:$0xff] %vm4658_vm8, %v4629_v9  ;;  %4663 = vst.msk [vmem:[%s8713_s23 + $0x20] sm:$0xff] %vm4658_vm8, %v4630_v43  ;;  %v4437_v58 = vpop.permute.xlu1 %4436  ;;  %v4439_v16 = vpop.permute.xlu0 %4438  ;;  %v4568_v9 = vsel %vm1402_vm5, %v4536_v21, %v8664_v18  ;;  %v4569_v18 = vsel %vm1402_vm5, %v4537_v38, %v8666_v42  ;;  %v9727_v42 = vld [vmem:[#allocation89_spill] sm:$0xff] }
 0x410   : > { %v4592_v8 = vsel %vm4586_vm7, %v4559_v33, %v4437_v58  ;;  %v4593_v62 = vsel %vm4586_vm7, %v4560_v23, %v4439_v16  ;;  %v4570_v33 = vsel %vm1402_vm5, %v4538_v49, %v8668_v24  ;;  %v9728_v24 = vld [vmem:[#allocation76_spill] sm:$0xff] }
 0x411   : > { %v4631_v31 = vadd.f32 %v8705_v1, %v4592_v8  ;;  %v4632_v26 = vadd.f32 %v8705_v1, %v4593_v62  ;;  %v4540_v8 = vsel %vm1103_vm2, %v9728_v24, %v9727_v42  ;;  %v9729_v62 = vld [vmem:[#allocation96_spill] sm:$0xff]  ;;  %v9749_v42 = vld [vmem:[#allocation73_spill] sm:$0xff] }
 0x413   : > { %4664 = vst.msk [vmem:[%s8713_s23 + $0x28] sm:$0xff] %vm4658_vm8, %v4631_v31  ;;  %4665 = vst.msk [vmem:[%s8713_s23 + $0x30] sm:$0xff] %vm4658_vm8, %v4632_v26  ;;  %v4441_v6 = vpop.permute.xlu1 %4440  ;;  %v4443_v17 = vpop.permute.xlu0 %4442  ;;  %v4571_v31 = vsel %vm1402_vm5, %v4539_v34, %v9729_v62  ;;  %v9730_v26 = vld [vmem:[#allocation123_spill] sm:$0xff] }
 0x414   : > { %v4594_v40 = vsel %vm4586_vm7, %v4561_v29, %v4441_v6  ;;  %v4595_v50 = vsel %vm4586_vm7, %v4562_v39, %v4443_v17  ;;  %v4572_v47 = vsel %vm1402_vm5, %v4540_v8, %v9730_v26  ;;  %v9731_v17 = vld [vmem:[#allocation90_spill] sm:$0xff]  ;;  %v9750_v8 = vld [vmem:[#allocation75_spill] sm:$0xff] }
 0x415   : > { %v4633_v22 = vadd.f32 %v8705_v1, %v4594_v40  ;;  %v4634_v13 = vadd.f32 %v8705_v1, %v4595_v50  ;;  %v9732_v40 = vld [vmem:[#allocation79_spill] sm:$0xff] }
 0x416   : > { %v4541_v50 = vsel %vm1103_vm2, %v9732_v40, %v9731_v17  ;;  %v9753_v17 = vld [vmem:[#allocation97_spill] sm:$0xff]  ;;  %v9754_v40 = vld [vmem:[#allocation12_spill] sm:$0xff] }
 0x417   : > { %4666 = vst.msk [vmem:[%s8713_s23 + $0x38] sm:$0xff] %vm4658_vm8, %v4633_v22  ;;  %4667 = vst.msk [vmem:[%s8713_s23 + $0x40] sm:$0xff] %vm4658_vm8, %v4634_v13  ;;  %v4445_v61 = vpop.permute.xlu1 %4444  ;;  %v4447_v19 = vpop.permute.xlu0 %4446  ;;  %v9733_v22 = vld [vmem:[#allocation8_spill] sm:$0xff]  ;;  %v9734_v13 = vld [vmem:[#allocation103_spill] sm:$0xff] }
 0x418   : > { %v4596_v46 = vsel %vm4586_vm7, %v4563_v57, %v4445_v61  ;;  %v4597_v30 = vsel %vm4586_vm7, %v4564_v45, %v4447_v19  ;;  %v4542_v20 = vsel %vm1103_vm2, %v9734_v13, %v9733_v22  ;;  %v4573_v57 = vsel %vm1402_vm5, %v4541_v50, %v9735_v48  ;;  %v9755_v22 = vld [vmem:[#allocation107_spill] sm:$0xff] }
 0x419   : > { %v4635_v56 = vadd.f32 %v8705_v1, %v4596_v46  ;;  %v4636_v27 = vadd.f32 %v8705_v1, %v4597_v30  ;;  %v4574_v45 = vsel %vm1402_vm5, %v4542_v20, %v8676_v7  ;;  %v9739_v7 = vld [vmem:[#allocation132_spill] sm:$0xff]  ;;  %v4550_v50 = vsel %vm1103_vm2, %v9754_v40, %v9753_v17 }
 0x41a   : > { %v9756_v20 = vld [vmem:[#allocation116_spill] sm:$0xff] }
 0x41b   : > { %4668 = vst.msk [vmem:[%s8713_s23 + $0x48] sm:$0xff] %vm4658_vm8, %v4635_v56  ;;  %4669 = vst.msk [vmem:[%s8713_s23 + $0x50] sm:$0xff] %vm4658_vm8, %v4636_v27  ;;  %v4449_v25 = vpop.permute.xlu1 %4448  ;;  %v4451_v10 = vpop.permute.xlu0 %4450  ;;  %v4582_v48 = vsel %vm1402_vm5, %v4550_v50, %v9756_v20 }
 0x41c   : > { %v4598_v36 = vsel %vm4586_vm7, %v4565_v11, %v4449_v25  ;;  %v4599_v51 = vsel %vm4586_vm7, %v4566_v54, %v4451_v10  ;;  %v4543_v11 = vsel %vm1103_vm2, %v9737_v5, %v9736_v4  ;;  %v9738_v54 = vld [vmem:[#allocation57_spill] sm:$0xff] }
 0x41d   : > { %v4637_v60 = vadd.f32 %v8705_v1, %v4598_v36  ;;  %v4638_v55 = vadd.f32 %v8705_v1, %v4599_v51  ;;  %v4544_v25 = vsel %vm1103_vm2, %v9739_v7, %v9738_v54  ;;  %v4575_v10 = vsel %vm1402_vm5, %v4543_v11, %v8678_v0  ;;  %v9759_v5 = vld [vmem:[#allocation109_spill] sm:$0xff]  ;;  %v9760_v11 = vld [vmem:[#allocation11_spill] sm:$0xff] }
 0x41e   : > { %v4576_v36 = vsel %vm1402_vm5, %v4544_v25, %v8680_v41  ;;  %v9743_v41 = vld [vmem:[#allocation59_spill] sm:$0xff]  ;;  %v4583_v54 = vsel %vm1402_vm5, %v9760_v11, %v9759_v5 }
 0x41f   : > { %4670 = vst.msk [vmem:[%s8713_s23 + $0x58] sm:$0xff] %vm4658_vm8, %v4637_v60  ;;  %4671 = vst.msk [vmem:[%s8713_s23 + $0x60] sm:$0xff] %vm4658_vm8, %v4638_v55  ;;  %v4453_v43 = vpop.permute.xlu1 %4452  ;;  %v4455_v32 = vpop.permute.xlu0 %4454  ;;  %v9761_v7 = vld [vmem:[#allocation99_spill] sm:$0xff] }
 0x420   : > { %v4600_v63 = vsel %vm4586_vm7, %v4567_v28, %v4453_v43  ;;  %v4601_v37 = vsel %vm4586_vm7, %v4568_v9, %v4455_v32  ;;  %v9740_v9 = vld [vmem:[#allocation86_spill] sm:$0xff]  ;;  %v9741_v43 = vld [vmem:[#allocation120_spill] sm:$0xff] }
 0x421   : > { %v4639_v2 = vadd.f32 %v8705_v1, %v4600_v63  ;;  %v4640_v52 = vadd.f32 %v8705_v1, %v4601_v37  ;;  %v4545_v0 = vsel %vm1103_vm2, %v9741_v43, %v9740_v9  ;;  %v9742_v32 = vld [vmem:[#allocation66_spill] sm:$0xff]  ;;  %v9744_v37 = vld [vmem:[#allocation141_spill] sm:$0xff] }
 0x422   : > { %v4546_v63 = vsel %vm1103_vm2, %v9743_v41, %v9742_v32  ;;  %v9764_v43 = vld [vmem:[#allocation50_spill] sm:$0xff] }
 0x423   : > { %4672 = vst.msk [vmem:[%s8713_s23 + $0x68] sm:$0xff] %vm4658_vm8, %v4639_v2  ;;  %4673 = vst.msk [vmem:[%s8713_s23 + $0x70] sm:$0xff] %vm4658_vm8, %v4640_v52  ;;  %v4457_v23 = vpop.permute.xlu1 %4456  ;;  %v4459_v58 = vpop.permute.xlu0 %4458  ;;  %v4577_v2 = vsel %vm1402_vm5, %v4545_v0, %v9744_v37  ;;  %v4578_v52 = vsel %vm1402_vm5, %v4546_v63, %v8684_v35  ;;  %v9748_v35 = vld [vmem:[#allocation62_spill] sm:$0xff] }
 0x424   : > { %v4602_v12 = vsel %vm4586_vm7, %v4569_v18, %v4457_v23  ;;  %v4603_v53 = vsel %vm4586_vm7, %v4570_v33, %v4459_v58 }
 0x425   : > { %v4641_v16 = vadd.f32 %v8705_v1, %v4602_v12  ;;  %v4642_v59 = vadd.f32 %v8705_v1, %v4603_v53  ;;  %v9745_v12 = vld [vmem:[#allocation135_spill] sm:$0xff]  ;;  %v9746_v53 = vld [vmem:[#allocation81_spill] sm:$0xff] }
 0x427   : > { %4674 = vst.msk [vmem:[%s8713_s23 + $0x78] sm:$0xff] %vm4658_vm8, %v4641_v16  ;;  %4675 = vst.msk [vmem:[%s8713_s23 + $0x80] sm:$0xff] %vm4658_vm8, %v4642_v59  ;;  %v4461_v14 = vpop.permute.xlu1 %4460  ;;  %v4463_v29 = vpop.permute.xlu0 %4462  ;;  %v4547_v16 = vsel %vm1103_vm2, %v9746_v53, %v9745_v12  ;;  %v9747_v59 = vld [vmem:[#allocation70_spill] sm:$0xff] }
 0x428   : > { %v4604_v3 = vsel %vm4586_vm7, %v4571_v31, %v4461_v14  ;;  %v4605_v44 = vsel %vm4586_vm7, %v4572_v47, %v4463_v29  ;;  %v4548_v34 = vsel %vm1103_vm2, %v9748_v35, %v9747_v59  ;;  %v4579_v24 = vsel %vm1402_vm5, %v4547_v16, %v9749_v42 }
 0x429   : > { %v4643_v39 = vadd.f32 %v8705_v1, %v4604_v3  ;;  %v4644_v6 = vadd.f32 %v8705_v1, %v4605_v44  ;;  %v4580_v62 = vsel %vm1402_vm5, %v4548_v34, %v9750_v8  ;;  %v9751_v44 = vld [vmem:[#allocation137_spill] sm:$0xff] }
 0x42b   : > { %4676 = vst.msk [vmem:[%s8713_s23 + $0x88] sm:$0xff] %vm4658_vm8, %v4643_v39  ;;  %4677 = vst.msk [vmem:[%s8713_s23 + $0x90] sm:$0xff] %vm4658_vm8, %v4644_v6  ;;  %v4465_v61 = vpop.permute.xlu1 %4464  ;;  %v4467_v19 = vpop.permute.xlu0 %4466  ;;  %v9752_v39 = vld [vmem:[#allocation15_spill] sm:$0xff] }
 0x42c   : > { %v4606_v46 = vsel %vm4586_vm7, %v4573_v57, %v4465_v61  ;;  %v4607_v30 = vsel %vm4586_vm7, %v4574_v45, %v4467_v19  ;;  %v4549_v6 = vsel %vm1103_vm2, %v9752_v39, %v9751_v44 }
 0x42d   : > { %v4645_v56 = vadd.f32 %v8705_v1, %v4606_v46  ;;  %v4646_v27 = vadd.f32 %v8705_v1, %v4607_v30  ;;  %v4581_v13 = vsel %vm1402_vm5, %v4549_v6, %v9755_v22 }
 0x42f   : > { %4678 = vst.msk [vmem:[%s8713_s23 + $0x98] sm:$0xff] %vm4658_vm8, %v4645_v56  ;;  %4679 = vst.msk [vmem:[%s8713_s23 + $0xa0] sm:$0xff] %vm4658_vm8, %v4646_v27  ;;  %v4469_v51 = vpop.permute.xlu1 %4468  ;;  %v4471_v60 = vpop.permute.xlu0 %4470  ;;  %v9757_v56 = vld [vmem:[#allocation118_spill] sm:$0xff] }
 0x430   : > { %v4608_v55 = vsel %vm4586_vm7, %v4575_v10, %v4469_v51  ;;  %v4609_v15 = vsel %vm4586_vm7, %v4576_v36, %v4471_v60  ;;  %v9758_v27 = vld [vmem:[#allocation94_spill] sm:$0xff] }
 0x431   : > { %v4647_v21 = vadd.f32 %v8705_v1, %v4608_v55  ;;  %v4648_v28 = vadd.f32 %v8705_v1, %v4609_v15  ;;  %v4552_v4 = vsel %vm1103_vm2, %v9758_v27, %v9757_v56 }
 0x432   : > { %v4584_v25 = vsel %vm1402_vm5, %v4552_v4, %v9761_v7 }
 0x433   : > { %4680 = vst.msk [vmem:[%s8713_s23 + $0xa8] sm:$0xff] %vm4658_vm8, %v4647_v21  ;;  %4681 = vst.msk [vmem:[%s8713_s23 + $0xb0] sm:$0xff] %vm4658_vm8, %v4648_v28  ;;  %v4473_v38 = vpop.permute.xlu1 %4472  ;;  %v4475_v49 = vpop.permute.xlu0 %4474  ;;  %v9762_v21 = vld [vmem:[#allocation93_spill] sm:$0xff]  ;;  %v9763_v28 = vld [vmem:[#allocation87_spill] sm:$0xff] }
 0x434   : > { %v4610_v18 = vsel %vm4586_vm7, %v4577_v2, %v4473_v38  ;;  %v4611_v33 = vsel %vm4586_vm7, %v4578_v52, %v4475_v49  ;;  %v4553_v9 = vsel %vm1103_vm2, %v9763_v28, %v9762_v21 }
 0x435   : > { %v4649_v23 = vadd.f32 %v8705_v1, %v4610_v18  ;;  %v4650_v58 = vadd.f32 %v8705_v1, %v4611_v33  ;;  %v4585_v0 = vsel %vm1402_vm5, %v4553_v9, %v9764_v43 }
 0x437   : > { %4682 = vst.msk [vmem:[%s8713_s23 + $0xb8] sm:$0xff] %vm4658_vm8, %v4649_v23  ;;  %4683 = vst.msk [vmem:[%s8713_s23 + $0xc0] sm:$0xff] %vm4658_vm8, %v4650_v58  ;;  %v4477_v31 = vpop.permute.xlu1 %4476  ;;  %v4479_v26 = vpop.permute.xlu0 %4478 }
 0x438   : > { %v4612_v47 = vsel %vm4586_vm7, %v4579_v24, %v4477_v31  ;;  %v4613_v14 = vsel %vm4586_vm7, %v4580_v62, %v4479_v26 }
 0x439   : > { %v4651_v29 = vadd.f32 %v8705_v1, %v4612_v47  ;;  %v4652_v3 = vadd.f32 %v8705_v1, %v4613_v14 }
 0x43b   : > { %4684 = vst.msk [vmem:[%s8713_s23 + $0xc8] sm:$0xff] %vm4658_vm8, %v4651_v29  ;;  %4685 = vst.msk [vmem:[%s8713_s23 + $0xd0] sm:$0xff] %vm4658_vm8, %v4652_v3  ;;  %v4481_v57 = vpop.permute.xlu1 %4480  ;;  %v4483_v45 = vpop.permute.xlu0 %4482 }
 0x43c   : > { %v4614_v61 = vsel %vm4586_vm7, %v4581_v13, %v4481_v57  ;;  %v4615_v19 = vsel %vm4586_vm7, %v4582_v48, %v4483_v45 }
 0x43d   : > { %v4653_v46 = vadd.f32 %v8705_v1, %v4614_v61  ;;  %v4654_v30 = vadd.f32 %v8705_v1, %v4615_v19 }
 0x43f   : > { %4686 = vst.msk [vmem:[%s8713_s23 + $0xd8] sm:$0xff] %vm4658_vm8, %v4653_v46  ;;  %4687 = vst.msk [vmem:[%s8713_s23 + $0xe0] sm:$0xff] %vm4658_vm8, %v4654_v30  ;;  %v4485_v10 = vpop.permute.xlu1 %4484  ;;  %v4487_v36 = vpop.permute.xlu0 %4486 }
 0x440   : > { %v4616_v51 = vsel %vm4586_vm7, %v4583_v54, %v4485_v10  ;;  %v4617_v60 = vsel %vm4586_vm7, %v4584_v25, %v4487_v36 }
 0x441   : > { %v4655_v55 = vadd.f32 %v8705_v1, %v4616_v51  ;;  %v4656_v15 = vadd.f32 %v8705_v1, %v4617_v60 }
 0x443   : > { %4688 = vst.msk [vmem:[%s8713_s23 + $0xe8] sm:$0xff] %vm4658_vm8, %v4655_v55  ;;  %4689 = vst.msk [vmem:[%s8713_s23 + $0xf0] sm:$0xff] %vm4658_vm8, %v4656_v15  ;;  %v4489_v32 = vpop.permute.xlu1 %4488 }
 0x444   : > { %v4618_v41 = vsel %vm4586_vm7, %v4585_v0, %v4489_v32 }
 0x445   : > { %v4657_v63 = vadd.f32 %v8705_v1, %v4618_v41 }
 0x447   : > { %4690 = vst.msk [vmem:[%s8713_s23 + $0xf8] sm:$0xff] %vm4658_vm8, %v4657_v63 }
 0x448 PF: > { %s16_s21 = sadd.s32 1, %s5518_s21  }
 0x449   : > { %p13_p4 = scmp.ge.s32.totalorder %s16_s21, 4  }
 0x44b   :  { %15 = sbr.rel (!%p13_p4) target bundleno = 1 (0x1), region = 76 }

</bundles_post_ra>
